<compile_context>
chip_gen: v6e
topology: v6e:2x2x1
jax: 0.10.0
libtpu: 0.0.40
codegen_flags: <defaults>
</compile_context>

<pallas_src>
import functools

import jax
import jax.numpy as jnp
from jax.experimental import pallas as pl
from jax.experimental.pallas import tpu as pltpu


# --------------------------------------------------------------------------- #
# Fused kernel: conv (im2col matmul, bias folded) + ReLU + BN + 4x4 max-pool
#               + fc1 partial sums accumulated across row tiles.
# Grid = (batch, row_tiles); one step = one 28-conv-row slab of one image.
# --------------------------------------------------------------------------- #
def _fused_forward_kernel(patches_ref, wconv_ref, scale_ref, shift_ref,
                          wfc_ref, bfc_ref, o_ref, acc_ref, *, wo):
    t = pl.program_id(1)

    @pl.when(t == 0)
    def _init():
        acc_ref[...] = jnp.zeros_like(acc_ref)

    # 7x7 'valid' conv (+ folded bias) as one MXU matmul: (rows, K) @ (K, 128)
    x = patches_ref[...]                                        # (1568, 160) bf16
    y = jnp.dot(x, wconv_ref[...], preferred_element_type=jnp.float32)

    # ReLU BEFORE BatchNorm(eval) -- matches Classifier_v16.forward order.
    y = jnp.maximum(y, 0.0) * scale_ref[...] + shift_ref[...]   # (1568, 128) f32

    rows, cout = y.shape
    hq = rows // (4 * wo)            # pooled-h rows in this tile (7)
    pwn = wo // 4                    # pooled-w cols (14)

    # pool(pool(.)) == disjoint 4x4 max pool; raster-order rows => two
    # sublane-only reductions (no lane movement).
    a = jnp.max(y.reshape(hq, 4, wo, cout), axis=1)             # pool over h -> (7, 56, 128)
    pooled = jnp.max(a.reshape(hq * pwn, 4, cout), axis=1)      # pool over w -> (98, 128)

    # fc1 partial sums: reduce the pooled rows (sublane axis) first, then a
    # single 128-lane cross-lane reduce per output.
    nout = bfc_ref.shape[1]
    parts = []
    for n in range(nout):
        pn = pooled * wfc_ref[n, 0].astype(jnp.float32)         # (98, 128) f32
        s = jnp.sum(pn, axis=0, keepdims=True)                  # (1, 128)
        parts.append(jnp.sum(s, axis=1, keepdims=True))         # (1, 1)
    acc_ref[...] += jnp.concatenate(parts, axis=1)              # (1, nout)

    @pl.when(t == pl.num_programs(1) - 1)
    def _finalize():
        o_ref[...] = acc_ref[...] + bfc_ref[...]


# --------------------------------------------------------------------------- #
# Wrapper: lean layout-only host glue (single bf16 slice+concat fusion) and
# the pallas_call with a (batch, row_tile) grid.
# --------------------------------------------------------------------------- #
def classifier_v16_forward(x_nchw, params):
    """x_nchw: (B, 3, 62, 62) f32 -> (B, 2) logits (fc1 = 128*14*14 inputs)."""
    w_conv = params["conv_w"]            # (128, 3, 7, 7) torch layout
    b_conv = params["conv_b"]            # (128,)
    gamma, beta = params["bn_gamma"], params["bn_beta"]
    mean, var = params["bn_mean"], params["bn_var"]
    w_fc, b_fc = params["fc1_w"], params["fc1_b"]   # (2, 25088), (2,)

    bsz, cin, h, wd = x_nchw.shape
    cout, _, kk, _ = w_conv.shape                    # 128, 7
    ho, wo = h - kk + 1, wd - kk + 1                 # 56 x 56
    assert ho % 4 == 0 and wo % 4 == 0
    ph, pw = ho // 4, wo // 4                        # 14 x 14 after pool(pool)
    npool, nout = ph * pw, w_fc.shape[0]
    assert cout * npool == w_fc.shape[1]
    kdim = kk * kk * cin                             # 147
    kpad = 160                                       # 147 feats + 1 bias col + 12 zeros

    r_tiles = 2                                      # 28 conv rows per tile (also v5e-friendly)
    assert ho % (4 * r_tiles) == 0
    tile_rows = (ho // r_tiles) * wo                 # 1568
    tile_pool = npool // r_tiles                     # 98

    # --- patches: bf16-early, raster row order, bias column + pad fused into
    #     the single concat (no f32 intermediates, no 6-D transpose pass). ----
    xh = jnp.transpose(x_nchw, (0, 2, 3, 1)).astype(jnp.bfloat16)   # (B, H, W, C)
    cols = [xh[:, i:i + ho, j:j + wo, :].reshape(bsz, ho * wo, cin)
            for i in range(kk) for j in range(kk)]                  # (kh, kw, c) order
    cols.append(jnp.ones((bsz, ho * wo, 1), jnp.bfloat16))          # bias column (K = kdim)
    cols.append(jnp.zeros((bsz, ho * wo, kpad - kdim - 1), jnp.bfloat16))
    patches = jnp.concatenate(cols, axis=-1)                        # (B, 3136, 160) bf16

    # --- conv weight: (Cout,Cin,kh,kw) -> (kh,kw,Cin,Cout) + bias row --------
    wmat = jnp.transpose(w_conv, (2, 3, 1, 0)).reshape(kdim, cout)
    wmat = jnp.concatenate(
        [wmat, b_conv.reshape(1, cout),
         jnp.zeros((kpad - kdim - 1, cout), wmat.dtype)], axis=0).astype(jnp.bfloat16)

    # --- BatchNorm (eval) as scale/shift, applied AFTER the ReLU -------------
    eps = 1e-5
    inv_std = 1.0 / jnp.sqrt(var + eps)
    scale = (gamma * inv_std).reshape(1, cout).astype(jnp.float32)
    shift = (beta - mean * gamma * inv_std).reshape(1, cout).astype(jnp.float32)

    # --- fc1 weight permuted to the kernel's pooled (tile, p_local, c) layout
    # torch flatten index = c*npool + p  ->  wfc[n, t, p_local, c]
    wfc_k = w_fc.reshape(nout, cout, npool).transpose(0, 2, 1)       # (nout, npool, cout)
    wfc_k = wfc_k.reshape(nout, r_tiles, tile_pool, cout).astype(jnp.bfloat16)
    bfc_k = b_fc.reshape(1, nout).astype(jnp.float32)

    kern = functools.partial(_fused_forward_kernel, wo=wo)
    out = pl.pallas_call(
        kern,
        out_shape=jax.ShapeDtypeStruct((bsz, 1, nout), jnp.float32),
        grid_spec=pltpu.PrefetchScalarGridSpec(
            num_scalar_prefetch=0,
            grid=(bsz, r_tiles),
            in_specs=[
                pl.BlockSpec((None, tile_rows, kpad), lambda b, t: (b, t, 0)),        # patches tile
                pl.BlockSpec((kpad, cout), lambda b, t: (0, 0)),                      # conv W + bias row
                pl.BlockSpec((1, cout), lambda b, t: (0, 0)),                         # bn scale
                pl.BlockSpec((1, cout), lambda b, t: (0, 0)),                         # bn shift
                pl.BlockSpec((nout, 1, tile_pool, cout), lambda b, t: (0, t, 0, 0)),  # fc1 W tile
                pl.BlockSpec((1, nout), lambda b, t: (0, 0)),                         # fc1 bias
            ],
            out_specs=pl.BlockSpec((None, 1, nout), lambda b, t: (b, 0, 0)),
            scratch_shapes=[pltpu.VMEM((1, nout), jnp.float32)],                      # fc1 accumulator
        ),
        compiler_params=pltpu.CompilerParams(
            dimension_semantics=("parallel", "arbitrary"),   # batch across TCs, row tiles pipelined
            vmem_limit_bytes=32 * 1024 * 1024,
        ),
    )(patches, wmat, scale, shift, wfc_k, bfc_k)
    return out.reshape(bsz, nout)


# --------------------------------------------------------------------------- #
# Parameters (deterministic synthetic init, shapes from Classifier_v16.__init__)
# fc2 / batchnorm2 / dropouts are defined in __init__ but unused by forward.
# --------------------------------------------------------------------------- #
def init_params(key):
    keys = jax.random.split(key, 8)
    cin, cout, kk = 3, 128, 7
    bound_c = 1.0 / jnp.sqrt(cin * kk * kk * 1.0)
    conv_w = jax.random.uniform(keys[0], (cout, cin, kk, kk), jnp.float32,
                                -bound_c, bound_c)
    conv_b = jax.random.uniform(keys[1], (cout,), jnp.float32, -bound_c, bound_c)
    bn_gamma = 1.0 + 0.1 * jax.random.normal(keys[2], (cout,), jnp.float32)
    bn_beta = 0.1 * jax.random.normal(keys[3], (cout,), jnp.float32)
    bn_mean = 0.1 * jax.random.normal(keys[4], (cout,), jnp.float32)
    bn_var = 1.0 + 0.1 * jax.random.uniform(keys[5], (cout,), jnp.float32)
    fin = cout * 14 * 14
    bound_f = 1.0 / jnp.sqrt(float(fin))
    fc1_w = jax.random.uniform(keys[6], (2, fin), jnp.float32, -bound_f, bound_f)
    fc1_b = jax.random.uniform(keys[7], (2,), jnp.float32, -bound_f, bound_f)
    return dict(conv_w=conv_w, conv_b=conv_b, bn_gamma=bn_gamma, bn_beta=bn_beta,
                bn_mean=bn_mean, bn_var=bn_var, fc1_w=fc1_w, fc1_b=fc1_b)


if __name__ == "__main__":
    key = jax.random.PRNGKey(0)
    pkey, xkey = jax.random.split(key)
    params = init_params(pkey)
    # fc1 expects 128*14*14 features => 62x62 input (7x7 valid conv -> 56,
    # pool(pool(.)) -> 14).  Batch kept small (2).
    x = jax.random.normal(xkey, (2, 3, 62, 62), jnp.float32)

    fwd = jax.jit(lambda inp: classifier_v16_forward(inp, params))
    out = jax.block_until_ready(fwd(x))
    assert out.shape == (2, 2) and out.dtype == jnp.float32
    assert bool(jnp.all(jnp.isfinite(out)))
    print("KERNEL_OK")
</pallas_src>

<mosaic_0001>
module attributes {stable_mosaic.version = 11 : i64} {
  func.func @_fused_forward_kernel(%arg0: i32, %arg1: i32, %arg2: memref<1x1568x160xbf16, #tpu.memory_space<vmem>>, %arg3: memref<160x128xbf16, #tpu.memory_space<vmem>>, %arg4: memref<1x128xf32, #tpu.memory_space<vmem>>, %arg5: memref<1x128xf32, #tpu.memory_space<vmem>>, %arg6: memref<2x1x98x128xbf16, #tpu.memory_space<vmem>>, %arg7: memref<1x2xf32, #tpu.memory_space<vmem>>, %arg8: memref<1x1x2xf32, #tpu.memory_space<vmem>>, %arg9: memref<1x2xf32, #tpu.memory_space<vmem>>) attributes {dimension_semantics = [#tpu.dimension_semantics<parallel>, #tpu.dimension_semantics<arbitrary>], iteration_bounds = array<i64: 2, 2>, scalar_prefetch = 0 : i64, scratch_operands = 1 : i64, tpu.core_type = #tpu.core_type<tc>, window_params = [{transform_indices = @transform_0, window_bounds = array<i64: 1, 1568, 160>}, {pipeline_mode = #tpu.pipeline_mode<synchronous>, transform_indices = @transform_1, window_bounds = array<i64: 160, 128>}, {pipeline_mode = #tpu.pipeline_mode<synchronous>, transform_indices = @transform_2, window_bounds = array<i64: 1, 128>}, {pipeline_mode = #tpu.pipeline_mode<synchronous>, transform_indices = @transform_3, window_bounds = array<i64: 1, 128>}, {transform_indices = @transform_4, window_bounds = array<i64: 2, 1, 98, 128>}, {pipeline_mode = #tpu.pipeline_mode<synchronous>, transform_indices = @transform_5, window_bounds = array<i64: 1, 2>}, {transform_indices = @transform_6, window_bounds = array<i64: 1, 1, 2>}]} {
    %c0_i32 = arith.constant 0 : i32
    %0 = arith.cmpi eq, %arg1, %c0_i32 : i32
    %1 = arith.extui %0 : i1 to i32
    %c0_i32_0 = arith.constant 0 : i32
    %2 = arith.cmpi ne, %1, %c0_i32_0 : i32
    scf.if %2 {
      %cst_28 = arith.constant 0.000000e+00 : f32
      %42 = vector.broadcast %cst_28 : f32 to vector<1x2xf32>
      %c0_29 = arith.constant 0 : index
      %c0_30 = arith.constant 0 : index
      %43 = vector.load %arg9[%c0_29, %c0_30] : memref<1x2xf32, #tpu.memory_space<vmem>>, vector<1x2xf32>
      tpu.vector_store %arg9[%c0_29, %c0_30], %42 {strides = array<i32>} : memref<1x2xf32, #tpu.memory_space<vmem>>, vector<1x2xf32>,
    } else {
    }
    %c0 = arith.constant 0 : index
    %c0_1 = arith.constant 0 : index
    %c0_2 = arith.constant 0 : index
    %3 = vector.load %arg2[%c0, %c0_1, %c0_2] : memref<1x1568x160xbf16, #tpu.memory_space<vmem>>, vector<1x1568x160xbf16>
    %4 = vector.shape_cast %3 : vector<1x1568x160xbf16> to vector<1568x160xbf16>
    %c0_3 = arith.constant 0 : index
    %c0_4 = arith.constant 0 : index
    %5 = vector.load %arg3[%c0_3, %c0_4] : memref<160x128xbf16, #tpu.memory_space<vmem>>, vector<160x128xbf16>
    %cst = arith.constant dense<0.000000e+00> : vector<1568x128xf32>
    %6 = tpu.matmul %4, %5, %cst {dimension_numbers = #tpu.dot_dimension_numbers<[1], [0], [0], [1], [0, 0, 1, 1], [], []>} : vector<1568x160xbf16>, vector<160x128xbf16>, vector<1568x128xf32> -> vector<1568x128xf32>
    %cst_5 = arith.constant 0.000000e+00 : f32
    %7 = vector.broadcast %cst_5 : f32 to vector<1568x128xf32>
    %8 = arith.maximumf %6, %7 : vector<1568x128xf32>
    %c0_6 = arith.constant 0 : index
    %c0_7 = arith.constant 0 : index
    %9 = vector.load %arg4[%c0_6, %c0_7] : memref<1x128xf32, #tpu.memory_space<vmem>>, vector<1x128xf32>
    %10 = vector.broadcast %9 : vector<1x128xf32> to vector<1568x128xf32>
    %11 = arith.mulf %8, %10 : vector<1568x128xf32>
    %c0_8 = arith.constant 0 : index
    %c0_9 = arith.constant 0 : index
    %12 = vector.load %arg5[%c0_8, %c0_9] : memref<1x128xf32, #tpu.memory_space<vmem>>, vector<1x128xf32>
    %13 = vector.broadcast %12 : vector<1x128xf32> to vector<1568x128xf32>
    %14 = arith.addf %11, %13 : vector<1568x128xf32>
    %15 = vector.shape_cast %14 : vector<1568x128xf32> to vector<7x4x56x128xf32>
    %cst_10 = arith.constant dense<0xFF800000> : vector<7x56x128xf32>
    %16 = vector.multi_reduction <maximumf>, %15, %cst_10 [1] : vector<7x4x56x128xf32> to vector<7x56x128xf32>
    %17 = vector.shape_cast %16 : vector<7x56x128xf32> to vector<98x4x128xf32>
    %cst_11 = arith.constant dense<0xFF800000> : vector<98x128xf32>
    %18 = vector.multi_reduction <maximumf>, %17, %cst_11 [1] : vector<98x4x128xf32> to vector<98x128xf32>
    %c0_12 = arith.constant 0 : index
    %c0_13 = arith.constant 0 : index
    %c0_14 = arith.constant 0 : index
    %c0_15 = arith.constant 0 : index
    %19 = vector.load %arg6[%c0_12, %c0_13, %c0_14, %c0_15] : memref<2x1x98x128xbf16, #tpu.memory_space<vmem>>, vector<1x1x98x128xbf16>
    %20 = vector.shape_cast %19 : vector<1x1x98x128xbf16> to vector<98x128xbf16>
    %21 = arith.extf %20 : vector<98x128xbf16> to vector<98x128xf32>
    %22 = arith.mulf %18, %21 : vector<98x128xf32>
    %cst_16 = arith.constant dense<0.000000e+00> : vector<128xf32>
    %23 = vector.multi_reduction <add>, %22, %cst_16 [0] : vector<98x128xf32> to vector<128xf32>
    %24 = vector.shape_cast %23 : vector<128xf32> to vector<1x128xf32>
    %cst_17 = arith.constant dense<0.000000e+00> : vector<1xf32>
    %25 = vector.multi_reduction <add>, %24, %cst_17 [1] : vector<1x128xf32> to vector<1xf32>
    %26 = vector.shape_cast %25 : vector<1xf32> to vector<1x1xf32>
    %c1 = arith.constant 1 : index
    %c0_18 = arith.constant 0 : index
    %c0_19 = arith.constant 0 : index
    %c0_20 = arith.constant 0 : index
    %27 = vector.load %arg6[%c1, %c0_18, %c0_19, %c0_20] : memref<2x1x98x128xbf16, #tpu.memory_space<vmem>>, vector<1x1x98x128xbf16>
    %28 = vector.shape_cast %27 : vector<1x1x98x128xbf16> to vector<98x128xbf16>
    %29 = arith.extf %28 : vector<98x128xbf16> to vector<98x128xf32>
    %30 = arith.mulf %18, %29 : vector<98x128xf32>
    %cst_21 = arith.constant dense<0.000000e+00> : vector<128xf32>
    %31 = vector.multi_reduction <add>, %30, %cst_21 [0] : vector<98x128xf32> to vector<128xf32>
    %32 = vector.shape_cast %31 : vector<128xf32> to vector<1x128xf32>
    %cst_22 = arith.constant dense<0.000000e+00> : vector<1xf32>
    %33 = vector.multi_reduction <add>, %32, %cst_22 [1] : vector<1x128xf32> to vector<1xf32>
    %34 = vector.shape_cast %33 : vector<1xf32> to vector<1x1xf32>
    %c0_23 = arith.constant 0 : index
    %c0_24 = arith.constant 0 : index
    %35 = vector.load %arg9[%c0_23, %c0_24] : memref<1x2xf32, #tpu.memory_space<vmem>>, vector<1x2xf32>
    %36 = tpu.concatenate %26, %34 in 1 : vector<1x1xf32>, vector<1x1xf32> -> vector<1x2xf32>
    %37 = arith.addf %35, %36 : vector<1x2xf32>
    %c0_25 = arith.constant 0 : index
    %c0_26 = arith.constant 0 : index
    %38 = vector.load %arg9[%c0_25, %c0_26] : memref<1x2xf32, #tpu.memory_space<vmem>>, vector<1x2xf32>
    tpu.vector_store %arg9[%c0_25, %c0_26], %37 {strides = array<i32>} : memref<1x2xf32, #tpu.memory_space<vmem>>, vector<1x2xf32>,
    %c1_i32 = arith.constant 1 : i32
    %39 = arith.cmpi eq, %arg1, %c1_i32 : i32
    %40 = arith.extui %39 : i1 to i32
    %c0_i32_27 = arith.constant 0 : i32
    %41 = arith.cmpi ne, %40, %c0_i32_27 : i32
    scf.if %41 {
      %c0_28 = arith.constant 0 : index
      %c0_29 = arith.constant 0 : index
      %42 = vector.load %arg9[%c0_28, %c0_29] : memref<1x2xf32, #tpu.memory_space<vmem>>, vector<1x2xf32>
      %c0_30 = arith.constant 0 : index
      %c0_31 = arith.constant 0 : index
      %43 = vector.load %arg7[%c0_30, %c0_31] : memref<1x2xf32, #tpu.memory_space<vmem>>, vector<1x2xf32>
      %44 = arith.addf %42, %43 : vector<1x2xf32>
      %c0_32 = arith.constant 0 : index
      %c0_33 = arith.constant 0 : index
      %c0_34 = arith.constant 0 : index
      %45 = vector.load %arg8[%c0_32, %c0_33, %c0_34] : memref<1x1x2xf32, #tpu.memory_space<vmem>>, vector<1x1x2xf32>
      %46 = vector.shape_cast %45 : vector<1x1x2xf32> to vector<1x2xf32>
      %47 = vector.shape_cast %44 : vector<1x2xf32> to vector<1x1x2xf32>
      tpu.vector_store %arg8[%c0_32, %c0_33, %c0_34], %47 {strides = array<i32>} : memref<1x1x2xf32, #tpu.memory_space<vmem>>, vector<1x1x2xf32>,
    } else {
    }
    return
  }
  func.func @transform_0(%arg0: i32, %arg1: i32) -> (i32, i32, i32) {
    %c0_i32 = arith.constant 0 : i32
    %c0_i32_0 = arith.constant 0 : i32
    return %arg0, %arg1, %c0_i32 : i32, i32, i32
  }
  func.func @transform_1(%arg0: i32, %arg1: i32) -> (i32, i32) {
    %c0_i32 = arith.constant 0 : i32
    %c0_i32_0 = arith.constant 0 : i32
    %c0_i32_1 = arith.constant 0 : i32
    return %c0_i32, %c0_i32_0 : i32, i32
  }
  func.func @transform_2(%arg0: i32, %arg1: i32) -> (i32, i32) {
    %c0_i32 = arith.constant 0 : i32
    %c0_i32_0 = arith.constant 0 : i32
    %c0_i32_1 = arith.constant 0 : i32
    return %c0_i32, %c0_i32_0 : i32, i32
  }
  func.func @transform_3(%arg0: i32, %arg1: i32) -> (i32, i32) {
    %c0_i32 = arith.constant 0 : i32
    %c0_i32_0 = arith.constant 0 : i32
    %c0_i32_1 = arith.constant 0 : i32
    return %c0_i32, %c0_i32_0 : i32, i32
  }
  func.func @transform_4(%arg0: i32, %arg1: i32) -> (i32, i32, i32, i32) {
    %c0_i32 = arith.constant 0 : i32
    %c0_i32_0 = arith.constant 0 : i32
    %c0_i32_1 = arith.constant 0 : i32
    %c0_i32_2 = arith.constant 0 : i32
    return %c0_i32, %arg1, %c0_i32_0, %c0_i32_1 : i32, i32, i32, i32
  }
  func.func @transform_5(%arg0: i32, %arg1: i32) -> (i32, i32) {
    %c0_i32 = arith.constant 0 : i32
    %c0_i32_0 = arith.constant 0 : i32
    %c0_i32_1 = arith.constant 0 : i32
    return %c0_i32, %c0_i32_0 : i32, i32
  }
  func.func @transform_6(%arg0: i32, %arg1: i32) -> (i32, i32, i32) {
    %c0_i32 = arith.constant 0 : i32
    %c0_i32_0 = arith.constant 0 : i32
    %c0_i32_1 = arith.constant 0 : i32
    return %arg0, %c0_i32, %c0_i32_0 : i32, i32, i32
  }
}

</mosaic_0001>

<bundles_post_ra>
// kernel: _lambda_.1
= control target key start
LH: loop header
LB: loop body
LE: loop exit
PB: predicated region body
PF: predicated region fallthrough
CT: control target
= control target key end

     0   :  { %s9718_s0 = inlined_call_operand.vmem [shape: bf16[2,3136,160], index: 0, kind: input, shape index: {}]   ;;  %s9719_s1 = inlined_call_operand.vmem [shape: bf16[160,128], index: 1, kind: input, shape index: {}]   ;;  %s9720_s2 = inlined_call_operand.vmem [shape: f32[1,128], index: 2, kind: input, shape index: {}]   ;;  %s9721_s3 = inlined_call_operand.vmem [shape: f32[1,128], index: 3, kind: input, shape index: {}]   ;;  %s9722_s4 = inlined_call_operand.vmem [shape: bf16[2,2,98,128], index: 4, kind: input, shape index: {}]   ;;  %s9723_s5 = inlined_call_operand.vmem [shape: f32[1,2], index: 5, kind: input, shape index: {}]   ;;  %s9724_s6 = inlined_call_operand.hbm [shape: f32[2,1,2], index: 6, kind: output, shape index: {}]  }
   0x1   :  { %9761 = sst [smem:[#allocation86_spill]] %s9722_s4 }
   0x2   :  { %11 = vsyncpa [#allocation5], 0 }
   0x3   :  { %13 = vsyncpa [#allocation5 + $0x1], 0  ;;  %s6644_s21 = smov 0   ;;  %s6646_s22 = smov 0  }
   0x4   :  { %s6648_s23 = smov 0   ;;  %s6650_s24 = smov 0  }
   0x5   :  { %s6652_s25 = smov 0   ;;  %s6654_s26 = smov 0  }
   0x6   :  { %s6656_s27 = smov 0   ;;  %s6658_s28 = smov 0  }
   0x7   :  { %s6660_s29 = smov 0   ;;  %s6662_s30 = smov 0  }
   0x8 LB: > { %9762 = sst [smem:[#allocation7_spill]] %s6596_s28  ;;  %s5680_s7 = sadd.s32 4294967295, %s6604_s30   ;;  %s6604_s30 = sphi %s6662_s30, %s19_s30   ;;  %s6600_s29 = sphi %s6660_s29, %s10133_s29   ;;  %s6596_s28 = sphi %s6658_s28, %s10132_s28   ;;  %s6592_s27 = sphi %s6656_s27, %s10131_s27   ;;  %s6588_s26 = sphi %s6654_s26, %s10130_s26   ;;  %s6584_s25 = sphi %s6652_s25, %s10138_s25   ;;  %s6580_s24 = sphi %s6650_s24, %s10137_s24   ;;  %s6576_s23 = sphi %s6648_s23, %s10136_s23   ;;  %s6572_s22 = sphi %s6646_s22, %s10135_s22   ;;  %s6568_s21 = sphi %s6644_s21, %s10134_s21  }
   0x9   : > { %9763 = sst [smem:[#allocation8_spill]] %s6600_s29  ;;  %s5681_s8 = sadd.s32 4294967294, %s6604_s30  }
   0xa   : > { %s28_s9 = sadd.s32 1, %s6596_s28  ;;  %s31_s10 = sadd.s32 1, %s6600_s29 }
   0xb   : > { %p29_p0 = scmp.ge.s32.totalorder %s28_s9, 2  ;;  %s129_s11 = sadd.s32 1, %s6584_s25 }
   0xc   : > { %p136_p1 = scmp.ne.s32.totalorder %s6584_s25, %s6580_s24  ;;  %p137_p2 = scmp.eq.s32.totalorder %s6604_s30, 0 }
   0xd   : > { %s10140_s9 = smov (%p29_p0, %s28_s9), 0  ;;  %s10142_s10 = smov (!%p29_p0, %s31_s10), %s6600_s29 }
   0xe   : > { %9764 = sst [smem:[#allocation9_spill]] %s10140_s9  ;;  %s126_s12 = ssub.s32 %s6596_s28, %s10140_s9 }
   0xf   : > { %p6707_p3 = por %p137_p2, %p136_p1  ;;  %p33_p4 = scmp.ge.s32.totalorder %s10142_s10, 2 }
  0x10   : > { %p127_p5 = scmp.eq.s32.totalorder %s126_s12, 0  ;;  %s176_s14 = sadd.s32 1, %s6576_s23 }
  0x11   : > { %p186_p6 = scmp.ne.s32.totalorder %s6576_s23, %s6572_s22  ;;  %s10144_s10 = smov (%p33_p4, %s10142_s10), 0 }
  0x12   : > { %9766 = sst [smem:[#allocation10_spill]] %s10144_s10  ;;  %s173_s16 = ssub.s32 %s6600_s29, %s10144_s10 }
  0x13   : > { %s6717_s15 = scalar_select %p127_p5, %s6584_s25, %s129_s11  }
  0x14   : > { %p187_p7 = scmp.eq.s32.totalorder %s5680_s7, 3  ;;  %p174_p8 = scmp.eq.s32.totalorder %s173_s16, 0 }
  0x15   : > { %p192_p9 = scmp.ne.s32.totalorder %s6572_s22, %s6568_s21  ;;  %p193_p11 = scmp.eq.s32.totalorder %s5681_s8, 3 }
  0x16   : > { %p6723_p10 = por %p187_p7, %p186_p6  ;;  %p5683_p13 = scmp.ge.s32.totalorder %s6604_s30, 4 }
  0x17   : > { %s6728_s18 = scalar_select %p174_p8, %s6576_s23, %s176_s14  }
  0x18   : > { %p6730_p12 = por %p193_p11, %p192_p9  ;;  %221 = sbr.rel (%p5683_p13) target bundleno = 45 (0x2d), region = 32 }
  0x1d   : > { %238 = sbr.rel (!%p6707_p3) target bundleno = 45 (0x2d), region = 40  ;;  %s240_s20 = sand.u32 (%p6707_p3), 1, %s6584_s25  }
  0x1e   : > { %s6087_s7 = smul.u32 (%p6707_p3), 52, %s6596_s28  ;;  %s9769_s4 = sld [smem:[#allocation86_spill]] (%p6707_p3) }
  0x1f   : > { %s6086_s11 = smul.u32 (%p6707_p3), 104, %s240_s20 }
  0x21   : > { %s242_s14 = scalar_lea.vmem (%p6707_p3), [#allocation3], %s6086_s11 }
  0x24   : > { %s245_s8 = scalar_lea.vmem %s9769_s4, %s6087_s7 }
  0x25   : > { %v262_v0 = vld [vmem:[%s245_s8] sm:$0xff]   ;;  %v266_v1 = vld [vmem:[%s245_s8 + $0x8] sm:$0xff]   ;;  %v270_v2 = vld [vmem:[%s245_s8 + $0x10] sm:$0xff]  }
  0x26   : > { %263 = vst [vmem:[%s242_s14] sm:$0xff] %v262_v0   ;;  %267 = vst [vmem:[%s242_s14 + $0x8] sm:$0xff] %v266_v1   ;;  %v274_v3 = vld [vmem:[%s245_s8 + $0x18] sm:$0xff]   ;;  %v278_v4 = vld [vmem:[%s245_s8 + $0x20] sm:$0xff]  }
  0x27   : > { %271 = vst [vmem:[%s242_s14 + $0x10] sm:$0xff] %v270_v2   ;;  %v282_v5 = vld [vmem:[%s245_s8 + $0x28] sm:$0xff]   ;;  %275 = vst [vmem:[%s242_s14 + $0x18] sm:$0xff] %v274_v3   ;;  %v286_v6 = vld [vmem:[%s245_s8 + $0x30] sm:$0xf] }
  0x28   : > { %279 = vst [vmem:[%s242_s14 + $0x20] sm:$0xff] %v278_v4   ;;  %283 = vst [vmem:[%s242_s14 + $0x28] sm:$0xff] %v282_v5   ;;  %v288_v7 = vld [vmem:[%s245_s8 + $0x68] sm:$0xff]   ;;  %v292_v8 = vld [vmem:[%s245_s8 + $0x70] sm:$0xff]  }
  0x29   : > { %287 = vst [vmem:[%s242_s14 + $0x30] sm:$0xf] %v286_v6  ;;  %289 = vst [vmem:[%s242_s14 + $0x34] sm:$0xff] %v288_v7   ;;  %v296_v9 = vld [vmem:[%s245_s8 + $0x78] sm:$0xff]   ;;  %v300_v10 = vld [vmem:[%s245_s8 + $0x80] sm:$0xff]  }
  0x2a   : > { %293 = vst [vmem:[%s242_s14 + $0x3c] sm:$0xff] %v292_v8   ;;  %v304_v11 = vld [vmem:[%s245_s8 + $0x88] sm:$0xff]   ;;  %297 = vst [vmem:[%s242_s14 + $0x44] sm:$0xff] %v296_v9   ;;  %v308_v12 = vld [vmem:[%s245_s8 + $0x90] sm:$0xff]  }
  0x2b   : > { %301 = vst [vmem:[%s242_s14 + $0x4c] sm:$0xff] %v300_v10   ;;  %305 = vst [vmem:[%s242_s14 + $0x54] sm:$0xff] %v304_v11   ;;  %v312_v13 = vld [vmem:[%s245_s8 + $0x98] sm:$0xf] }
  0x2c   : > { %309 = vst [vmem:[%s242_s14 + $0x5c] sm:$0xff] %v308_v12   ;;  %313 = vst [vmem:[%s242_s14 + $0x64] sm:$0xf] %v312_v13 }
  0x2d PF: > { %p5685_p0 = scmp.ge.s32.totalorder %s6604_s30, 1  ;;  %p388_p1 = scmp.lt.s32.totalorder %s6604_s30, 5 }
  0x2f   : > { %p389_p2 = pnand %p5685_p0, %p388_p1 }
  0x31   : > { %392 = sbr.rel (%p389_p2) target bundleno = 1110 (0x456), region = 81 }
  0x36   : > { %s395_s13 = sand.u32 1, %s6580_s24   ;;  %s431_s20 = sand.u32 1, %s6572_s22  }
  0x37   : > { %s6088_s7 = smul.u32 104, %s395_s13  ;;  %p434_p3 = scmp.lt.s32.totalorder %s6592_s27, 1 }
  0x38   : > { %s433_s11 = smul.u32 196, %s6588_s26  ;;  %s6758_s24 = scalar_lea.vmem [#allocation4], %s431_s20 }
  0x39   : > { %s435_s12 = scalar_select %p434_p3, %s6592_s27, 1 }
  0x3a   : > { %p436_p4 = scmp.lt.s32.totalorder %s433_s11, 391  ;;  %s6754_s28 = scalar_lea.vmem [#allocation3], %s6088_s7 }
  0x3b   : > { %s6089_s16 = smul.u32 784, %s435_s12  ;;  %p5688_p5 = scmp.ne.s32.totalorder %s6588_s26, 0 }
  0x3c   : > { %s10146_s11 = smov (!%p436_p4, %s433_s11), 391 }
  0x3d   : > { %s5686_s8 = sshll.u32 %s10146_s11, 1  ;;  %448 = sbr.rel (%p5688_p5) target bundleno = 68 (0x44), region = 89 }
  0x3e   : > { %s440_s14 = sadd.s32 %s6089_s16, %s5686_s8 }
  0x3f   : > { %s5687_s4 = sshll.u32 %s440_s14, 2 }
  0x40   : > { %s6752_s29 = scalar_lea.vmem %s9718_s0, %s5687_s4 }
  0x42   : > { %vm449_vm0 = vcmask 8192   ;;  %v6606_v14 = vmov 0.0  }
  0x43   : > { %450 = vst.msk [vmem:[#allocation2] sm:$0x1] %vm449_vm0, %v6606_v14 }
  0x44 PF: > { %v6179_v15 = vld [vmem:[%s9719_s1 + $0x38] sm:$0xff]   ;;  %v6607_v16 = vmov 0   ;;  %v6180_v17 = vld [vmem:[%s9719_s1 + $0x30] sm:$0xff]   ;;  %v6181_v18 = vld [vmem:[%s9719_s1 + $0x28] sm:$0xff]   ;;  %vm1609_vm1 = vcmask 261120   ;;  %vm3617_vm2 = vcmask 1043456  }
  0x45   : > { %1904 = vmatprep.subr.bf16.mxu0 %v6607_v16  ;;  %6066 = vmatprep.subr.bf16.mxu1 %v6607_v16  ;;  %v6182_v19 = vld [vmem:[%s9719_s1 + $0x20] sm:$0xff]   ;;  %v6194_v21 = vld [vmem:[%s6752_s29 + $0x314] ss:$8 sps:$4 sm:$0xff]   ;;  %v6185_v24 = vld [vmem:[%s9719_s1 + $0x8] sm:$0xff]   ;;  %vm4723_vm3 = vcmask 1041409   ;;  %vm4726_vm4 = vcmask 1042434  }
  0x46   : > { %1905 = vmatpush1.bf16.msra.mxu0 %v6179_v15  ;;  %6076 = vmatpush1.bf16.msra.mxu1 %v6179_v15  ;;  %v6191_v20 = vld [vmem:[%s6752_s29 + $0x4] ss:$8 sps:$4 sm:$0xff]   ;;  %v6183_v22 = vld [vmem:[%s9719_s1 + $0x18] sm:$0xff]   ;;  %v6184_v23 = vld [vmem:[%s9719_s1 + $0x10] sm:$0xff]   ;;  %vm4729_vm5 = vcmask 1043459   ;;  %vm4732_vm6 = vcmask 1044484  }
  0x47   : > { %1906 = vmatprep.subr.bf16.mxu0 %v6607_v16  ;;  %6067 = vmatprep.subr.bf16.mxu1 %v6607_v16  ;;  %v6186_v25 = vld [vmem:[%s9719_s1] sm:$0xff]   ;;  %v6187_v26 = vld [vmem:[%s9719_s1 + $0x48] sm:$0xff]   ;;  %v6192_v29 = vld [vmem:[%s6752_s29 + $0x310] ss:$8 sps:$4 sm:$0xff]   ;;  %vm4735_vm7 = vcmask 1045509   ;;  %vm4738_vm8 = vcmask 1046534  }
  0x48   : > { %5895 = vmatprep.mubr.msk.bf16.mxu0 %vm1609_vm1, %v6191_v20  ;;  %5944 = vmatprep.mubr.msk.bf16.mxu1 %vm1609_vm1, %v6194_v21  ;;  %v6188_v27 = vld [vmem:[%s9719_s1 + $0x40] sm:$0xff]   ;;  %v6195_v30 = vld [vmem:[%s6752_s29 + $0x14] ss:$8 sps:$4 sm:$0xff]   ;;  %v6199_v32 = vld [vmem:[%s6752_s29 + $0x10] ss:$8 sps:$4 sm:$0xff]   ;;  %vm4741_vm9 = vcmask 1047559  }
  0x49   : > { %v6189_v28 = vld [vmem:[%s6752_s29] ss:$8 sps:$4 sm:$0xff]   ;;  %v6197_v31 = vld [vmem:[%s6752_s29 + $0x324] ss:$8 sps:$4 sm:$0xff]   ;;  %v6203_v35 = vld [vmem:[%s6752_s29 + $0x334] ss:$8 sps:$4 sm:$0xff]  }
  0x4a   : > { %1907 = vmatpush1.bf16.msra.mxu0 %v6180_v17  ;;  %6077 = vmatpush1.bf16.msra.mxu1 %v6180_v17  ;;  %v6200_v33 = vld [vmem:[%s6752_s29 + $0x320] ss:$8 sps:$4 sm:$0xff]   ;;  %v6201_v34 = vld [vmem:[%s6752_s29 + $0x24] ss:$8 sps:$4 sm:$0xff]   ;;  %v6206_v37 = vld [vmem:[%s6752_s29 + $0x330] ss:$8 sps:$4 sm:$0xff]  }
  0x4b   : > { %1908 = vmatprep.subr.bf16.mxu0 %v6607_v16  ;;  %6068 = vmatprep.subr.bf16.mxu1 %v6607_v16  ;;  %v6205_v36 = vld [vmem:[%s6752_s29 + $0x20] ss:$8 sps:$4 sm:$0xff]   ;;  %v6207_v38 = vld [vmem:[%s6752_s29 + $0x34] ss:$8 sps:$4 sm:$0xff]   ;;  %v6209_v39 = vld [vmem:[%s6752_s29 + $0x344] ss:$8 sps:$4 sm:$0xff]  }
  0x4c   : > { %v6211_v40 = vld [vmem:[%s6752_s29 + $0x30] ss:$8 sps:$4 sm:$0xff]   ;;  %v6212_v41 = vld [vmem:[%s6752_s29 + $0x340] ss:$8 sps:$4 sm:$0xff]   ;;  %v6213_v42 = vld [vmem:[%s6752_s29 + $0x44] ss:$8 sps:$4 sm:$0xff]  }
  0x4d   : > { %v6215_v43 = vld [vmem:[%s6752_s29 + $0x354] ss:$8 sps:$4 sm:$0xff]   ;;  %v6217_v44 = vld [vmem:[%s6752_s29 + $0x40] ss:$8 sps:$4 sm:$0xff]   ;;  %v6218_v45 = vld [vmem:[%s6752_s29 + $0x350] ss:$8 sps:$4 sm:$0xff]  }
  0x4e   : > { %1909 = vmatpush1.bf16.msra.mxu0 %v6181_v18  ;;  %6078 = vmatpush1.bf16.msra.mxu1 %v6181_v18  ;;  %v6219_v46 = vld [vmem:[%s6752_s29 + $0x54] ss:$8 sps:$4 sm:$0xff]   ;;  %v6221_v47 = vld [vmem:[%s6752_s29 + $0x364] ss:$8 sps:$4 sm:$0xff]   ;;  %v6223_v48 = vld [vmem:[%s6752_s29 + $0x50] ss:$8 sps:$4 sm:$0xff]  }
  0x4f   : > { %1910 = vmatprep.subr.bf16.mxu0 %v6607_v16  ;;  %6069 = vmatprep.subr.bf16.mxu1 %v6607_v16  ;;  %v6224_v49 = vld [vmem:[%s6752_s29 + $0x360] ss:$8 sps:$4 sm:$0xff]   ;;  %v6225_v50 = vld [vmem:[%s6752_s29 + $0x64] ss:$8 sps:$4 sm:$0xff]   ;;  %v6227_v51 = vld [vmem:[%s6752_s29 + $0x374] ss:$8 sps:$4 sm:$0xff]  }
  0x50   : > { %v6229_v52 = vld [vmem:[%s6752_s29 + $0x60] ss:$8 sps:$4 sm:$0xff]   ;;  %v6230_v53 = vld [vmem:[%s6752_s29 + $0x370] ss:$8 sps:$4 sm:$0xff]   ;;  %v6231_v54 = vld [vmem:[%s6752_s29 + $0x74] ss:$8 sps:$4 sm:$0xff]  }
  0x51   : > { %v6233_v55 = vld [vmem:[%s6752_s29 + $0x384] ss:$8 sps:$4 sm:$0xff]   ;;  %v6235_v56 = vld [vmem:[%s6752_s29 + $0x70] ss:$8 sps:$4 sm:$0xff]   ;;  %v6236_v57 = vld [vmem:[%s6752_s29 + $0x380] ss:$8 sps:$4 sm:$0xff]  }
  0x52   : > { %1911 = vmatpush1.bf16.msra.mxu0 %v6182_v19  ;;  %6079 = vmatpush1.bf16.msra.mxu1 %v6182_v19  ;;  %v6237_v58 = vld [vmem:[%s6752_s29 + $0x84] ss:$8 sps:$4 sm:$0xff]   ;;  %v6239_v59 = vld [vmem:[%s6752_s29 + $0x394] ss:$8 sps:$4 sm:$0xff]   ;;  %v6241_v60 = vld [vmem:[%s6752_s29 + $0x80] ss:$8 sps:$4 sm:$0xff]  }
  0x53   : > { %1912 = vmatprep.subr.bf16.mxu0 %v6607_v16  ;;  %6070 = vmatprep.subr.bf16.mxu1 %v6607_v16  ;;  %v6242_v61 = vld [vmem:[%s6752_s29 + $0x390] ss:$8 sps:$4 sm:$0xff]   ;;  %v6243_v62 = vld [vmem:[%s6752_s29 + $0x94] ss:$8 sps:$4 sm:$0xff]   ;;  %v6245_v63 = vld [vmem:[%s6752_s29 + $0x3a4] ss:$8 sps:$4 sm:$0xff]  }
  0x54   : > { %v6247_v0 = vld [vmem:[%s6752_s29 + $0x90] ss:$8 sps:$4 sm:$0xff]   ;;  %v6248_v1 = vld [vmem:[%s6752_s29 + $0x3a0] ss:$8 sps:$4 sm:$0xff]   ;;  %v6249_v2 = vld [vmem:[%s6752_s29 + $0xa4] ss:$8 sps:$4 sm:$0xff]  }
  0x55   : > { %v6251_v3 = vld [vmem:[%s6752_s29 + $0x3b4] ss:$8 sps:$4 sm:$0xff]   ;;  %v6253_v4 = vld [vmem:[%s6752_s29 + $0xa0] ss:$8 sps:$4 sm:$0xff]   ;;  %v6254_v5 = vld [vmem:[%s6752_s29 + $0x3b0] ss:$8 sps:$4 sm:$0xff]  }
  0x56   : > { %1913 = vmatpush1.bf16.msra.mxu0 %v6183_v22  ;;  %6080 = vmatpush1.bf16.msra.mxu1 %v6183_v22  ;;  %v6255_v6 = vld [vmem:[%s6752_s29 + $0xb4] ss:$8 sps:$4 sm:$0xff]   ;;  %v6257_v7 = vld [vmem:[%s6752_s29 + $0x3c4] ss:$8 sps:$4 sm:$0xff]   ;;  %v6259_v8 = vld [vmem:[%s6752_s29 + $0xb0] ss:$8 sps:$4 sm:$0xff]  }
  0x57   : > { %1914 = vmatprep.subr.bf16.mxu0 %v6607_v16  ;;  %6071 = vmatprep.subr.bf16.mxu1 %v6607_v16  ;;  %v6260_v9 = vld [vmem:[%s6752_s29 + $0x3c0] ss:$8 sps:$4 sm:$0xff]   ;;  %v6261_v10 = vld [vmem:[%s6752_s29 + $0xc4] ss:$8 sps:$4 sm:$0xff]   ;;  %v6263_v11 = vld [vmem:[%s6752_s29 + $0x3d4] ss:$8 sps:$4 sm:$0xff]  }
  0x58   : > { %v6265_v12 = vld [vmem:[%s6752_s29 + $0xc0] ss:$8 sps:$4 sm:$0xff]   ;;  %v6266_v13 = vld [vmem:[%s6752_s29 + $0x3d0] ss:$8 sps:$4 sm:$0xff]   ;;  %v6267_v14 = vld [vmem:[%s6752_s29 + $0xd4] ss:$8 sps:$4 sm:$0xff]  }
  0x59   : > { %v6269_v15 = vld [vmem:[%s6752_s29 + $0x3e4] ss:$8 sps:$4 sm:$0xff]   ;;  %v6272_v17 = vld [vmem:[%s6752_s29 + $0x3e0] ss:$8 sps:$4 sm:$0xff]   ;;  %v6275_v19 = vld [vmem:[%s6752_s29 + $0x3f4] ss:$8 sps:$4 sm:$0xff]  }
  0x5a   : > { %1915 = vmatpush1.bf16.msra.mxu0 %v6184_v23  ;;  %6081 = vmatpush1.bf16.msra.mxu1 %v6184_v23  ;;  %v6273_v18 = vld [vmem:[%s6752_s29 + $0xe4] ss:$8 sps:$4 sm:$0xff]   ;;  %v6277_v20 = vld [vmem:[%s6752_s29 + $0xe0] ss:$8 sps:$4 sm:$0xff]   ;;  %v6278_v21 = vld [vmem:[%s6752_s29 + $0x3f0] ss:$8 sps:$4 sm:$0xff]  }
  0x5b   : > { %1916 = vmatprep.subr.bf16.mxu0 %v6607_v16  ;;  %6072 = vmatprep.subr.bf16.mxu1 %v6607_v16  ;;  %v6279_v22 = vld [vmem:[%s6752_s29 + $0xf4] ss:$8 sps:$4 sm:$0xff]   ;;  %v6281_v23 = vld [vmem:[%s6752_s29 + $0x404] ss:$8 sps:$4 sm:$0xff]   ;;  %vm4923_vm10 = vcmask 1041408   ;;  %vm4932_vm11 = vcmask 1040384  }
  0x5c   : > { %vm5561_vm12 = vcmask 7168   ;;  %vm5564_vm13 = vcmask 8192   ;;  %p6008_p6 = scmp.ne.s32.totalorder %s6588_s26, 1 }
  0x5e   : > { %1917 = vmatpush1.bf16.msra.mxu0 %v6185_v24  ;;  %6082 = vmatpush1.bf16.msra.mxu1 %v6185_v24  ;;  %v6283_v24 = vld [vmem:[%s6752_s29 + $0xf0] ss:$8 sps:$4 sm:$0xff]  }
  0x5f   : > { %1918 = vmatprep.subr.bf16.mxu0 %v6607_v16  ;;  %6073 = vmatprep.subr.bf16.mxu1 %v6607_v16 }
  0x62   : > { %1919 = vmatpush1.bf16.msra.mxu0 %v6186_v25  ;;  %6083 = vmatpush1.bf16.msra.mxu1 %v6186_v25  ;;  %v6284_v25 = vld [vmem:[%s6752_s29 + $0x400] ss:$8 sps:$4 sm:$0xff]  }
  0x63   : > { %1932 = vmatprep.subr.bf16.mxu0 %v6607_v16  ;;  %6074 = vmatprep.subr.bf16.mxu1 %v6607_v16 }
  0x66   : > { %1933 = vmatpush2.bf16.msra.mxu0 %v6187_v26  ;;  %6084 = vmatpush2.bf16.msra.mxu1 %v6187_v26  ;;  %v6285_v26 = vld [vmem:[%s6752_s29 + $0x104] ss:$8 sps:$4 sm:$0xff]  }
  0x67   : > { %1934 = vmatprep.subr.bf16.mxu0 %v6607_v16  ;;  %6075 = vmatprep.subr.bf16.mxu1 %v6607_v16  ;;  %v6271_v16 = vld [vmem:[%s6752_s29 + $0xd0] ss:$8 sps:$4 sm:$0xff]  }
  0x6a   : > { %1935 = vmatpush2.bf16.msra.mxu0 %v6188_v27  ;;  %6085 = vmatpush2.bf16.msra.mxu1 %v6188_v27  ;;  %v6287_v27 = vld [vmem:[%s6752_s29 + $0x414] ss:$8 sps:$4 sm:$0xff]  }
  0x6d   : > { %1937 = vmatmul.mubr.bf16.vlgmr.msra.gmra.mxu0 %v6189_v28  ;;  %2329 = vmatmul.mubr.bf16.vlgmr.msra.gmra.mxu1 %v6192_v29  ;;  %v6289_v28 = vld [vmem:[%s6752_s29 + $0x100] ss:$8 sps:$4 sm:$0xff]   ;;  %v6290_v29 = vld [vmem:[%s6752_s29 + $0x410] ss:$8 sps:$4 sm:$0xff]  }
  0x6e   : > { %5896 = vmatprep.mubr.msk.bf16.mxu0 %vm1609_vm1, %v6195_v30  ;;  %5945 = vmatprep.mubr.msk.bf16.mxu1 %vm1609_vm1, %v6197_v31  ;;  %v6291_v30 = vld [vmem:[%s6752_s29 + $0x114] ss:$8 sps:$4 sm:$0xff]   ;;  %v6293_v31 = vld [vmem:[%s6752_s29 + $0x424] ss:$8 sps:$4 sm:$0xff]  }
  0x75   : > { %1945 = vmatmul.mubr.bf16.gmra.mxu0 %v6199_v32  ;;  %2337 = vmatmul.mubr.bf16.gmra.mxu1 %v6200_v33  ;;  %v6295_v32 = vld [vmem:[%s6752_s29 + $0x110] ss:$8 sps:$4 sm:$0xff]   ;;  %v6296_v33 = vld [vmem:[%s6752_s29 + $0x420] ss:$8 sps:$4 sm:$0xff]  }
  0x76   : > { %5897 = vmatprep.mubr.msk.bf16.mxu0 %vm1609_vm1, %v6201_v34  ;;  %5946 = vmatprep.mubr.msk.bf16.mxu1 %vm1609_vm1, %v6203_v35  ;;  %v6297_v34 = vld [vmem:[%s6752_s29 + $0x124] ss:$8 sps:$4 sm:$0xff]   ;;  %v6299_v35 = vld [vmem:[%s6752_s29 + $0x434] ss:$8 sps:$4 sm:$0xff]  }
  0x7d   : > { %1953 = vmatmul.mubr.bf16.gmra.mxu0 %v6205_v36  ;;  %2345 = vmatmul.mubr.bf16.gmra.mxu1 %v6206_v37  ;;  %v6301_v36 = vld [vmem:[%s6752_s29 + $0x120] ss:$8 sps:$4 sm:$0xff]   ;;  %v6302_v37 = vld [vmem:[%s6752_s29 + $0x430] ss:$8 sps:$4 sm:$0xff]  }
  0x7e   : > { %5898 = vmatprep.mubr.msk.bf16.mxu0 %vm1609_vm1, %v6207_v38  ;;  %5947 = vmatprep.mubr.msk.bf16.mxu1 %vm1609_vm1, %v6209_v39  ;;  %v6303_v38 = vld [vmem:[%s6752_s29 + $0x134] ss:$8 sps:$4 sm:$0xff]   ;;  %v6305_v39 = vld [vmem:[%s6752_s29 + $0x444] ss:$8 sps:$4 sm:$0xff]  }
  0x85   : > { %1961 = vmatmul.mubr.bf16.gmra.mxu0 %v6211_v40  ;;  %2353 = vmatmul.mubr.bf16.gmra.mxu1 %v6212_v41  ;;  %v6307_v40 = vld [vmem:[%s6752_s29 + $0x130] ss:$8 sps:$4 sm:$0xff]   ;;  %v6308_v41 = vld [vmem:[%s6752_s29 + $0x440] ss:$8 sps:$4 sm:$0xff]  }
  0x86   : > { %5899 = vmatprep.mubr.msk.bf16.mxu0 %vm1609_vm1, %v6213_v42  ;;  %5948 = vmatprep.mubr.msk.bf16.mxu1 %vm1609_vm1, %v6215_v43  ;;  %v6309_v42 = vld [vmem:[%s6752_s29 + $0x144] ss:$8 sps:$4 sm:$0xff]   ;;  %v6311_v43 = vld [vmem:[%s6752_s29 + $0x454] ss:$8 sps:$4 sm:$0xff]  }
  0x8d   : > { %1969 = vmatmul.mubr.bf16.gmra.mxu0 %v6217_v44  ;;  %2361 = vmatmul.mubr.bf16.gmra.mxu1 %v6218_v45  ;;  %v6313_v44 = vld [vmem:[%s6752_s29 + $0x140] ss:$8 sps:$4 sm:$0xff]   ;;  %v6314_v45 = vld [vmem:[%s6752_s29 + $0x450] ss:$8 sps:$4 sm:$0xff]  }
  0x8e   : > { %5900 = vmatprep.mubr.msk.bf16.mxu0 %vm1609_vm1, %v6219_v46  ;;  %5949 = vmatprep.mubr.msk.bf16.mxu1 %vm1609_vm1, %v6221_v47  ;;  %v6315_v46 = vld [vmem:[%s6752_s29 + $0x154] ss:$8 sps:$4 sm:$0xff]   ;;  %v6317_v47 = vld [vmem:[%s6752_s29 + $0x464] ss:$8 sps:$4 sm:$0xff]  }
  0x95   : > { %1977 = vmatmul.mubr.bf16.gmra.mxu0 %v6223_v48  ;;  %2369 = vmatmul.mubr.bf16.gmra.mxu1 %v6224_v49  ;;  %v6319_v48 = vld [vmem:[%s6752_s29 + $0x150] ss:$8 sps:$4 sm:$0xff]   ;;  %v6320_v49 = vld [vmem:[%s6752_s29 + $0x460] ss:$8 sps:$4 sm:$0xff]  }
  0x96   : > { %5901 = vmatprep.mubr.msk.bf16.mxu0 %vm1609_vm1, %v6225_v50  ;;  %5950 = vmatprep.mubr.msk.bf16.mxu1 %vm1609_vm1, %v6227_v51  ;;  %v6321_v50 = vld [vmem:[%s6752_s29 + $0x164] ss:$8 sps:$4 sm:$0xff]   ;;  %v6323_v51 = vld [vmem:[%s6752_s29 + $0x474] ss:$8 sps:$4 sm:$0xff]  }
  0x9d   : > { %1985 = vmatmul.mubr.bf16.gmra.mxu0 %v6229_v52  ;;  %2377 = vmatmul.mubr.bf16.gmra.mxu1 %v6230_v53  ;;  %v6325_v52 = vld [vmem:[%s6752_s29 + $0x160] ss:$8 sps:$4 sm:$0xff]   ;;  %v6326_v53 = vld [vmem:[%s6752_s29 + $0x470] ss:$8 sps:$4 sm:$0xff]  }
  0x9e   : > { %5902 = vmatprep.mubr.msk.bf16.mxu0 %vm1609_vm1, %v6231_v54  ;;  %5951 = vmatprep.mubr.msk.bf16.mxu1 %vm1609_vm1, %v6233_v55  ;;  %v6327_v54 = vld [vmem:[%s6752_s29 + $0x174] ss:$8 sps:$4 sm:$0xff]   ;;  %v6329_v55 = vld [vmem:[%s6752_s29 + $0x484] ss:$8 sps:$4 sm:$0xff]  }
  0xa5   : > { %1993 = vmatmul.mubr.bf16.gmra.mxu0 %v6235_v56  ;;  %2385 = vmatmul.mubr.bf16.gmra.mxu1 %v6236_v57  ;;  %v6331_v56 = vld [vmem:[%s6752_s29 + $0x170] ss:$8 sps:$4 sm:$0xff]   ;;  %v6332_v57 = vld [vmem:[%s6752_s29 + $0x480] ss:$8 sps:$4 sm:$0xff]  }
  0xa6   : > { %5903 = vmatprep.mubr.msk.bf16.mxu0 %vm1609_vm1, %v6237_v58  ;;  %5952 = vmatprep.mubr.msk.bf16.mxu1 %vm1609_vm1, %v6239_v59  ;;  %v6333_v58 = vld [vmem:[%s6752_s29 + $0x184] ss:$8 sps:$4 sm:$0xff]   ;;  %v6335_v59 = vld [vmem:[%s6752_s29 + $0x494] ss:$8 sps:$4 sm:$0xff]  }
  0xad   : > { %2001 = vmatmul.mubr.bf16.gmra.mxu0 %v6241_v60  ;;  %2393 = vmatmul.mubr.bf16.gmra.mxu1 %v6242_v61  ;;  %v6337_v60 = vld [vmem:[%s6752_s29 + $0x180] ss:$8 sps:$4 sm:$0xff]   ;;  %v6338_v61 = vld [vmem:[%s6752_s29 + $0x490] ss:$8 sps:$4 sm:$0xff]  }
  0xae   : > { %5904 = vmatprep.mubr.msk.bf16.mxu0 %vm1609_vm1, %v6243_v62  ;;  %5953 = vmatprep.mubr.msk.bf16.mxu1 %vm1609_vm1, %v6245_v63  ;;  %v6339_v62 = vld [vmem:[%s6752_s29 + $0x194] ss:$8 sps:$4 sm:$0xff]   ;;  %v6341_v63 = vld [vmem:[%s6752_s29 + $0x4a4] ss:$8 sps:$4 sm:$0xff]  }
  0xb5   : > { %2009 = vmatmul.mubr.bf16.gmra.mxu0 %v6247_v0  ;;  %2401 = vmatmul.mubr.bf16.gmra.mxu1 %v6248_v1 }
  0xb6   : > { %5905 = vmatprep.mubr.msk.bf16.mxu0 %vm1609_vm1, %v6249_v2  ;;  %5954 = vmatprep.mubr.msk.bf16.mxu1 %vm1609_vm1, %v6251_v3 }
  0xbd   : > { %2017 = vmatmul.mubr.bf16.gmra.mxu0 %v6253_v4  ;;  %2409 = vmatmul.mubr.bf16.gmra.mxu1 %v6254_v5 }
  0xbe   : > { %5906 = vmatprep.mubr.msk.bf16.mxu0 %vm1609_vm1, %v6255_v6  ;;  %5955 = vmatprep.mubr.msk.bf16.mxu1 %vm1609_vm1, %v6257_v7  ;;  %v6343_v6 = vld [vmem:[%s6752_s29 + $0x190] ss:$8 sps:$4 sm:$0xff]   ;;  %v6344_v7 = vld [vmem:[%s6752_s29 + $0x4a0] ss:$8 sps:$4 sm:$0xff]  }
  0xc5   : > { %2025 = vmatmul.mubr.bf16.gmra.mxu0 %v6259_v8  ;;  %2417 = vmatmul.mubr.bf16.gmra.mxu1 %v6260_v9  ;;  %v6345_v8 = vld [vmem:[%s6752_s29 + $0x1a4] ss:$8 sps:$4 sm:$0xff]   ;;  %v6347_v9 = vld [vmem:[%s6752_s29 + $0x4b4] ss:$8 sps:$4 sm:$0xff]  }
  0xc6   : > { %5907 = vmatprep.mubr.msk.bf16.mxu0 %vm1609_vm1, %v6261_v10  ;;  %5956 = vmatprep.mubr.msk.bf16.mxu1 %vm1609_vm1, %v6263_v11 }
  0xcd   : > { %2033 = vmatmul.mubr.bf16.gmra.mxu0 %v6265_v12  ;;  %2425 = vmatmul.mubr.bf16.gmra.mxu1 %v6266_v13 }
  0xce   : > { %5908 = vmatprep.mubr.msk.bf16.mxu0 %vm1609_vm1, %v6267_v14  ;;  %5957 = vmatprep.mubr.msk.bf16.mxu1 %vm1609_vm1, %v6269_v15 }
  0xd5   : > { %2041 = vmatmul.mubr.bf16.gmra.mxu0 %v6271_v16  ;;  %2433 = vmatmul.mubr.bf16.gmra.mxu1 %v6272_v17 }
  0xd6   : > { %5909 = vmatprep.mubr.msk.bf16.mxu0 %vm1609_vm1, %v6273_v18  ;;  %5958 = vmatprep.mubr.msk.bf16.mxu1 %vm1609_vm1, %v6275_v19  ;;  %v6349_v18 = vld [vmem:[%s6752_s29 + $0x1a0] ss:$8 sps:$4 sm:$0xff]   ;;  %v6350_v19 = vld [vmem:[%s6752_s29 + $0x4b0] ss:$8 sps:$4 sm:$0xff]  }
  0xdd   : > { %2049 = vmatmul.mubr.bf16.gmra.mxu0 %v6277_v20  ;;  %2441 = vmatmul.mubr.bf16.gmra.mxu1 %v6278_v21  ;;  %v6351_v20 = vld [vmem:[%s6752_s29 + $0x1b4] ss:$8 sps:$4 sm:$0xff]   ;;  %v6353_v21 = vld [vmem:[%s6752_s29 + $0x4c4] ss:$8 sps:$4 sm:$0xff]  }
  0xde   : > { %5910 = vmatprep.mubr.msk.bf16.mxu0 %vm1609_vm1, %v6279_v22  ;;  %5959 = vmatprep.mubr.msk.bf16.mxu1 %vm1609_vm1, %v6281_v23 }
  0xe5   : > { %2057 = vmatmul.mubr.bf16.gmra.mxu0 %v6283_v24  ;;  %2449 = vmatmul.mubr.bf16.gmra.mxu1 %v6284_v25 }
  0xe6   : > { %5911 = vmatprep.mubr.msk.bf16.mxu0 %vm1609_vm1, %v6285_v26  ;;  %5960 = vmatprep.mubr.msk.bf16.mxu1 %vm1609_vm1, %v6287_v27 }
  0xed   : > { %2065 = vmatmul.mubr.bf16.gmra.mxu0 %v6289_v28  ;;  %2457 = vmatmul.mubr.bf16.gmra.mxu1 %v6290_v29 }
  0xee   : > { %5912 = vmatprep.mubr.msk.bf16.mxu0 %vm1609_vm1, %v6291_v30  ;;  %5961 = vmatprep.mubr.msk.bf16.mxu1 %vm1609_vm1, %v6293_v31  ;;  %v6355_v30 = vld [vmem:[%s6752_s29 + $0x1b0] ss:$8 sps:$4 sm:$0xff]   ;;  %v6356_v31 = vld [vmem:[%s6752_s29 + $0x4c0] ss:$8 sps:$4 sm:$0xff]  }
  0xf5   : > { %2073 = vmatmul.mubr.bf16.gmra.mxu0 %v6295_v32  ;;  %2465 = vmatmul.mubr.bf16.gmra.mxu1 %v6296_v33  ;;  %v6357_v32 = vld [vmem:[%s6752_s29 + $0x1c4] ss:$8 sps:$4 sm:$0xff]   ;;  %v6359_v33 = vld [vmem:[%s6752_s29 + $0x4d4] ss:$8 sps:$4 sm:$0xff]  }
  0xf6   : > { %5913 = vmatprep.mubr.msk.bf16.mxu0 %vm1609_vm1, %v6297_v34  ;;  %5962 = vmatprep.mubr.msk.bf16.mxu1 %vm1609_vm1, %v6299_v35 }
  0xfd   : > { %2081 = vmatmul.mubr.bf16.gmra.mxu0 %v6301_v36  ;;  %2473 = vmatmul.mubr.bf16.gmra.mxu1 %v6302_v37 }
  0xfe   : > { %5914 = vmatprep.mubr.msk.bf16.mxu0 %vm1609_vm1, %v6303_v38  ;;  %5963 = vmatprep.mubr.msk.bf16.mxu1 %vm1609_vm1, %v6305_v39  ;;  %v6995_v39 = vld [vmem:[%s9720_s2] ss:$0 sm:$0xff] }
 0x105   : > { %2089 = vmatmul.mubr.bf16.gmra.mxu0 %v6307_v40  ;;  %2481 = vmatmul.mubr.bf16.gmra.mxu1 %v6308_v41 }
 0x106   : > { %5915 = vmatprep.mubr.msk.bf16.mxu0 %vm1609_vm1, %v6309_v42  ;;  %5964 = vmatprep.mubr.msk.bf16.mxu1 %vm1609_vm1, %v6311_v43 }
 0x10d   : > { %2097 = vmatmul.mubr.bf16.gmra.mxu0 %v6313_v44  ;;  %2489 = vmatmul.mubr.bf16.gmra.mxu1 %v6314_v45  ;;  %v6361_v45 = vld [vmem:[%s6752_s29 + $0x1c0] ss:$8 sps:$4 sm:$0xff]  }
 0x10e   : > { %5916 = vmatprep.mubr.msk.bf16.mxu0 %vm1609_vm1, %v6315_v46  ;;  %5965 = vmatprep.mubr.msk.bf16.mxu1 %vm1609_vm1, %v6317_v47  ;;  %v6362_v46 = vld [vmem:[%s6752_s29 + $0x4d0] ss:$8 sps:$4 sm:$0xff]  }
 0x115   : > { %2105 = vmatmul.mubr.bf16.gmra.mxu0 %v6319_v48  ;;  %2497 = vmatmul.mubr.bf16.gmra.mxu1 %v6320_v49  ;;  %v6363_v49 = vld [vmem:[%s6752_s29 + $0x1d4] ss:$8 sps:$4 sm:$0xff]  }
 0x116   : > { %5917 = vmatprep.mubr.msk.bf16.mxu0 %vm1609_vm1, %v6321_v50  ;;  %5966 = vmatprep.mubr.msk.bf16.mxu1 %vm1609_vm1, %v6323_v51  ;;  %v6365_v50 = vld [vmem:[%s6752_s29 + $0x4e4] ss:$8 sps:$4 sm:$0xff]   ;;  %v7008_v51 = vld [vmem:[%s9721_s3] ss:$0 sm:$0xff] }
 0x11d   : > { %2113 = vmatmul.mubr.bf16.gmra.mxu0 %v6325_v52  ;;  %2505 = vmatmul.mubr.bf16.gmra.mxu1 %v6326_v53 }
 0x11e   : > { %5918 = vmatprep.mubr.msk.bf16.mxu0 %vm1609_vm1, %v6327_v54  ;;  %5967 = vmatprep.mubr.msk.bf16.mxu1 %vm1609_vm1, %v6329_v55 }
 0x125   : > { %2121 = vmatmul.mubr.bf16.gmra.mxu0 %v6331_v56  ;;  %2513 = vmatmul.mubr.bf16.gmra.mxu1 %v6332_v57 }
 0x126   : > { %5919 = vmatprep.mubr.msk.bf16.mxu0 %vm1609_vm1, %v6333_v58  ;;  %5968 = vmatprep.mubr.msk.bf16.mxu1 %vm1609_vm1, %v6335_v59 }
 0x12d   : > { %v6943_v0 = vpop.f32.mrf.mxu0  ;;  %2129 = vmatmul.mubr.bf16.gmra.mxu0 %v6337_v60  ;;  %v6945_v1 = vpop.f32.mrf.mxu1  ;;  %2521 = vmatmul.mubr.bf16.gmra.mxu1 %v6338_v61 }
 0x12e   : > { %5920 = vmatprep.mubr.msk.bf16.mxu0 %vm1609_vm1, %v6339_v62  ;;  %5969 = vmatprep.mubr.msk.bf16.mxu1 %vm1609_vm1, %v6341_v63  ;;  %v2721_v38 = vmax.f32 %v6943_v0, 0.0 }
 0x12f   : > { %v1940_v2 = vpop.f32.mrf.mxu0  ;;  %v2332_v3 = vpop.f32.mrf.mxu1 }
 0x130   : > { %v2924_v47 = vmul.f32 %v6995_v39, %v2721_v38 }
 0x131   : > { %v6949_v4 = vpop.f32.mrf.mxu0  ;;  %v6951_v5 = vpop.f32.mrf.mxu1 }
 0x132   : > { %v2722_v42 = vmax.f32 %v6949_v4, 0.0  ;;  %v7015_v58 = vadd.f32 %v7008_v51, %v2924_v47 }
 0x133   : > { %v1943_v10 = vpop.f32.mrf.mxu0  ;;  %v2335_v11 = vpop.f32.mrf.mxu1 }
 0x134   : > { %v2925_v55 = vmul.f32 %v6995_v39, %v2722_v42  ;;  %v6374_v42 = vld [vmem:[%s6752_s29 + $0x4f0] ss:$8 sps:$4 sm:$0xff]  }
 0x135   : > { %v6957_v12 = vpop.f32.mrf.mxu0  ;;  %2137 = vmatmul.mubr.bf16.gmra.mxu0 %v6343_v6  ;;  %v6959_v13 = vpop.f32.mrf.mxu1  ;;  %2529 = vmatmul.mubr.bf16.gmra.mxu1 %v6344_v7  ;;  %v6367_v7 = vld [vmem:[%s6752_s29 + $0x1d0] ss:$8 sps:$4 sm:$0xff]  }
 0x136   : > { %5921 = vmatprep.mubr.msk.bf16.mxu0 %vm1609_vm1, %v6345_v8  ;;  %5970 = vmatprep.mubr.msk.bf16.mxu1 %vm1609_vm1, %v6347_v9  ;;  %v2723_v59 = vmax.f32 %v6957_v12, 0.0  ;;  %v7027_v3 = vadd.f32 %v7008_v51, %v2925_v55  ;;  %v6368_v8 = vld [vmem:[%s6752_s29 + $0x4e0] ss:$8 sps:$4 sm:$0xff]  }
 0x137   : > { %v1948_v14 = vpop.f32.mrf.mxu0  ;;  %v2340_v15 = vpop.f32.mrf.mxu1 }
 0x138   : > { %v2926_v9 = vmul.f32 %v6995_v39, %v2723_v59  ;;  %v6369_v14 = vld [vmem:[%s6752_s29 + $0x1e4] ss:$8 sps:$4 sm:$0xff]   ;;  %v6371_v15 = vld [vmem:[%s6752_s29 + $0x4f4] ss:$8 sps:$4 sm:$0xff]  }
 0x139   : > { %v6963_v16 = vpop.f32.mrf.mxu0  ;;  %v6965_v17 = vpop.f32.mrf.mxu1 }
 0x13a   : > { %v2724_v10 = vmax.f32 %v6963_v16, 0.0  ;;  %v7047_v16 = vadd.f32 %v7008_v51, %v2926_v9  ;;  %v6013_v9 = vld [vmem:[%s6754_s28] sm:$0xff]  }
 0x13b   : > { %v1951_v22 = vpop.f32.mrf.mxu0  ;;  %v2343_v23 = vpop.f32.mrf.mxu1 }
 0x13d   : > { %v6971_v24 = vpop.f32.mrf.mxu0  ;;  %2145 = vmatmul.mubr.bf16.gmra.mxu0 %v6349_v18  ;;  %v6973_v25 = vpop.f32.mrf.mxu1  ;;  %2537 = vmatmul.mubr.bf16.gmra.mxu1 %v6350_v19 }
 0x13e   : > { %5922 = vmatprep.mubr.msk.bf16.mxu0 %vm1609_vm1, %v6351_v20  ;;  %5971 = vmatprep.mubr.msk.bf16.mxu1 %vm1609_vm1, %v6353_v21  ;;  %v2725_v22 = vmax.f32 %v6971_v24, 0.0 }
 0x13f   : > { %v1956_v26 = vpop.f32.mrf.mxu0  ;;  %v2348_v27 = vpop.f32.mrf.mxu1 }
 0x140   : > { %v2927_v27 = vmul.f32 %v6995_v39, %v2724_v10 }
 0x141   : > { %v6977_v28 = vpop.f32.mrf.mxu0  ;;  %v6979_v29 = vpop.f32.mrf.mxu1 }
 0x143   : > { %v1959_v34 = vpop.f32.mrf.mxu0  ;;  %v2351_v35 = vpop.f32.mrf.mxu1 }
 0x144   : > { %v2928_v35 = vmul.f32 %v6995_v39, %v2725_v22 }
 0x145   : > { %v6985_v36 = vpop.f32.mrf.mxu0  ;;  %2153 = vmatmul.mubr.bf16.gmra.mxu0 %v6355_v30  ;;  %v6987_v37 = vpop.f32.mrf.mxu1  ;;  %2545 = vmatmul.mubr.bf16.gmra.mxu1 %v6356_v31 }
 0x146   : > { %5923 = vmatprep.mubr.msk.bf16.mxu0 %vm1609_vm1, %v6357_v32  ;;  %5972 = vmatprep.mubr.msk.bf16.mxu1 %vm1609_vm1, %v6359_v33  ;;  %v7076_v55 = vadd.f32 %v7008_v51, %v2928_v35 }
 0x147   : > { %v1964_v40 = vpop.f32.mrf.mxu0  ;;  %v2356_v41 = vpop.f32.mrf.mxu1 }
 0x148   : > { %v6373_v41 = vld [vmem:[%s6752_s29 + $0x1e0] ss:$8 sps:$4 sm:$0xff]  }
 0x149   : > { %v1965_v43 = vpop.f32.mrf.mxu0  ;;  %v6998_v44 = vpop.f32.mrf.mxu1 }
 0x14a   : > { %v2728_v48 = vmax.f32 %v1965_v43, 0.0  ;;  %v7064_v43 = vadd.f32 %v7008_v51, %v2927_v27  ;;  %v6383_v27 = vld [vmem:[%s6752_s29 + $0x514] ss:$8 sps:$4 sm:$0xff]  }
 0x14b   : > { %v1967_v52 = vpop.f32.mrf.mxu0  ;;  %v2359_v53 = vpop.f32.mrf.mxu1 }
 0x14c   : > { %v2931_v54 = vmul.f32 %v6995_v39, %v2728_v48  ;;  %v6375_v48 = vld [vmem:[%s6752_s29 + $0x1f4] ss:$8 sps:$4 sm:$0xff]  }
 0x14d   : > { %v1970_v56 = vpop.f32.mrf.mxu0  ;;  %2161 = vmatmul.mubr.bf16.gmra.mxu0 %v6361_v45  ;;  %v7012_v57 = vpop.f32.mrf.mxu1  ;;  %2553 = vmatmul.mubr.bf16.gmra.mxu1 %v6362_v46  ;;  %v2726_v45 = vmax.f32 %v6977_v28, 0.0 }
 0x14e   : > { %v7019_v60 = vadd.f32 %v7008_v51, %v2931_v54  ;;  %v2729_v61 = vmax.f32 %v1970_v56, 0.0  ;;  %5924 = vmatprep.mubr.msk.bf16.mxu0 %vm1609_vm1, %v6363_v49  ;;  %5973 = vmatprep.mubr.msk.bf16.mxu1 %vm1609_vm1, %v6365_v50  ;;  %v6377_v49 = vld [vmem:[%s6752_s29 + $0x504] ss:$8 sps:$4 sm:$0xff]  }
 0x14f   : > { %v1972_v62 = vpop.f32.mrf.mxu0  ;;  %v2364_v63 = vpop.f32.mrf.mxu1  ;;  %v2929_v59 = vmul.f32 %v6995_v39, %v2726_v45 }
 0x150   : > { %v3323_v0 = vmax.f32 %v7015_v58, %v7019_v60  ;;  %v2932_v2 = vmul.f32 %v6995_v39, %v2729_v61  ;;  %v2727_v61 = vmax.f32 %v6985_v36, 0.0 }
 0x151   : > { %v1973_v4 = vpop.f32.mrf.mxu0  ;;  %v7029_v6 = vpop.f32.mrf.mxu1 }
 0x152   : > { %v7036_v11 = vadd.f32 %v7008_v51, %v2932_v2  ;;  %v2730_v12 = vmax.f32 %v1973_v4, 0.0 }
 0x153   : > { %v1975_v18 = vpop.f32.mrf.mxu0  ;;  %v2367_v19 = vpop.f32.mrf.mxu1 }
 0x154   : > { %v3326_v20 = vmax.f32 %v7027_v3, %v7036_v11  ;;  %v2933_v21 = vmul.f32 %v6995_v39, %v2730_v12  ;;  %v6379_v12 = vld [vmem:[%s6752_s29 + $0x1f0] ss:$8 sps:$4 sm:$0xff]   ;;  %v7097_v18 = vadd.f32 %v7008_v51, %v2929_v59  ;;  %v2930_v19 = vmul.f32 %v6995_v39, %v2727_v61  ;;  %v6392_v3 = vld [vmem:[%s6752_s29 + $0x520] ss:$8 sps:$4 sm:$0xff]   ;;  %v6393_v11 = vld [vmem:[%s6752_s29 + $0x224] ss:$8 sps:$4 sm:$0xff]  }
 0x155   : > { %v1978_v23 = vpop.f32.mrf.mxu0  ;;  %2169 = vmatmul.mubr.bf16.gmra.mxu0 %v6367_v7  ;;  %v7044_v26 = vpop.f32.mrf.mxu1  ;;  %2561 = vmatmul.mubr.bf16.gmra.mxu1 %v6368_v8 }
 0x156   : > { %v7051_v30 = vadd.f32 %v7008_v51, %v2933_v21  ;;  %v2731_v31 = vmax.f32 %v1978_v23, 0.0  ;;  %5925 = vmatprep.mubr.msk.bf16.mxu0 %vm1609_vm1, %v6369_v14  ;;  %5974 = vmatprep.mubr.msk.bf16.mxu1 %vm1609_vm1, %v6371_v15  ;;  %v6380_v14 = vld [vmem:[%s6752_s29 + $0x500] ss:$8 sps:$4 sm:$0xff]   ;;  %v6381_v23 = vld [vmem:[%s6752_s29 + $0x204] ss:$8 sps:$4 sm:$0xff]   ;;  %v7115_v45 = vadd.f32 %v7008_v51, %v2930_v19 }
 0x157   : > { %v1980_v24 = vpop.f32.mrf.mxu0  ;;  %v2372_v32 = vpop.f32.mrf.mxu1  ;;  %v5995_v15 = vld [vmem:[%s6754_s28 + $0x34] sm:$0xf] }
 0x158   : > { %v3329_v33 = vmax.f32 %v7047_v16, %v7051_v30  ;;  %v2934_v34 = vmul.f32 %v6995_v39, %v2731_v31  ;;  %v7105_v32 = vunpack.c.l.bf16 %v6013_v9 }
 0x159   : > { %v1981_v38 = vpop.f32.mrf.mxu0  ;;  %v7059_v40 = vpop.f32.mrf.mxu1 }
 0x15a   : > { %v7068_v46 = vadd.f32 %v7008_v51, %v2934_v34  ;;  %v2732_v47 = vmax.f32 %v1981_v38, 0.0  ;;  %v7110_v38 = vunpack.c.l.bf16 %v5995_v15 }
 0x15b   : > { %v1983_v50 = vpop.f32.mrf.mxu0  ;;  %v2375_v52 = vpop.f32.mrf.mxu1 }
 0x15c   : > { %v3332_v53 = vmax.f32 %v7064_v43, %v7068_v46  ;;  %v2935_v54 = vmul.f32 %v6995_v39, %v2732_v47 }
 0x15d   : > { %v1986_v56 = vpop.f32.mrf.mxu0  ;;  %2177 = vmatmul.mubr.bf16.gmra.mxu0 %v6373_v41  ;;  %v7078_v28 = vpop.f32.mrf.mxu1  ;;  %2569 = vmatmul.mubr.bf16.gmra.mxu1 %v6374_v42 }
 0x15e   : > { %v7083_v62 = vadd.f32 %v7008_v51, %v2935_v54  ;;  %v2733_v63 = vmax.f32 %v1986_v56, 0.0  ;;  %5926 = vmatprep.mubr.msk.bf16.mxu0 %vm1609_vm1, %v6375_v48  ;;  %5975 = vmatprep.mubr.msk.bf16.mxu1 %vm1609_vm1, %v6377_v49  ;;  %v2819_v49 = vmax.f32 %v6945_v1, 0.0  ;;  %v2820_v56 = vmax.f32 %v6951_v5, 0.0 }
 0x15f   : > { %v1988_v2 = vpop.f32.mrf.mxu0  ;;  %v2380_v4 = vpop.f32.mrf.mxu1  ;;  %v2822_v1 = vmax.f32 %v6965_v17, 0.0  ;;  %v2831_v16 = vmax.f32 %v7078_v28, 0.0 }
 0x160   : > { %v3335_v7 = vmax.f32 %v7076_v55, %v7083_v62  ;;  %v2936_v8 = vmul.f32 %v6995_v39, %v2733_v63  ;;  %v6385_v63 = vld [vmem:[%s6752_s29 + $0x200] ss:$8 sps:$4 sm:$0xff]   ;;  %v6386_v2 = vld [vmem:[%s6752_s29 + $0x510] ss:$8 sps:$4 sm:$0xff]  }
 0x161   : > { %v1989_v10 = vpop.f32.mrf.mxu0  ;;  %v7091_v36 = vpop.f32.mrf.mxu1 }
 0x162   : > { %v7101_v21 = vadd.f32 %v7008_v51, %v2936_v8  ;;  %v2734_v22 = vmax.f32 %v1989_v10, 0.0  ;;  %v2821_v8 = vmax.f32 %v6959_v13, 0.0  ;;  %v3022_v13 = vmul.f32 %v6995_v39, %v2819_v49 }
 0x163   : > { %v1991_v31 = vpop.f32.mrf.mxu0  ;;  %v2383_v24 = vpop.f32.mrf.mxu1 }
 0x164   : > { %v3338_v34 = vmax.f32 %v7097_v18, %v7101_v21  ;;  %v2937_v35 = vmul.f32 %v6995_v39, %v2734_v22  ;;  %v6061_v24 = vld [vmem:[%s6754_s28 + $0x38] sm:$0xff]   ;;  %v7154_v31 = vunpack.c.h.bf16 %v6013_v9  ;;  %v3024_v49 = vmul.f32 %v6995_v39, %v2821_v8 }
 0x165   : > { %v1994_v41 = vpop.f32.mrf.mxu0  ;;  %2185 = vmatmul.mubr.bf16.gmra.mxu0 %v6379_v12  ;;  %v7112_v42 = vpop.f32.mrf.mxu1  ;;  %2577 = vmatmul.mubr.bf16.gmra.mxu1 %v6380_v14  ;;  %v6387_v14 = vld [vmem:[%s6752_s29 + $0x214] ss:$8 sps:$4 sm:$0xff]   ;;  %v2826_v8 = vmax.f32 %v6998_v44, 0.0  ;;  %v2829_v44 = vmax.f32 %v7044_v26, 0.0  ;;  %v6405_v21 = vld [vmem:[%s6752_s29 + $0x244] ss:$8 sps:$4 sm:$0xff]  }
 0x166   : > { %v7118_v47 = vadd.f32 %v7008_v51, %v2937_v35  ;;  %v2735_v48 = vmax.f32 %v1994_v41, 0.0  ;;  %5927 = vmatprep.mubr.msk.bf16.mxu0 %vm1609_vm1, %v6381_v23  ;;  %5976 = vmatprep.mubr.msk.bf16.mxu1 %vm1609_vm1, %v6383_v27  ;;  %v6389_v23 = vld [vmem:[%s6752_s29 + $0x524] ss:$8 sps:$4 sm:$0xff]   ;;  %9770 = vst [vmem:[#allocation11_spill] sm:$0xff] %v7154_v31 }
 0x167   : > { %v1996_v50 = vpop.f32.mrf.mxu0  ;;  %v2388_v52 = vpop.f32.mrf.mxu1 }
 0x168   : > { %v3341_v59 = vmax.f32 %v7115_v45, %v7118_v47  ;;  %v2938_v61 = vmul.f32 %v6995_v39, %v2735_v48  ;;  %v3023_v52 = vmul.f32 %v6995_v39, %v2820_v56  ;;  %v7161_v56 = vunpack.c.l.bf16 %v6061_v24  ;;  %v6391_v24 = vld [vmem:[%s6752_s29 + $0x210] ss:$8 sps:$4 sm:$0xff]  }
 0x169   : > { %v1997_v10 = vpop.f32.mrf.mxu0  ;;  %v7133_v12 = vpop.f32.mrf.mxu1 }
 0x16a   : > { %v3141_v19 = vadd.f32 %v7008_v51, %v2938_v61  ;;  %v2736_v22 = vmax.f32 %v1997_v10, 0.0  ;;  %9771 = vst [vmem:[#allocation12_spill] sm:$0xff] %v7161_v56 }
 0x16b   : > { %v1999_v17 = vpop.f32.mrf.mxu0  ;;  %v2391_v35 = vpop.f32.mrf.mxu1 }
 0x16c   : > { %v7151_v61 = vmax.f32 %v3323_v0, %v3141_v19  ;;  %v2939_v10 = vmul.f32 %v6995_v39, %v2736_v22  ;;  %v3025_v17 = vmul.f32 %v6995_v39, %v2822_v1  ;;  %v2823_v35 = vmax.f32 %v6973_v25, 0.0  ;;  %v6395_v19 = vld [vmem:[%s6752_s29 + $0x534] ss:$8 sps:$4 sm:$0xff]  }
 0x16d   : > { %v2002_v48 = vpop.f32.mrf.mxu0  ;;  %2193 = vmatmul.mubr.bf16.gmra.mxu0 %v6385_v63  ;;  %v7159_v50 = vpop.f32.mrf.mxu1  ;;  %2585 = vmatmul.mubr.bf16.gmra.mxu1 %v6386_v2  ;;  %v7169_v25 = vadd.f32 %v7008_v51, %v3022_v13 }
 0x16e   : > { %v3142_v58 = vadd.f32 %v7008_v51, %v2939_v10  ;;  %v2737_v60 = vmax.f32 %v2002_v48, 0.0  ;;  %5928 = vmatprep.mubr.msk.bf16.mxu0 %vm1609_vm1, %v6387_v14  ;;  %5977 = vmatprep.mubr.msk.bf16.mxu1 %vm1609_vm1, %v6389_v23  ;;  %v7175_v14 = vadd.f32 %v7008_v51, %v3023_v52  ;;  %v7186_v48 = vadd.f32 %v7008_v51, %v3024_v49 }
 0x16f   : > { %9772 = vst [vmem:[#allocation13_spill] sm:$0xff] %v7169_v25  ;;  %v2004_v63 = vpop.f32.mrf.mxu0  ;;  %v2396_v2 = vpop.f32.mrf.mxu1  ;;  %v7189_v10 = vadd.f32 %v7008_v51, %v3025_v17  ;;  %v3026_v52 = vmul.f32 %v6995_v39, %v2823_v35  ;;  %v2825_v17 = vmax.f32 %v6987_v37, 0.0 }
 0x170   : > { %9773 = vst [vmem:[#allocation14_spill] sm:$0xff] %v7175_v14  ;;  %v7180_v22 = vmax.f32 %v3326_v20, %v3142_v58  ;;  %v2940_v23 = vmul.f32 %v6995_v39, %v2737_v60  ;;  %9774 = vst [vmem:[#allocation15_spill] sm:$0xff] %v7186_v48  ;;  %v2824_v58 = vmax.f32 %v6979_v29, 0.0  ;;  %v2827_v20 = vmax.f32 %v7012_v57, 0.0 }
 0x171   : > { %9775 = vst [vmem:[#allocation16_spill] sm:$0xff] %v7189_v10  ;;  %v2005_v63 = vpop.f32.mrf.mxu0  ;;  %v7192_v2 = vpop.f32.mrf.mxu1  ;;  %v2828_v29 = vmax.f32 %v7029_v6, 0.0  ;;  %v7214_v37 = vadd.f32 %v7008_v51, %v3026_v52  ;;  %v3028_v26 = vmul.f32 %v6995_v39, %v2825_v17  ;;  %v9789_v10 = vrot.slane %v7105_v32, 2 }
 0x172   : > { %v3143_v60 = vadd.f32 %v7008_v51, %v2940_v23  ;;  %v2738_v13 = vmax.f32 %v2005_v63, 0.0  ;;  %v3027_v6 = vmul.f32 %v6995_v39, %v2824_v58  ;;  %v3030_v28 = vmul.f32 %v6995_v39, %v2827_v20 }
 0x173   : > { %v2007_v35 = vpop.f32.mrf.mxu0  ;;  %v2399_v1 = vpop.f32.mrf.mxu1  ;;  %9776 = vst [vmem:[#allocation17_spill] sm:$0xff] %v7214_v37  ;;  %v3031_v58 = vmul.f32 %v6995_v39, %v2828_v29  ;;  %v6397_v29 = vld [vmem:[%s6752_s29 + $0x220] ss:$8 sps:$4 sm:$0xff]   ;;  %v6423_v37 = vld [vmem:[%s6752_s29 + $0x274] ss:$8 sps:$4 sm:$0xff]  }
 0x174   : > { %v7210_v23 = vmax.f32 %v3329_v33, %v3143_v60  ;;  %v2941_v63 = vmul.f32 %v6995_v39, %v2738_v13  ;;  %v2830_v1 = vmax.f32 %v7059_v40, 0.0  ;;  %v3029_v40 = vmul.f32 %v6995_v39, %v2826_v8 }
 0x175   : > { %v2010_v35 = vpop.f32.mrf.mxu0  ;;  %2201 = vmatmul.mubr.bf16.gmra.mxu0 %v6391_v24  ;;  %v7218_v9 = vpop.f32.mrf.mxu1  ;;  %2593 = vmatmul.mubr.bf16.gmra.mxu1 %v6392_v3  ;;  %v3032_v60 = vmul.f32 %v6995_v39, %v2829_v44  ;;  %v7248_v46 = vadd.f32 %v7008_v51, %v3027_v6  ;;  %v2832_v3 = vmax.f32 %v7091_v36, 0.0  ;;  %v7264_v6 = vld [vmem:[%s6754_s28 + $0x50] sm:$0xff]  }
 0x176   : > { %v3144_v30 = vadd.f32 %v7008_v51, %v2941_v63  ;;  %v2739_v33 = vmax.f32 %v2010_v35, 0.0  ;;  %5929 = vmatprep.mubr.msk.bf16.mxu0 %vm1609_vm1, %v6393_v11  ;;  %5978 = vmatprep.mubr.msk.bf16.mxu1 %vm1609_vm1, %v6395_v19  ;;  %v6058_v11 = vld [vmem:[%s6754_s28 + $0x18] sm:$0xff]   ;;  %v3033_v17 = vmul.f32 %v6995_v39, %v2830_v1  ;;  %v2833_v63 = vmax.f32 %v7112_v42, 0.0 }
 0x177   : > { %v2012_v24 = vpop.f32.mrf.mxu0  ;;  %v2404_v13 = vpop.f32.mrf.mxu1  ;;  %9777 = vst [vmem:[#allocation18_spill] sm:$0xff] %v7248_v46  ;;  %v6401_v1 = vld [vmem:[%s6752_s29 + $0x544] ss:$8 sps:$4 sm:$0xff]   ;;  %v7255_v42 = vadd.f32 %v7008_v51, %v3028_v26  ;;  %v7261_v57 = vunpack.c.h.bf16 %v6058_v11  ;;  %v7279_v36 = vadd.f32 %v7008_v51, %v3032_v60  ;;  %v7293_v60 = vunpack.c.l.bf16 %v7264_v6 }
 0x178   : > { %v7235_v19 = vmax.f32 %v3332_v53, %v3144_v30  ;;  %v2942_v8 = vmul.f32 %v6995_v39, %v2739_v33  ;;  %v6398_v24 = vld [vmem:[%s6752_s29 + $0x530] ss:$8 sps:$4 sm:$0xff]   ;;  %v3034_v53 = vmul.f32 %v6995_v39, %v2831_v16  ;;  %v6399_v33 = vld [vmem:[%s6752_s29 + $0x234] ss:$8 sps:$4 sm:$0xff]   ;;  %v7258_v13 = vadd.f32 %v7008_v51, %v3029_v40 }
 0x179   : > { %v2013_v35 = vpop.f32.mrf.mxu0  ;;  %v7242_v20 = vpop.f32.mrf.mxu1  ;;  %9778 = vst [vmem:[#allocation19_spill] sm:$0xff] %v7255_v42  ;;  %v7267_v16 = vadd.f32 %v7008_v51, %v3030_v28  ;;  %9782 = vst [vmem:[#allocation23_spill] sm:$0xff] %v7279_v36 }
 0x17a   : > { %v3145_v30 = vadd.f32 %v7008_v51, %v2942_v8  ;;  %v2740_v44 = vmax.f32 %v2013_v35, 0.0  ;;  %9779 = vst [vmem:[#allocation20_spill] sm:$0xff] %v7258_v13  ;;  %v7270_v8 = vadd.f32 %v7008_v51, %v3031_v58  ;;  %v3036_v35 = vmul.f32 %v6995_v39, %v2833_v63 }
 0x17b   : > { %v2015_v52 = vpop.f32.mrf.mxu0  ;;  %v2407_v43 = vpop.f32.mrf.mxu1  ;;  %9780 = vst [vmem:[#allocation21_spill] sm:$0xff] %v7267_v16  ;;  %v7287_v55 = vadd.f32 %v7008_v51, %v3034_v53 }
 0x17c   : > { %9781 = vst [vmem:[#allocation22_spill] sm:$0xff] %v7270_v8  ;;  %v7275_v26 = vmax.f32 %v3335_v7, %v3145_v30  ;;  %v2943_v40 = vmul.f32 %v6995_v39, %v2740_v44  ;;  %v7282_v52 = vadd.f32 %v7008_v51, %v3033_v17  ;;  %v7296_v17 = vmul.f32 %v6995_v39, %v2832_v3  ;;  %v6407_v30 = vld [vmem:[%s6752_s29 + $0x554] ss:$8 sps:$4 sm:$0xff]  }
 0x17d   : > { %v2018_v28 = vpop.f32.mrf.mxu0  ;;  %2209 = vmatmul.mubr.bf16.gmra.mxu0 %v6397_v29  ;;  %v2410_v43 = vpop.f32.mrf.mxu1  ;;  %2601 = vmatmul.mubr.bf16.gmra.mxu1 %v6398_v24  ;;  %9784 = vst [vmem:[#allocation25_spill] sm:$0xff] %v7287_v55  ;;  %v7298_v24 = vunpack.c.l.bf16 %v6058_v11  ;;  %v2834_v44 = vmax.f32 %v7133_v12, 0.0  ;;  %v7313_v11 = vadd.f32 %v7008_v51, %v3036_v35  ;;  %v2837_v12 = vmax.f32 %v7218_v9, 0.0 }
 0x17e   : > { %9783 = vst [vmem:[#allocation24_spill] sm:$0xff] %v7282_v52  ;;  %v3146_v62 = vadd.f32 %v7008_v51, %v2943_v40  ;;  %v2741_v7 = vmax.f32 %v2018_v28, 0.0  ;;  %5930 = vmatprep.mubr.msk.bf16.mxu0 %vm1609_vm1, %v6399_v33  ;;  %5979 = vmatprep.mubr.msk.bf16.mxu1 %vm1609_vm1, %v6401_v1  ;;  %9785 = vst [vmem:[#allocation26_spill] sm:$0xff] %v7296_v17  ;;  %v6403_v1 = vld [vmem:[%s6752_s29 + $0x230] ss:$8 sps:$4 sm:$0xff]   ;;  %v2838_v28 = vmax.f32 %v7242_v20, 0.0 }
 0x17f   : > { %v2020_v63 = vpop.f32.mrf.mxu0  ;;  %v2412_v29 = vpop.f32.mrf.mxu1  ;;  %9786 = vst [vmem:[#allocation27_spill] sm:$0xff] %v7298_v24  ;;  %v6404_v40 = vld [vmem:[%s6752_s29 + $0x540] ss:$8 sps:$4 sm:$0xff]   ;;  %v2839_v35 = vmax.f32 %v2410_v43, 0.0  ;;  %v3037_v9 = vmul.f32 %v6995_v39, %v2834_v44  ;;  %v6425_v24 = vld [vmem:[%s6752_s29 + $0x584] ss:$8 sps:$4 sm:$0xff]  }
 0x180   : > { %v7306_v33 = vmax.f32 %v3338_v34, %v3146_v62  ;;  %v2944_v3 = vmul.f32 %v6995_v39, %v2741_v7  ;;  %v2835_v63 = vmax.f32 %v7159_v50, 0.0  ;;  %v2836_v29 = vmax.f32 %v7192_v2, 0.0 }
 0x181   : > { %v2021_v53 = vpop.f32.mrf.mxu0  ;;  %v2413_v18 = vpop.f32.mrf.mxu1 }
 0x182   : > { %v3147_v34 = vadd.f32 %v7008_v51, %v2944_v3  ;;  %v2742_v62 = vmax.f32 %v2021_v53, 0.0  ;;  %v2840_v7 = vmax.f32 %v2413_v18, 0.0  ;;  %v3038_v20 = vmul.f32 %v6995_v39, %v2835_v63 }
 0x183   : > { %v2023_v0 = vpop.f32.mrf.mxu0  ;;  %v2415_v49 = vpop.f32.mrf.mxu1  ;;  %v3041_v63 = vmul.f32 %v6995_v39, %v2838_v28 }
 0x184   : > { %v7329_v3 = vmax.f32 %v3341_v59, %v3147_v34  ;;  %v2945_v53 = vmul.f32 %v6995_v39, %v2742_v62  ;;  %v3043_v18 = vmul.f32 %v6995_v39, %v2840_v7  ;;  %v3039_v0 = vmul.f32 %v6995_v39, %v2836_v29 }
 0x185   : > { %v3040_v49 = vmul.f32 %v6995_v39, %v2837_v12  ;;  %v2026_v43 = vpop.f32.mrf.mxu0  ;;  %2217 = vmatmul.mubr.bf16.gmra.mxu0 %v6403_v1  ;;  %v2418_v2 = vpop.f32.mrf.mxu1  ;;  %2609 = vmatmul.mubr.bf16.gmra.mxu1 %v6404_v40  ;;  %v3042_v1 = vmul.f32 %v6995_v39, %v2839_v35  ;;  %v7353_v35 = vadd.f32 %v7008_v51, %v3037_v9  ;;  %v6413_v12 = vld [vmem:[%s6752_s29 + $0x564] ss:$8 sps:$4 sm:$0xff]  }
 0x186   : > { %v3148_v45 = vadd.f32 %v7008_v51, %v2945_v53  ;;  %v7339_v47 = vadd.f32 %v7008_v51, %v3043_v18  ;;  %v2743_v59 = vmax.f32 %v2026_v43, 0.0  ;;  %v2841_v34 = vmax.f32 %v2418_v2, 0.0  ;;  %5931 = vmatprep.mubr.msk.bf16.mxu0 %vm1609_vm1, %v6405_v21  ;;  %5980 = vmatprep.mubr.msk.bf16.mxu1 %vm1609_vm1, %v6407_v30 }
 0x187   : > { %v2028_v40 = vpop.f32.mrf.mxu0  ;;  %v2420_v29 = vpop.f32.mrf.mxu1  ;;  %v7356_v2 = vadd.f32 %v7008_v51, %v3038_v20  ;;  %v7359_v53 = vadd.f32 %v7008_v51, %v3039_v0  ;;  %v6411_v20 = vld [vmem:[%s6752_s29 + $0x254] ss:$8 sps:$4 sm:$0xff]   ;;  %v7374_v0 = vadd.f32 %v7008_v51, %v3041_v63  ;;  %v7377_v21 = vadd.f32 %v7008_v51, %v3042_v1 }
 0x188   : > { %v3325_v7 = vmax.f32 %v7151_v61, %v3148_v45  ;;  %v2946_v30 = vmul.f32 %v6995_v39, %v2743_v59  ;;  %v3044_v28 = vmul.f32 %v6995_v39, %v2841_v34  ;;  %v7362_v61 = vadd.f32 %v7008_v51, %v3040_v49  ;;  %v6409_v45 = vld [vmem:[%s6752_s29 + $0x240] ss:$8 sps:$4 sm:$0xff]   ;;  %v6410_v40 = vld [vmem:[%s6752_s29 + $0x550] ss:$8 sps:$4 sm:$0xff]  }
 0x189   : > { %v2029_v18 = vpop.f32.mrf.mxu0  ;;  %v2421_v43 = vpop.f32.mrf.mxu1 }
 0x18a   : > { %v3519_v29 = vcombine.high %v3325_v7, %v3325_v7  ;;  %v3618_v59 = vsel %vm3617_vm2, %v3325_v7, -inf  ;;  %v3149_v34 = vadd.f32 %v7008_v51, %v2946_v30  ;;  %v7369_v9 = vadd.f32 %v7008_v51, %v3044_v28 }
 0x18b   : > { %v3619_v62 = vrot.slane %v3618_v59, 4  ;;  %v2744_v49 = vmax.f32 %v2029_v18, 0.0  ;;  %v2842_v44 = vmax.f32 %v2421_v43, 0.0  ;;  %v2031_v58 = vpop.f32.mrf.mxu0  ;;  %v2423_v50 = vpop.f32.mrf.mxu1 }
 0x18c   : > { %v3625_v7 = vsel %vm3617_vm2, %v3519_v29, -inf  ;;  %v3328_v30 = vmax.f32 %v7180_v22, %v3149_v34 }
 0x18d   : > { %v3620_v41 = vmax.f32 %v3618_v59, %v3619_v62  ;;  %v3626_v27 = vrot.slane %v3625_v7, 4  ;;  %v2947_v63 = vmul.f32 %v6995_v39, %v2744_v49  ;;  %v3045_v15 = vmul.f32 %v6995_v39, %v2842_v44  ;;  %v2034_v18 = vpop.f32.mrf.mxu0  ;;  %2225 = vmatmul.mubr.bf16.gmra.mxu0 %v6409_v45  ;;  %v2426_v58 = vpop.f32.mrf.mxu1  ;;  %2617 = vmatmul.mubr.bf16.gmra.mxu1 %v6410_v40 }
 0x18e   : > { %v3520_v50 = vcombine.high %v3328_v30, %v3328_v30  ;;  %v3632_v1 = vsel %vm3617_vm2, %v3328_v30, -inf  ;;  %v2745_v43 = vmax.f32 %v2034_v18, 0.0  ;;  %v2843_v29 = vmax.f32 %v2426_v58, 0.0  ;;  %5932 = vmatprep.mubr.msk.bf16.mxu0 %vm1609_vm1, %v6411_v20  ;;  %5981 = vmatprep.mubr.msk.bf16.mxu1 %vm1609_vm1, %v6413_v12 }
 0x18f   : > { %v3621_v22 = vrot.slane %v3620_v41, 2  ;;  %v3627_v62 = vmax.f32 %v3625_v7, %v3626_v27  ;;  %v3633_v59 = vrot.slane %v3632_v1, 4  ;;  %v3150_v44 = vadd.f32 %v7008_v51, %v2947_v63  ;;  %v2036_v34 = vpop.f32.mrf.mxu0  ;;  %v2428_v45 = vpop.f32.mrf.mxu1 }
 0x190   : > { %v3639_v40 = vsel %vm3617_vm2, %v3520_v50, -inf  ;;  %v7391_v49 = vadd.f32 %v7008_v51, %v3045_v15  ;;  %v2948_v30 = vmul.f32 %v6995_v39, %v2745_v43  ;;  %v3046_v12 = vmul.f32 %v6995_v39, %v2843_v29  ;;  %v6415_v34 = vld [vmem:[%s6752_s29 + $0x250] ss:$8 sps:$4 sm:$0xff]   ;;  %v6416_v45 = vld [vmem:[%s6752_s29 + $0x560] ss:$8 sps:$4 sm:$0xff]  }
 0x191   : > { %v3622_v20 = vmax.f32 %v3620_v41, %v3621_v22  ;;  %v3628_v18 = vrot.slane %v3627_v62, 2  ;;  %v3634_v27 = vmax.f32 %v3632_v1, %v3633_v59  ;;  %v3640_v7 = vrot.slane %v3639_v40, 4  ;;  %v7395_v58 = vpop.f32.mrf.mxu0  ;;  %v7397_v63 = vpop.f32.mrf.mxu1  ;;  %v6417_v41 = vld [vmem:[%s6752_s29 + $0x264] ss:$8 sps:$4 sm:$0xff]   ;;  %v6419_v1 = vld [vmem:[%s6752_s29 + $0x574] ss:$8 sps:$4 sm:$0xff]  }
 0x192   : > { %v3331_v15 = vmax.f32 %v7210_v23, %v3150_v44  ;;  %v3151_v43 = vadd.f32 %v7008_v51, %v2948_v30  ;;  %v7406_v29 = vadd.f32 %v7008_v51, %v3046_v12 }
 0x193   : > { %v3623_v22 = vrot.slane %v3622_v20, 1  ;;  %v3629_v59 = vmax.f32 %v3627_v62, %v3628_v18  ;;  %v3635_v28 = vrot.slane %v3634_v27, 2  ;;  %v3641_v5 = vmax.f32 %v3639_v40, %v3640_v7  ;;  %v2039_v4 = vpop.f32.mrf.mxu0  ;;  %v2431_v54 = vpop.f32.mrf.mxu1 }
 0x194   : > { %v3521_v42 = vcombine.high %v3331_v15, %v3331_v15  ;;  %v3646_v23 = vsel %vm3617_vm2, %v3331_v15, -inf  ;;  %v3334_v44 = vmax.f32 %v7235_v19, %v3151_v43 }
 0x195   : > { %v3624_v50 = vmax.f32 %v3622_v20, %v3623_v22  ;;  %v3630_v12 = vrot.slane %v3629_v59, 1  ;;  %v3636_v55 = vmax.f32 %v3634_v27, %v3635_v28  ;;  %v3642_v46 = vrot.slane %v3641_v5, 2  ;;  %v7414_v52 = vpop.f32.mrf.mxu0  ;;  %2233 = vmatmul.mubr.bf16.gmra.mxu0 %v6415_v34  ;;  %v7416_v62 = vpop.f32.mrf.mxu1  ;;  %2625 = vmatmul.mubr.bf16.gmra.mxu1 %v6416_v45 }
 0x196   : > { %v3647_v54 = vrot.slane %v3646_v23, 4  ;;  %v3653_v4 = vsel %vm3617_vm2, %v3521_v42, -inf  ;;  %v3522_v40 = vcombine.high %v3334_v44, %v3334_v44  ;;  %v3660_v18 = vsel %vm3617_vm2, %v3334_v44, -inf  ;;  %5933 = vmatprep.mubr.msk.bf16.mxu0 %vm1609_vm1, %v6417_v41  ;;  %5982 = vmatprep.mubr.msk.bf16.mxu1 %vm1609_vm1, %v6419_v1 }
 0x197   : > { %v3631_v19 = vmax.f32 %v3629_v59, %v3630_v12  ;;  %v4526_v28 = vmul.f32 %v7105_v32, %v3624_v50  ;;  %v5159_v20 = vmul.f32 %v7110_v38, %v3624_v50  ;;  %v3637_v27 = vrot.slane %v3636_v55, 1  ;;  %v2044_v7 = vpop.f32.mrf.mxu0  ;;  %v2436_v34 = vpop.f32.mrf.mxu1 }
 0x198   : > { %v3643_v45 = vmax.f32 %v3641_v5, %v3642_v46  ;;  %v3648_v42 = vmax.f32 %v3646_v23, %v3647_v54  ;;  %v3654_v15 = vrot.slane %v3653_v4, 4  ;;  %v3661_v43 = vrot.slane %v3660_v18, 4  ;;  %v6421_v7 = vld [vmem:[%s6752_s29 + $0x260] ss:$8 sps:$4 sm:$0xff]   ;;  %v6422_v5 = vld [vmem:[%s6752_s29 + $0x570] ss:$8 sps:$4 sm:$0xff]  }
 0x199   : > { %v9787_v41 = vrot.slane %v7105_v32, 1  ;;  %v9788_v22 = vrot.slane %v7110_v38, 1  ;;  %v3638_v44 = vmax.f32 %v3636_v55, %v3637_v27  ;;  %v3667_v50 = vsel %vm3617_vm2, %v3522_v40, -inf  ;;  %v7429_v12 = vpop.f32.mrf.mxu0  ;;  %v7431_v30 = vpop.f32.mrf.mxu1 }
 0x19a   : > { %v3644_v46 = vrot.slane %v3643_v45, 1  ;;  %v3649_v23 = vrot.slane %v3648_v42, 2  ;;  %v3655_v54 = vmax.f32 %v3653_v4, %v3654_v15  ;;  %v3662_v34 = vmax.f32 %v3660_v18, %v3661_v43 }
 0x19b   : > { %v4527_v1 = vmul.f32 %v9787_v41, %v3631_v19  ;;  %v5160_v59 = vmul.f32 %v9788_v22, %v3631_v19  ;;  %v4528_v19 = vmul.f32 %v9789_v10, %v3638_v44  ;;  %v9790_v55 = vrot.slane %v7110_v38, 2  ;;  %v2047_v27 = vpop.f32.mrf.mxu0  ;;  %v2439_v22 = vpop.f32.mrf.mxu1 }
 0x19c   : > { %v3645_v8 = vmax.f32 %v3643_v45, %v3644_v46  ;;  %v3650_v48 = vmax.f32 %v3648_v42, %v3649_v23  ;;  %v3656_v16 = vrot.slane %v3655_v54, 2  ;;  %v3663_v14 = vrot.slane %v3662_v34, 2 }
 0x19d   : > { %v4722_v36 = vrot.slane %v4527_v1, 7  ;;  %v5355_v41 = vrot.slane %v5160_v59, 7  ;;  %v5161_v40 = vmul.f32 %v9790_v55, %v3638_v44  ;;  %v4725_v15 = vrot.slane %v4528_v19, 6  ;;  %v7443_v1 = vpop.f32.mrf.mxu0  ;;  %2241 = vmatmul.mubr.bf16.gmra.mxu0 %v6421_v7  ;;  %v7445_v10 = vpop.f32.mrf.mxu1  ;;  %2633 = vmatmul.mubr.bf16.gmra.mxu1 %v6422_v5 }
 0x19e   : > { %v9791_v59 = vrot.slane %v7105_v32, 3  ;;  %v9792_v45 = vrot.slane %v7110_v38, 3  ;;  %v3651_v46 = vrot.slane %v3650_v48, 1  ;;  %5934 = vmatprep.mubr.msk.bf16.mxu0 %vm1609_vm1, %v6423_v37  ;;  %5983 = vmatprep.mubr.msk.bf16.mxu1 %vm1609_vm1, %v6425_v24  ;;  %v3664_v7 = vmax.f32 %v3662_v34, %v3663_v14  ;;  %v6428_v14 = vld [vmem:[%s6752_s29 + $0x580] ss:$8 sps:$4 sm:$0xff]  }
 0x19f   : > { %v4724_v4 = vsel %vm4723_vm3, %v4722_v36, %v4526_v28  ;;  %v5356_v18 = vsel %vm4723_vm3, %v5355_v41, %v5159_v20  ;;  %v5357_v43 = vrot.slane %v5161_v40, 6  ;;  %v3657_v36 = vmax.f32 %v3655_v54, %v3656_v16  ;;  %v2052_v23 = vpop.f32.mrf.mxu0  ;;  %v2444_v41 = vpop.f32.mrf.mxu1  ;;  %v6427_v54 = vld [vmem:[%s6752_s29 + $0x270] ss:$8 sps:$4 sm:$0xff]  }
 0x1a0   : > { %v4529_v44 = vmul.f32 %v9791_v59, %v3645_v8  ;;  %v5162_v42 = vmul.f32 %v9792_v45, %v3645_v8  ;;  %v4727_v28 = vsel %vm4726_vm4, %v4725_v15, %v4724_v4  ;;  %v3668_v5 = vrot.slane %v3667_v50, 4  ;;  %v6429_v59 = vld [vmem:[%s6752_s29 + $0x284] ss:$8 sps:$4 sm:$0xff]  }
 0x1a1   : > { %v5358_v20 = vsel %vm4726_vm4, %v5357_v43, %v5356_v18  ;;  %v3652_v55 = vmax.f32 %v3650_v48, %v3651_v46  ;;  %v3658_v16 = vrot.slane %v3657_v36, 1  ;;  %v3665_v40 = vrot.slane %v3664_v7, 1  ;;  %v7458_v22 = vpop.f32.mrf.mxu0  ;;  %v7460_v4 = vpop.f32.mrf.mxu1 }
 0x1a2   : > { %v4728_v19 = vrot.slane %v4529_v44, 5  ;;  %v5359_v8 = vrot.slane %v5162_v42, 5  ;;  %v3669_v37 = vmax.f32 %v3667_v50, %v3668_v5  ;;  %v2746_v24 = vmax.f32 %v7395_v58, 0.0  ;;  %v6431_v44 = vld [vmem:[%s6752_s29 + $0x594] ss:$8 sps:$4 sm:$0xff]  }
 0x1a3   : > { %v2844_v27 = vmax.f32 %v7397_v63, 0.0  ;;  %v3659_v15 = vmax.f32 %v3657_v36, %v3658_v16  ;;  %v9793_v48 = vrot.slane %v7105_v32, 4  ;;  %v9794_v50 = vrot.slane %v7110_v38, 4  ;;  %v2055_v46 = vpop.f32.mrf.mxu0  ;;  %v2447_v5 = vpop.f32.mrf.mxu1 }
 0x1a4   : > { %v4730_v34 = vsel %vm4729_vm5, %v4728_v19, %v4727_v28  ;;  %v5360_v18 = vsel %vm4729_vm5, %v5359_v8, %v5358_v20  ;;  %v3666_v45 = vmax.f32 %v3664_v7, %v3665_v40  ;;  %v3670_v63 = vrot.slane %v3669_v37, 2 }
 0x1a5   : > { %v4530_v43 = vmul.f32 %v9793_v48, %v3652_v55  ;;  %v5163_v58 = vmul.f32 %v9794_v50, %v3652_v55  ;;  %v2949_v42 = vmul.f32 %v6995_v39, %v2746_v24  ;;  %v9795_v23 = vrot.slane %v7105_v32, 5  ;;  %v7481_v48 = vpop.f32.mrf.mxu0  ;;  %2249 = vmatmul.mubr.bf16.gmra.mxu0 %v6427_v54  ;;  %v7483_v50 = vpop.f32.mrf.mxu1  ;;  %2641 = vmatmul.mubr.bf16.gmra.mxu1 %v6428_v14 }
 0x1a6   : > { %v9796_v36 = vrot.slane %v7110_v38, 5  ;;  %v3047_v19 = vmul.f32 %v6995_v39, %v2844_v27  ;;  %v3671_v16 = vmax.f32 %v3669_v37, %v3670_v63  ;;  %v9797_v55 = vrot.slane %v7105_v32, 6  ;;  %5935 = vmatprep.mubr.msk.bf16.mxu0 %vm1609_vm1, %v6429_v59  ;;  %5984 = vmatprep.mubr.msk.bf16.mxu1 %vm1609_vm1, %v6431_v44 }
 0x1a7   : > { %v4531_v28 = vmul.f32 %v9795_v23, %v3659_v15  ;;  %v4731_v41 = vrot.slane %v4530_v43, 4  ;;  %v5361_v8 = vrot.slane %v5163_v58, 4  ;;  %v9798_v40 = vrot.slane %v7110_v38, 6  ;;  %v2452_v63 = vpop.f32.mrf.mxu1 }
 0x1a8   : > { %v5164_v20 = vmul.f32 %v9796_v36, %v3659_v15  ;;  %v4532_v7 = vmul.f32 %v9797_v55, %v3666_v45  ;;  %v3152_v39 = vadd.f32 %v7008_v51, %v2949_v42  ;;  %v3672_v27 = vrot.slane %v3671_v16, 1  ;;  %v6433_v36 = vld [vmem:[%s6752_s29 + $0x280] ss:$8 sps:$4 sm:$0xff]  }
 0x1a9   : > { %v5165_v24 = vmul.f32 %v9798_v40, %v3666_v45  ;;  %v4733_v43 = vsel %vm4732_vm6, %v4731_v41, %v4730_v34  ;;  %v4734_v15 = vrot.slane %v4531_v28, 3  ;;  %v5362_v37 = vsel %vm4732_vm6, %v5361_v8, %v5360_v18  ;;  %v2060_v45 = vpop.f32.mrf.mxu0  ;;  %v7501_v41 = vpop.f32.mrf.mxu1 }
 0x1aa   : > { %v5363_v46 = vrot.slane %v5164_v20, 3  ;;  %v4737_v58 = vrot.slane %v4532_v7, 2  ;;  %v3337_v42 = vmax.f32 %v7275_v26, %v3152_v39  ;;  %v7494_v59 = vadd.f32 %v7008_v51, %v3047_v19  ;;  %v6434_v20 = vld [vmem:[%s6752_s29 + $0x590] ss:$8 sps:$4 sm:$0xff]  }
 0x1ab   : > { %v5365_v54 = vrot.slane %v5165_v24, 2  ;;  %v4736_v14 = vsel %vm4735_vm7, %v4734_v15, %v4733_v43  ;;  %v3673_v44 = vmax.f32 %v3671_v16, %v3672_v27  ;;  %v2747_v23 = vmax.f32 %v7414_v52, 0.0  ;;  %v7499_v28 = vpop.f32.mrf.mxu0  ;;  %v6435_v16 = vld [vmem:[%s6752_s29 + $0x294] ss:$8 sps:$4 sm:$0xff]   ;;  %v7517_v43 = vld [vmem:[%s9720_s2] ss:$0 sm:$0xff]  ;;  %v2455_v39 = vpop.f32.mrf.mxu1 }
 0x1ac   : > { %v5364_v34 = vsel %vm4735_vm7, %v5363_v46, %v5362_v37  ;;  %v4739_v18 = vsel %vm4738_vm8, %v4737_v58, %v4736_v14  ;;  %v3523_v8 = vcombine.high %v3337_v42, %v3337_v42  ;;  %v3674_v26 = vsel %vm3617_vm2, %v3337_v42, -inf  ;;  %v6437_v37 = vld [vmem:[%s6752_s29 + $0x5a4] ss:$8 sps:$4 sm:$0xff]   ;;  %v7532_v42 = vld [vmem:[%s9721_s3] ss:$0 sm:$0xff] }
 0x1ad   : > { %v5366_v5 = vsel %vm4738_vm8, %v5365_v54, %v5364_v34  ;;  %v2845_v19 = vmax.f32 %v7416_v62, 0.0  ;;  %v9799_v55 = vrot.slane %v7105_v32, 7  ;;  %v9800_v52 = vrot.slane %v7110_v38, 7  ;;  %v2063_v46 = vpop.f32.mrf.mxu0  ;;  %2257 = vmatmul.mubr.bf16.gmra.mxu0 %v6433_v36  ;;  %v7527_v34 = vpop.f32.mrf.mxu1  ;;  %2649 = vmatmul.mubr.bf16.gmra.mxu1 %v6434_v20 }
 0x1ae   : > { %v3675_v24 = vrot.slane %v3674_v26, 4  ;;  %v2950_v15 = vmul.f32 %v7517_v43, %v2747_v23  ;;  %v3681_v62 = vsel %vm3617_vm2, %v3523_v8, -inf  ;;  %v2748_v32 = vmax.f32 %v7429_v12, 0.0  ;;  %5936 = vmatprep.mubr.msk.bf16.mxu0 %vm1609_vm1, %v6435_v16  ;;  %5985 = vmatprep.mubr.msk.bf16.mxu1 %vm1609_vm1, %v6437_v37 }
 0x1af   : > { %v4533_v7 = vmul.f32 %v9799_v55, %v3673_v44  ;;  %v5166_v40 = vmul.f32 %v9800_v52, %v3673_v44  ;;  %v3048_v27 = vmul.f32 %v7517_v43, %v2845_v19  ;;  %v2846_v38 = vmax.f32 %v7431_v30, 0.0  ;;  %v7525_v14 = vpop.f32.mrf.mxu0  ;;  %v2460_v55 = vpop.f32.mrf.mxu1 }
 0x1b0   : > { %v3676_v45 = vmax.f32 %v3674_v26, %v3675_v24  ;;  %v3682_v63 = vrot.slane %v3681_v62, 4  ;;  %v3153_v44 = vadd.f32 %v7532_v42, %v2950_v15  ;;  %v2951_v12 = vmul.f32 %v7517_v43, %v2748_v32 }
 0x1b1   : > { %v4740_v58 = vrot.slane %v4533_v7, 1  ;;  %v5367_v54 = vrot.slane %v5166_v40, 1  ;;  %v7536_v30 = vadd.f32 %v7532_v42, %v3048_v27  ;;  %v3049_v23 = vmul.f32 %v7517_v43, %v2846_v38  ;;  %v2068_v19 = vpop.f32.mrf.mxu0  ;;  %v7559_v39 = vpop.f32.mrf.mxu1 }
 0x1b2   : > { %v3677_v8 = vrot.slane %v3676_v45, 2  ;;  %v3683_v26 = vmax.f32 %v3681_v62, %v3682_v63  ;;  %v3340_v7 = vmax.f32 %v7306_v33, %v3153_v44  ;;  %v2847_v15 = vmax.f32 %v7445_v10, 0.0  ;;  %v6440_v33 = vld [vmem:[%s6752_s29 + $0x5a0] ss:$8 sps:$4 sm:$0xff]  }
 0x1b3   : > { %v7542_v36 = vsel %vm4741_vm9, %v4740_v58, %v4739_v18  ;;  %v7545_v20 = vsel %vm4741_vm9, %v5367_v54, %v5366_v5  ;;  %v3154_v18 = vadd.f32 %v7532_v42, %v2951_v12  ;;  %v7553_v16 = vadd.f32 %v7532_v42, %v3049_v23  ;;  %v6439_v5 = vld [vmem:[%s6752_s29 + $0x290] ss:$8 sps:$4 sm:$0xff]   ;;  %v7557_v46 = vpop.f32.mrf.mxu0  ;;  %v6441_v58 = vld [vmem:[%s6752_s29 + $0x2a4] ss:$8 sps:$4 sm:$0xff]   ;;  %v6443_v54 = vld [vmem:[%s6752_s29 + $0x5b4] ss:$8 sps:$4 sm:$0xff]   ;;  %v2463_v23 = vpop.f32.mrf.mxu1 }
 0x1b4   : > { %9801 = vst [vmem:[#allocation28_spill] sm:$0xff] %v7542_v36  ;;  %9802 = vst [vmem:[#allocation29_spill] sm:$0xff] %v7545_v20  ;;  %v3678_v40 = vmax.f32 %v3676_v45, %v3677_v8  ;;  %v3684_v24 = vrot.slane %v3683_v26, 2  ;;  %v3524_v62 = vcombine.high %v3340_v7, %v3340_v7  ;;  %v3688_v27 = vsel %vm3617_vm2, %v3340_v7, -inf  ;;  %v6476_v36 = vld [vmem:[%s6752_s29 + $0x600] ss:$8 sps:$4 sm:$0xff]  }
 0x1b5   : > { %v3343_v32 = vmax.f32 %v7329_v3, %v3154_v18  ;;  %v3689_v10 = vrot.slane %v3688_v27, 4  ;;  %v2749_v44 = vmax.f32 %v7443_v1, 0.0  ;;  %v2071_v12 = vpop.f32.mrf.mxu0  ;;  %v3050_v7 = vmul.f32 %v7517_v43, %v2847_v15  ;;  %2265 = vmatmul.mubr.bf16.gmra.mxu0 %v6439_v5  ;;  %2657 = vmatmul.mubr.bf16.gmra.mxu1 %v6440_v33 }
 0x1b6   : > { %v3679_v45 = vrot.slane %v3678_v40, 1  ;;  %v3685_v63 = vmax.f32 %v3683_v26, %v3684_v24  ;;  %v3695_v8 = vsel %vm3617_vm2, %v3524_v62, -inf  ;;  %v7575_v26 = vpop.f32.mrf.mxu1  ;;  %5937 = vmatprep.mubr.msk.bf16.mxu0 %vm1609_vm1, %v6441_v58  ;;  %5986 = vmatprep.mubr.msk.bf16.mxu1 %vm1609_vm1, %v6443_v54  ;;  %v9803_v58 = vmax.f32 %v7313_v11, %v7339_v47 }
 0x1b7   : > { %v3525_v19 = vcombine.high %v3343_v32, %v3343_v32  ;;  %v3702_v55 = vsel %vm3617_vm2, %v3343_v32, -inf  ;;  %v3690_v37 = vmax.f32 %v3688_v27, %v3689_v10  ;;  %v3696_v38 = vrot.slane %v3695_v8, 4  ;;  %v7573_v52 = vpop.f32.mrf.mxu0 }
 0x1b8   : > { %v3680_v3 = vmax.f32 %v3678_v40, %v3679_v45  ;;  %v3686_v18 = vrot.slane %v3685_v63, 1  ;;  %v3703_v1 = vrot.slane %v3702_v55, 4  ;;  %v3253_v62 = vadd.f32 %v7532_v42, %v3050_v7  ;;  %v2468_v33 = vpop.f32.mrf.mxu1 }
 0x1b9   : > { %v3709_v24 = vsel %vm3617_vm2, %v3525_v19, -inf  ;;  %v3691_v27 = vrot.slane %v3690_v37, 2  ;;  %v7583_v5 = vmul.f32 %v7517_v43, %v2749_v44  ;;  %v2076_v32 = vpop.f32.mrf.mxu0  ;;  %v3697_v10 = vmax.f32 %v3695_v8, %v3696_v38  ;;  %v6445_v8 = vld [vmem:[%s6752_s29 + $0x2a0] ss:$8 sps:$4 sm:$0xff]  }
 0x1ba   : > { %v3687_v15 = vmax.f32 %v3685_v63, %v3686_v18  ;;  %v3704_v12 = vmax.f32 %v3702_v55, %v3703_v1  ;;  %v3710_v23 = vrot.slane %v3709_v24, 4  ;;  %v7589_v54 = vmax.f32 %v9803_v58, %v3253_v62  ;;  %v7598_v38 = vpop.f32.mrf.mxu1  ;;  %v6446_v55 = vld [vmem:[%s6752_s29 + $0x5b0] ss:$8 sps:$4 sm:$0xff]   ;;  %v6447_v58 = vld [vmem:[%s6752_s29 + $0x2b4] ss:$8 sps:$4 sm:$0xff]  }
 0x1bb   : > { %v4534_v63 = vmul.f32 %v7154_v31, %v3680_v3  ;;  %v9804_v19 = vrot.slane %v7154_v31, 1  ;;  %v9805_v44 = vrot.slane %v7161_v56, 1  ;;  %v3692_v32 = vmax.f32 %v3690_v37, %v3691_v27  ;;  %v7596_v33 = vpop.f32.mrf.mxu0  ;;  %v6449_v27 = vld [vmem:[%s6752_s29 + $0x5c4] ss:$8 sps:$4 sm:$0xff]  }
 0x1bc   : > { %v3698_v1 = vrot.slane %v3697_v10, 2  ;;  %v3705_v11 = vrot.slane %v3704_v12, 2  ;;  %v3711_v47 = vmax.f32 %v3709_v24, %v3710_v23  ;;  %v2848_v62 = vmax.f32 %v7460_v4, 0.0  ;;  %v2471_v37 = vpop.f32.mrf.mxu1 }
 0x1bd   : > { %v4535_v7 = vmul.f32 %v9804_v19, %v3687_v15  ;;  %v5168_v18 = vmul.f32 %v9805_v44, %v3687_v15  ;;  %v5167_v19 = vmul.f32 %v7161_v56, %v3680_v3  ;;  %v3693_v51 = vrot.slane %v3692_v32, 1  ;;  %v2079_v15 = vpop.f32.mrf.mxu0  ;;  %2273 = vmatmul.mubr.bf16.gmra.mxu0 %v6445_v8  ;;  %2665 = vmatmul.mubr.bf16.gmra.mxu1 %v6446_v55 }
 0x1be   : > { %v3699_v44 = vmax.f32 %v3697_v10, %v3698_v1  ;;  %v3706_v13 = vmax.f32 %v3704_v12, %v3705_v11  ;;  %v3712_v25 = vrot.slane %v3711_v47, 2  ;;  %v3051_v17 = vmul.f32 %v7517_v43, %v2848_v62  ;;  %v7612_v3 = vpop.f32.mrf.mxu1  ;;  %5938 = vmatprep.mubr.msk.bf16.mxu0 %vm1609_vm1, %v6447_v58  ;;  %5987 = vmatprep.mubr.msk.bf16.mxu1 %vm1609_vm1, %v6449_v27  ;;  %v6451_v27 = vld [vmem:[%s6752_s29 + $0x2b0] ss:$8 sps:$4 sm:$0xff]  }
 0x1bf   : > { %v4743_v45 = vrot.slane %v4535_v7, 7  ;;  %v5369_v40 = vrot.slane %v5168_v18, 7  ;;  %v3694_v23 = vmax.f32 %v3692_v32, %v3693_v51  ;;  %v2750_v4 = vmax.f32 %v7458_v22, 0.0  ;;  %v7610_v7 = vpop.f32.mrf.mxu0 }
 0x1c0   : > { %v3700_v18 = vrot.slane %v3699_v44, 1  ;;  %v3707_v15 = vrot.slane %v3706_v13, 1  ;;  %v3713_v37 = vmax.f32 %v3711_v47, %v3712_v25  ;;  %v3254_v10 = vadd.f32 %v7532_v42, %v3051_v17  ;;  %v2476_v8 = vpop.f32.mrf.mxu1 }
 0x1c1   : > { %v4744_v20 = vsel %vm4723_vm3, %v4743_v45, %v4534_v63  ;;  %v5370_v24 = vsel %vm4723_vm3, %v5369_v40, %v5167_v19  ;;  %v9806_v45 = vrot.slane %v7154_v31, 2  ;;  %v9807_v51 = vrot.slane %v7161_v56, 2  ;;  %v2084_v32 = vpop.f32.mrf.mxu0 }
 0x1c2   : > { %v2751_v22 = vmax.f32 %v7481_v48, 0.0  ;;  %v2849_v63 = vmax.f32 %v7483_v50, 0.0  ;;  %v3701_v25 = vmax.f32 %v3699_v44, %v3700_v18  ;;  %v3708_v17 = vmax.f32 %v3706_v13, %v3707_v15  ;;  %v7632_v19 = vpop.f32.mrf.mxu1 }
 0x1c3   : > { %v4536_v12 = vmul.f32 %v9806_v45, %v3694_v23  ;;  %v5169_v40 = vmul.f32 %v9807_v51, %v3694_v23  ;;  %v3714_v55 = vrot.slane %v3713_v37, 1  ;;  %v9808_v1 = vmax.f32 %v7353_v35, %v7369_v9  ;;  %v7630_v58 = vpop.f32.mrf.mxu0 }
 0x1c4   : > { %v2953_v48 = vmul.f32 %v7517_v43, %v2750_v4  ;;  %v3052_v50 = vmul.f32 %v7517_v43, %v2849_v63  ;;  %v9809_v13 = vrot.slane %v7154_v31, 3  ;;  %v9810_v23 = vrot.slane %v7161_v56, 3  ;;  %v6453_v4 = vld [vmem:[%s6752_s29 + $0x2c4] ss:$8 sps:$4 sm:$0xff]   ;;  %v2479_v8 = vpop.f32.mrf.mxu1 }
 0x1c5   : > { %v7626_v11 = vmax.f32 %v9808_v1, %v3254_v10  ;;  %v4745_v47 = vrot.slane %v4536_v12, 6  ;;  %v5371_v62 = vrot.slane %v5169_v40, 6  ;;  %v3715_v9 = vmax.f32 %v3713_v37, %v3714_v55  ;;  %v6452_v10 = vld [vmem:[%s6752_s29 + $0x5c0] ss:$8 sps:$4 sm:$0xff]   ;;  %v2087_v32 = vpop.f32.mrf.mxu0  ;;  %v6455_v1 = vld [vmem:[%s6752_s29 + $0x5d4] ss:$8 sps:$4 sm:$0xff]   ;;  %2281 = vmatmul.mubr.bf16.gmra.mxu0 %v6451_v27 }
 0x1c6   : > { %v4537_v44 = vmul.f32 %v9809_v13, %v3701_v25  ;;  %v5170_v35 = vmul.f32 %v9810_v23, %v3701_v25  ;;  %v9811_v18 = vrot.slane %v7154_v31, 4  ;;  %v9812_v51 = vrot.slane %v7161_v56, 4  ;;  %2673 = vmatmul.mubr.bf16.gmra.mxu1 %v6452_v10  ;;  %5939 = vmatprep.mubr.msk.bf16.mxu0 %vm1609_vm1, %v6453_v4 }
 0x1c7   : > { %v4746_v45 = vsel %vm4726_vm4, %v4745_v47, %v4744_v20  ;;  %v5372_v12 = vsel %vm4726_vm4, %v5371_v62, %v5370_v24  ;;  %v2954_v63 = vmul.f32 %v7517_v43, %v2751_v22  ;;  %v9813_v55 = vrot.slane %v7154_v31, 5  ;;  %v7655_v62 = vpop.f32.mrf.mxu0  ;;  %v7657_v22 = vpop.f32.mrf.mxu1  ;;  %5988 = vmatprep.mubr.msk.bf16.mxu1 %vm1609_vm1, %v6455_v1 }
 0x1c8   : > { %v4538_v15 = vmul.f32 %v9811_v18, %v3708_v17  ;;  %v5171_v40 = vmul.f32 %v9812_v51, %v3708_v17  ;;  %v4747_v25 = vrot.slane %v4537_v44, 5  ;;  %v5373_v37 = vrot.slane %v5170_v35, 5  ;;  %v6059_v51 = vld [vmem:[%s6754_s28 + $0x20] sm:$0xff]  }
 0x1c9   : > { %v4539_v13 = vmul.f32 %v9813_v55, %v3715_v9  ;;  %v9814_v18 = vrot.slane %v7161_v56, 5  ;;  %v3255_v24 = vadd.f32 %v7532_v42, %v3052_v50  ;;  %v2752_v17 = vmax.f32 %v7499_v28, 0.0  ;;  %v2484_v8 = vpop.f32.mrf.mxu1 }
 0x1ca   : > { %v4749_v23 = vrot.slane %v4538_v15, 4  ;;  %v5375_v47 = vrot.slane %v5171_v40, 4  ;;  %v4748_v44 = vsel %vm4729_vm5, %v4747_v25, %v4746_v45  ;;  %v5374_v35 = vsel %vm4729_vm5, %v5373_v37, %v5372_v12  ;;  %v2092_v45 = vpop.f32.mrf.mxu0 }
 0x1cb   : > { %v5172_v20 = vmul.f32 %v9814_v18, %v3715_v9  ;;  %v4751_v32 = vrot.slane %v4539_v13, 3  ;;  %v2850_v15 = vmax.f32 %v7501_v41, 0.0  ;;  %v9815_v27 = vmax.f32 %v7356_v2, %v7391_v49  ;;  %v7687_v55 = vpop.f32.mrf.mxu1  ;;  %v6457_v13 = vld [vmem:[%s6752_s29 + $0x2c0] ss:$8 sps:$4 sm:$0xff]  }
 0x1cc   : > { %v4750_v50 = vsel %vm4732_vm6, %v4749_v23, %v4748_v44  ;;  %v5376_v28 = vsel %vm4732_vm6, %v5375_v47, %v5374_v35  ;;  %v2955_v10 = vmul.f32 %v7517_v43, %v2752_v17  ;;  %v7677_v12 = vunpack.c.l.bf16 %v6059_v51  ;;  %v7685_v37 = vpop.f32.mrf.mxu0 }
 0x1cd   : > { %v5377_v9 = vrot.slane %v5172_v20, 3  ;;  %v7669_v40 = vmax.f32 %v9815_v27, %v3255_v24  ;;  %v7673_v41 = vsel %vm4735_vm7, %v4751_v32, %v4750_v50  ;;  %v3053_v4 = vmul.f32 %v7517_v43, %v2850_v15  ;;  %v2487_v44 = vpop.f32.mrf.mxu1  ;;  %2289 = vmatmul.mubr.bf16.gmra.mxu0 %v6457_v13 }
 0x1ce   : > { %9816 = vst [vmem:[#allocation30_spill] sm:$0xff] %v7673_v41  ;;  %v2753_v2 = vmax.f32 %v7525_v14, 0.0  ;;  %v2851_v49 = vmax.f32 %v7527_v34, 0.0  ;;  %v2852_v1 = vmax.f32 %v7559_v39, 0.0  ;;  %v7692_v23 = vadd.f32 %v7532_v42, %v7583_v5  ;;  %v6458_v34 = vld [vmem:[%s6752_s29 + $0x5d0] ss:$8 sps:$4 sm:$0xff]   ;;  %v2095_v51 = vpop.f32.mrf.mxu0 }
 0x1cf   : > { %v7680_v25 = vsel %vm4735_vm7, %v5377_v9, %v5376_v28  ;;  %v7695_v18 = vadd.f32 %v7532_v42, %v2953_v48  ;;  %v3256_v20 = vadd.f32 %v7532_v42, %v3053_v4  ;;  %v7699_v14 = vunpack.c.h.bf16 %v7264_v6  ;;  %v6459_v39 = vld [vmem:[%s6752_s29 + $0x2d4] ss:$8 sps:$4 sm:$0xff]   ;;  %v6461_v48 = vld [vmem:[%s6752_s29 + $0x5e4] ss:$8 sps:$4 sm:$0xff]   ;;  %v7728_v45 = vpop.f32.mrf.mxu1  ;;  %2681 = vmatmul.mubr.bf16.gmra.mxu1 %v6458_v34  ;;  %v6464_v44 = vld [vmem:[%s6752_s29 + $0x5e0] ss:$8 sps:$4 sm:$0xff]  }
 0x1d0   : > { %9817 = vst [vmem:[#allocation31_spill] sm:$0xff] %v7680_v25  ;;  %v7704_v47 = vadd.f32 %v7532_v42, %v2954_v63  ;;  %v3054_v24 = vmul.f32 %v7517_v43, %v2851_v49  ;;  %v3055_v17 = vmul.f32 %v7517_v43, %v2852_v1  ;;  %v2853_v5 = vmax.f32 %v7575_v26, 0.0  ;;  %v7726_v27 = vpop.f32.mrf.mxu0  ;;  %5940 = vmatprep.mubr.msk.bf16.mxu0 %vm1609_vm1, %v6459_v39 }
 0x1d1   : > { %v7711_v35 = vadd.f32 %v7532_v42, %v2955_v10  ;;  %v9818_v6 = vmax.f32 %v7359_v53, %v7406_v29  ;;  %v2754_v63 = vmax.f32 %v7557_v46, 0.0  ;;  %v2756_v15 = vmax.f32 %v7596_v33, 0.0  ;;  %5989 = vmatprep.mubr.msk.bf16.mxu1 %vm1609_vm1, %v6461_v48 }
 0x1d2   : > { %v7721_v50 = vmul.f32 %v7517_v43, %v2753_v2  ;;  %v3257_v26 = vadd.f32 %v7532_v42, %v3054_v24  ;;  %v3258_v28 = vadd.f32 %v7532_v42, %v3055_v17  ;;  %v3056_v9 = vmul.f32 %v7517_v43, %v2853_v5  ;;  %v2100_v1 = vpop.f32.mrf.mxu0  ;;  %v6463_v5 = vld [vmem:[%s6752_s29 + $0x2d0] ss:$8 sps:$4 sm:$0xff]  }
 0x1d3   : > { %v7716_v32 = vmax.f32 %v9818_v6, %v3256_v20  ;;  %v2959_v29 = vmul.f32 %v7517_v43, %v2756_v15  ;;  %v2854_v46 = vmax.f32 %v7598_v38, 0.0  ;;  %v2757_v33 = vmax.f32 %v7610_v7, 0.0  ;;  %v2492_v7 = vpop.f32.mrf.mxu1 }
 0x1d4   : > { %v9819_v8 = vmax.f32 %v7362_v61, %v7494_v59  ;;  %v9820_v4 = vmax.f32 %v7374_v0, %v7536_v30  ;;  %v3259_v49 = vadd.f32 %v7532_v42, %v3056_v9  ;;  %v2855_v38 = vmax.f32 %v7612_v3, 0.0  ;;  %v7762_v24 = vpop.f32.mrf.mxu0  ;;  %v6467_v9 = vld [vmem:[%s6752_s29 + $0x5f4] ss:$8 sps:$4 sm:$0xff]  }
 0x1d5   : > { %v7749_v13 = vadd.f32 %v7532_v42, %v2959_v29  ;;  %v3057_v61 = vmul.f32 %v7517_v43, %v2854_v46  ;;  %v2960_v0 = vmul.f32 %v7517_v43, %v2757_v33  ;;  %v2758_v59 = vmax.f32 %v7630_v58, 0.0  ;;  %v7764_v17 = vpop.f32.mrf.mxu1  ;;  %2297 = vmatmul.mubr.bf16.gmra.mxu0 %v6463_v5 }
 0x1d6   : > { %v7738_v10 = vmax.f32 %v9819_v8, %v3257_v26  ;;  %v7743_v2 = vmax.f32 %v9820_v4, %v3258_v28  ;;  %v9821_v30 = vmax.f32 %v7377_v21, %v7553_v16  ;;  %v3058_v3 = vmul.f32 %v7517_v43, %v2855_v38  ;;  %v2103_v26 = vpop.f32.mrf.mxu0 }
 0x1d7   : > { %v2856_v34 = vmax.f32 %v7632_v19, 0.0  ;;  %v2759_v39 = vmax.f32 %v7655_v62, 0.0  ;;  %v3260_v51 = vadd.f32 %v7532_v42, %v3057_v61  ;;  %v7771_v21 = vadd.f32 %v7532_v42, %v2960_v0  ;;  %v6465_v19 = vld [vmem:[%s6752_s29 + $0x2e4] ss:$8 sps:$4 sm:$0xff]   ;;  %v2495_v28 = vpop.f32.mrf.mxu1  ;;  %2689 = vmatmul.mubr.bf16.gmra.mxu1 %v6464_v44 }
 0x1d8   : > { %v7757_v20 = vmax.f32 %v9821_v30, %v3259_v49  ;;  %v2961_v16 = vmul.f32 %v7517_v43, %v2758_v59  ;;  %v3261_v62 = vadd.f32 %v7532_v42, %v3058_v3  ;;  %v2857_v15 = vmax.f32 %v7657_v22, 0.0  ;;  %v7796_v1 = vpop.f32.mrf.mxu0  ;;  %5941 = vmatprep.mubr.msk.bf16.mxu0 %vm1609_vm1, %v6465_v19  ;;  %5990 = vmatprep.mubr.msk.bf16.mxu1 %vm1609_vm1, %v6467_v9 }
 0x1d9   : > { %v3059_v48 = vmul.f32 %v7517_v43, %v2856_v34  ;;  %v2962_v6 = vmul.f32 %v7517_v43, %v2759_v39  ;;  %v7782_v29 = vmul.f32 %v7517_v43, %v2754_v63  ;;  %v3409_v46 = vmax.f32 %v7589_v54, %v3260_v51  ;;  %v7798_v63 = vpop.f32.mrf.mxu1 }
 0x1da   : > { %v7788_v8 = vadd.f32 %v7532_v42, %v2961_v16  ;;  %v3412_v4 = vmax.f32 %v7626_v11, %v3261_v62  ;;  %v3060_v38 = vmul.f32 %v7517_v43, %v2857_v15  ;;  %v2760_v11 = vmax.f32 %v7685_v37, 0.0  ;;  %v2108_v34 = vpop.f32.mrf.mxu0  ;;  %v6469_v15 = vld [vmem:[%s6752_s29 + $0x2e0] ss:$8 sps:$4 sm:$0xff]  }
 0x1db   : > { %v3262_v49 = vadd.f32 %v7532_v42, %v3059_v48  ;;  %v7793_v22 = vadd.f32 %v7532_v42, %v2962_v6  ;;  %v3547_v54 = vcombine.high %v3409_v46, %v3409_v46  ;;  %v4010_v7 = vsel %vm3617_vm2, %v3409_v46, -inf  ;;  %v2500_v39 = vpop.f32.mrf.mxu1 }
 0x1dc   : > { %v4011_v0 = vrot.slane %v4010_v7, 4  ;;  %v3548_v59 = vcombine.high %v3412_v4, %v3412_v4  ;;  %v4024_v30 = vsel %vm3617_vm2, %v3412_v4, -inf  ;;  %v3263_v16 = vadd.f32 %v7532_v42, %v3060_v38  ;;  %v6470_v4 = vld [vmem:[%s6752_s29 + $0x5f0] ss:$8 sps:$4 sm:$0xff]   ;;  %v6473_v39 = vld [vmem:[%s6752_s29 + $0x604] ss:$8 sps:$4 sm:$0xff]  }
 0x1dd   : > { %9822 = vst [vmem:[#allocation32_spill] sm:$0xff] %v7793_v22  ;;  %v3415_v3 = vmax.f32 %v7669_v40, %v3262_v49  ;;  %v4017_v5 = vsel %vm3617_vm2, %v3547_v54, -inf  ;;  %v4025_v51 = vrot.slane %v4024_v30, 4  ;;  %v7813_v40 = vpop.f32.mrf.mxu0  ;;  %v7815_v6 = vpop.f32.mrf.mxu1  ;;  %v6471_v49 = vld [vmem:[%s6752_s29 + $0x2f4] ss:$8 sps:$4 sm:$0xff]   ;;  %v7828_v37 = vadd.f32 %v7532_v42, %v7721_v50  ;;  %2305 = vmatmul.mubr.bf16.gmra.mxu0 %v6469_v15 }
 0x1de   : > { %v4012_v44 = vmax.f32 %v4010_v7, %v4011_v0  ;;  %v4018_v19 = vrot.slane %v4017_v5, 4  ;;  %v4031_v62 = vsel %vm3617_vm2, %v3548_v59, -inf  ;;  %v7820_v46 = vmax.f32 %v7716_v32, %v3263_v16  ;;  %5942 = vmatprep.mubr.msk.bf16.mxu0 %vm1609_vm1, %v6471_v49 }
 0x1df   : > { %v3549_v48 = vcombine.high %v3415_v3, %v3415_v3  ;;  %v4026_v26 = vmax.f32 %v4024_v30, %v4025_v51  ;;  %v4032_v28 = vrot.slane %v4031_v62, 4  ;;  %v4038_v9 = vsel %vm3617_vm2, %v3415_v3, -inf  ;;  %v2111_v59 = vpop.f32.mrf.mxu0  ;;  %v2503_v34 = vpop.f32.mrf.mxu1  ;;  %2697 = vmatmul.mubr.bf16.gmra.mxu1 %v6470_v4 }
 0x1e0   : > { %v4013_v38 = vrot.slane %v4012_v44, 2  ;;  %v4019_v54 = vmax.f32 %v4017_v5, %v4018_v19  ;;  %v4039_v7 = vrot.slane %v4038_v9, 4  ;;  %v4052_v33 = vsel %vm3617_vm2, %v7820_v46, -inf  ;;  %5991 = vmatprep.mubr.msk.bf16.mxu1 %vm1609_vm1, %v6473_v39 }
 0x1e1   : > { %v4045_v0 = vsel %vm3617_vm2, %v3549_v48, -inf  ;;  %v4027_v30 = vrot.slane %v4026_v26, 2  ;;  %v4033_v51 = vmax.f32 %v4031_v62, %v4032_v28  ;;  %v7832_v5 = vpop.f32.mrf.mxu0  ;;  %v7834_v19 = vpop.f32.mrf.mxu1  ;;  %v4053_v58 = vrot.slane %v4052_v33, 4 }
 0x1e2   : > { %v4046_v3 = vrot.slane %v4045_v0, 4  ;;  %v4014_v61 = vmax.f32 %v4012_v44, %v4013_v38  ;;  %v4020_v32 = vrot.slane %v4019_v54, 2  ;;  %v4040_v16 = vmax.f32 %v4038_v9, %v4039_v7 }
 0x1e3   : > { %v4028_v48 = vmax.f32 %v4026_v26, %v4027_v30  ;;  %v4034_v59 = vrot.slane %v4033_v51, 2  ;;  %v7838_v28 = vmul.f32 %v7517_v43, %v2760_v11  ;;  %v2116_v9 = vpop.f32.mrf.mxu0  ;;  %v2508_v38 = vpop.f32.mrf.mxu1  ;;  %v9823_v25 = vrot.slane %v7261_v57, 2 }
 0x1e4   : > { %v4047_v34 = vmax.f32 %v4045_v0, %v4046_v3  ;;  %v4015_v50 = vrot.slane %v4014_v61, 1  ;;  %v4021_v62 = vmax.f32 %v4019_v54, %v4020_v32  ;;  %v4041_v44 = vrot.slane %v4040_v16, 2  ;;  %v6475_v32 = vld [vmem:[%s6752_s29 + $0x2f0] ss:$8 sps:$4 sm:$0xff]  }
 0x1e5   : > { %v4029_v15 = vrot.slane %v4028_v48, 1  ;;  %v4035_v26 = vmax.f32 %v4033_v51, %v4034_v59  ;;  %v4054_v0 = vmax.f32 %v4052_v33, %v4053_v58  ;;  %v7843_v3 = vpop.f32.mrf.mxu0  ;;  %v7845_v11 = vpop.f32.mrf.mxu1  ;;  %v6477_v51 = vld [vmem:[%s6752_s29 + $0x304] ss:$8 sps:$4 sm:$0xff]   ;;  %2313 = vmatmul.mubr.bf16.gmra.mxu0 %v6475_v32 }
 0x1e6   : > { %v4048_v7 = vrot.slane %v4047_v34, 2  ;;  %v4016_v4 = vmax.f32 %v4014_v61, %v4015_v50  ;;  %v4022_v30 = vrot.slane %v4021_v62, 1  ;;  %v4042_v49 = vmax.f32 %v4040_v16, %v4041_v44  ;;  %v6479_v44 = vld [vmem:[%s6752_s29 + $0x614] ss:$8 sps:$4 sm:$0xff]   ;;  %5943 = vmatprep.mubr.msk.bf16.mxu0 %vm1609_vm1, %v6477_v51 }
 0x1e7   : > { %v4030_v9 = vmax.f32 %v4028_v48, %v4029_v15  ;;  %v4036_v39 = vrot.slane %v4035_v26, 1  ;;  %v4055_v53 = vrot.slane %v4054_v0, 2  ;;  %v2119_v16 = vpop.f32.mrf.mxu0  ;;  %v2511_v50 = vpop.f32.mrf.mxu1  ;;  %v9824_v48 = vrot.slane %v7293_v60, 2  ;;  %2705 = vmatmul.mubr.bf16.gmra.mxu1 %v6476_v36 }
 0x1e8   : > { %v4049_v38 = vmax.f32 %v4047_v34, %v4048_v7  ;;  %v4023_v59 = vmax.f32 %v4021_v62, %v4022_v30  ;;  %v4582_v58 = vmul.f32 %v7261_v57, %v4016_v4  ;;  %v5215_v33 = vmul.f32 %v7293_v60, %v4016_v4  ;;  %5992 = vmatprep.mubr.msk.bf16.mxu1 %vm1609_vm1, %v6479_v44  ;;  %v6481_v44 = vld [vmem:[%s6752_s29 + $0x300] ss:$8 sps:$4 sm:$0xff]  }
 0x1e9   : > { %v4043_v61 = vrot.slane %v4042_v49, 1  ;;  %v4037_v54 = vmax.f32 %v4035_v26, %v4036_v39  ;;  %v4584_v41 = vmul.f32 %v9823_v25, %v4030_v9  ;;  %v5217_v15 = vmul.f32 %v9824_v48, %v4030_v9  ;;  %v7861_v22 = vpop.f32.mrf.mxu0  ;;  %v7863_v16 = vpop.f32.mrf.mxu1 }
 0x1ea   : > { %v4050_v34 = vrot.slane %v4049_v38, 1  ;;  %v9825_v7 = vrot.slane %v7261_v57, 1  ;;  %v9826_v62 = vrot.slane %v7293_v60, 1  ;;  %v4056_v4 = vmax.f32 %v4054_v0, %v4055_v53 }
 0x1eb   : > { %v4044_v31 = vmax.f32 %v4042_v49, %v4043_v61  ;;  %v9827_v26 = vrot.slane %v7261_v57, 3  ;;  %v4829_v39 = vrot.slane %v4584_v41, 6  ;;  %v9828_v9 = vrot.slane %v7293_v60, 3  ;;  %v2124_v32 = vpop.f32.mrf.mxu0  ;;  %v2516_v61 = vpop.f32.mrf.mxu1 }
 0x1ec   : > { %v4583_v56 = vmul.f32 %v9825_v7, %v4023_v59  ;;  %v5216_v30 = vmul.f32 %v9826_v62, %v4023_v59  ;;  %v5455_v48 = vrot.slane %v5217_v15, 6  ;;  %v4051_v53 = vmax.f32 %v4049_v38, %v4050_v34 }
 0x1ed   : > { %v4585_v25 = vmul.f32 %v9827_v26, %v4037_v54  ;;  %v5218_v50 = vmul.f32 %v9828_v9, %v4037_v54  ;;  %v9829_v0 = vrot.slane %v7261_v57, 4  ;;  %v9830_v54 = vrot.slane %v7293_v60, 4  ;;  %v7879_v26 = vpop.f32.mrf.mxu0  ;;  %v7881_v9 = vpop.f32.mrf.mxu1  ;;  %2321 = vmatmul.mubr.bf16.gmra.mxu0 %v6481_v44 }
 0x1ee   : > { %v4827_v7 = vrot.slane %v4583_v56, 7  ;;  %v5453_v59 = vrot.slane %v5216_v30, 7  ;;  %v4057_v36 = vrot.slane %v4056_v4, 1  ;;  %v9831_v38 = vrot.slane %v7261_v57, 5  ;;  %9832 = vst [vmem:[#allocation33_spill] sm:$0xff] %v7881_v9 }
 0x1ef   : > { %v4586_v49 = vmul.f32 %v9829_v0, %v4044_v31  ;;  %v4831_v41 = vrot.slane %v4585_v25, 5  ;;  %v5457_v62 = vrot.slane %v5218_v50, 5  ;;  %v5219_v15 = vmul.f32 %v9830_v54, %v4044_v31  ;;  %v2127_v61 = vpop.f32.mrf.mxu0  ;;  %v2519_v54 = vpop.f32.mrf.mxu1 }
 0x1f0   : > { %v4828_v51 = vsel %vm4723_vm3, %v4827_v7, %v4582_v58  ;;  %v5454_v56 = vsel %vm4723_vm3, %v5453_v59, %v5215_v33  ;;  %v4587_v34 = vmul.f32 %v9831_v38, %v4051_v53  ;;  %v9833_v31 = vrot.slane %v7293_v60, 5  ;;  %v6482_v58 = vld [vmem:[%s6752_s29 + $0x610] ss:$8 sps:$4 sm:$0xff]  }
 0x1f1   : > { %v4833_v30 = vrot.slane %v4586_v49, 4  ;;  %v4830_v25 = vsel %vm4726_vm4, %v4829_v39, %v4828_v51  ;;  %v5456_v50 = vsel %vm4726_vm4, %v5455_v48, %v5454_v56  ;;  %v5459_v32 = vrot.slane %v5219_v15, 4  ;;  %2713 = vmatmul.mubr.bf16.gmra.mxu1 %v6482_v58 }
 0x1f2   : > { %v5220_v0 = vmul.f32 %v9833_v31, %v4051_v53  ;;  %v4832_v33 = vsel %vm4729_vm5, %v4831_v41, %v4830_v25  ;;  %v5458_v7 = vsel %vm4729_vm5, %v5457_v62, %v5456_v50  ;;  %v4835_v59 = vrot.slane %v4587_v34, 3 }
 0x1f3   : > { %v4058_v49 = vmax.f32 %v4056_v4, %v4057_v36  ;;  %v9834_v38 = vmax.f32 %v7573_v52, 0.0  ;;  %v4834_v39 = vsel %vm4732_vm6, %v4833_v30, %v4832_v33  ;;  %v5460_v48 = vsel %vm4732_vm6, %v5459_v32, %v5458_v7  ;;  %v7905_v52 = vpop.f32.mrf.mxu0  ;;  %v7907_v36 = vpop.f32.mrf.mxu1 }
 0x1f4   : > { %v5461_v51 = vrot.slane %v5220_v0, 3  ;;  %v4836_v53 = vsel %vm4735_vm7, %v4835_v59, %v4834_v39  ;;  %v9835_v15 = vrot.slane %v7261_v57, 6  ;;  %v9836_v62 = vrot.slane %v7293_v60, 6 }
 0x1f5   : > { %v2958_v9 = vmul.f32 %v7517_v43, %v9834_v38  ;;  %v7903_v4 = vadd.f32 %v7532_v42, %v7838_v28  ;;  %v9837_v30 = vcombine.high %v7820_v46, %v7820_v46  ;;  %v2858_v50 = vmax.f32 %v7687_v55, 0.0  ;;  %v2132_v33 = vpop.f32.mrf.mxu0  ;;  %v2524_v7 = vpop.f32.mrf.mxu1 }
 0x1f6   : > { %v4588_v41 = vmul.f32 %v9835_v15, %v4058_v49  ;;  %v5221_v56 = vmul.f32 %v9836_v62, %v4058_v49  ;;  %v5462_v34 = vsel %vm4735_vm7, %v5461_v51, %v5460_v48  ;;  %v2761_v31 = vmax.f32 %v7726_v27, 0.0 }
 0x1f7   : > { %v4059_v25 = vsel %vm3617_vm2, %v9837_v30, -inf  ;;  %v2859_v44 = vmax.f32 %v7728_v45, 0.0  ;;  %v7921_v59 = vadd.f32 %v7532_v42, %v7782_v29  ;;  %v3061_v46 = vmul.f32 %v7517_v43, %v2858_v50  ;;  %v7934_v54 = vpop.f32.mrf.mxu0  ;;  %v7936_v29 = vpop.f32.mrf.mxu1 }
 0x1f8   : > { %v4837_v0 = vrot.slane %v4588_v41, 2  ;;  %v5463_v28 = vrot.slane %v5221_v56, 2  ;;  %v2964_v55 = vmul.f32 %v7517_v43, %v2761_v31  ;;  %v2762_v27 = vmax.f32 %v7762_v24, 0.0 }
 0x1f9   : > { %v3062_v45 = vmul.f32 %v7517_v43, %v2859_v44  ;;  %v2860_v61 = vmax.f32 %v7764_v17, 0.0  ;;  %v4060_v38 = vrot.slane %v4059_v25, 4  ;;  %v3264_v39 = vadd.f32 %v7532_v42, %v3061_v46  ;;  %v2135_v41 = vpop.f32.mrf.mxu0  ;;  %v2527_v62 = vpop.f32.mrf.mxu1 }
 0x1fa   : > { %v7927_v58 = vsel %vm4738_vm8, %v4837_v0, %v4836_v53  ;;  %v7930_v49 = vsel %vm4738_vm8, %v5463_v28, %v5462_v34  ;;  %v7940_v48 = vadd.f32 %v7532_v42, %v2964_v55  ;;  %v2965_v24 = vmul.f32 %v7517_v43, %v2762_v27 }
 0x1fb   : > { %9838 = vst [vmem:[#allocation34_spill] sm:$0xff] %v7927_v58  ;;  %9839 = vst [vmem:[#allocation35_spill] sm:$0xff] %v7930_v49  ;;  %v3265_v53 = vadd.f32 %v7532_v42, %v3062_v45  ;;  %v3063_v15 = vmul.f32 %v7517_v43, %v2860_v61  ;;  %v2763_v17 = vmax.f32 %v7796_v1, 0.0  ;;  %v3421_v56 = vmax.f32 %v7738_v10, %v3264_v39  ;;  %v7960_v44 = vpop.f32.mrf.mxu0  ;;  %v7962_v10 = vpop.f32.mrf.mxu1 }
 0x1fc   : > { %v7952_v50 = vadd.f32 %v7532_v42, %v2965_v24  ;;  %v7955_v31 = vadd.f32 %v7532_v42, %v2958_v9  ;;  %v4061_v33 = vmax.f32 %v4059_v25, %v4060_v38  ;;  %v5033_v25 = vrot.slane %v7699_v14, 2 }
 0x1fd   : > { %v3424_v28 = vmax.f32 %v7743_v2, %v3265_v53  ;;  %v3266_v1 = vadd.f32 %v7532_v42, %v3063_v15  ;;  %v3551_v7 = vcombine.high %v3421_v56, %v3421_v56  ;;  %v4066_v46 = vsel %vm3617_vm2, %v3421_v56, -inf  ;;  %v2140_v2 = vpop.f32.mrf.mxu0  ;;  %v2532_v39 = vpop.f32.mrf.mxu1 }
 0x1fe   : > { %v2966_v55 = vmul.f32 %v7517_v43, %v2763_v17  ;;  %v4067_v27 = vrot.slane %v4066_v46, 4  ;;  %v4400_v15 = vrot.slane %v7677_v12, 2  ;;  %v4062_v61 = vrot.slane %v4061_v33, 2 }
 0x1ff   : > { %v3552_v45 = vcombine.high %v3424_v28, %v3424_v28  ;;  %v4080_v9 = vsel %vm3617_vm2, %v3424_v28, -inf  ;;  %v4073_v24 = vsel %vm3617_vm2, %v3551_v7, -inf  ;;  %v3427_v62 = vmax.f32 %v7757_v20, %v3266_v1  ;;  %v7974_v56 = vpop.f32.mrf.mxu0  ;;  %v7976_v28 = vpop.f32.mrf.mxu1 }
 0x200   : > { %v4081_v53 = vrot.slane %v4080_v9, 4  ;;  %v4068_v38 = vmax.f32 %v4066_v46, %v4067_v27  ;;  %v4074_v41 = vrot.slane %v4073_v24, 4  ;;  %9840 = vst [vmem:[#allocation36_spill] sm:$0xff] %v7976_v28  ;;  %v3169_v7 = vadd.f32 %v7532_v42, %v2966_v55 }
 0x201   : > { %v4087_v17 = vsel %vm3617_vm2, %v3552_v45, -inf  ;;  %v3553_v51 = vcombine.high %v3427_v62, %v3427_v62  ;;  %v4094_v0 = vsel %vm3617_vm2, %v3427_v62, -inf  ;;  %v2143_v46 = vpop.f32.mrf.mxu0  ;;  %v2535_v27 = vpop.f32.mrf.mxu1  ;;  %v9841_v20 = vmax.f32 %v7692_v23, %v7749_v13 }
 0x202   : > { %v4082_v2 = vmax.f32 %v4080_v9, %v4081_v53  ;;  %v4088_v39 = vrot.slane %v4087_v17, 4  ;;  %v4069_v30 = vrot.slane %v4068_v38, 2  ;;  %v4075_v32 = vmax.f32 %v4073_v24, %v4074_v41 }
 0x203   : > { %v4095_v49 = vrot.slane %v4094_v0, 4  ;;  %v7983_v1 = vmax.f32 %v9841_v20, %v3169_v7  ;;  %v4401_v53 = vrot.slane %v7677_v12, 3  ;;  %v2764_v55 = vmax.f32 %v7813_v40, 0.0  ;;  %v7987_v24 = vpop.f32.mrf.mxu0  ;;  %v7989_v41 = vpop.f32.mrf.mxu1 }
 0x204   : > { %v4083_v34 = vrot.slane %v4082_v2, 2  ;;  %v4089_v45 = vmax.f32 %v4087_v17, %v4088_v39  ;;  %v4070_v58 = vmax.f32 %v4068_v38, %v4069_v30  ;;  %v4076_v9 = vrot.slane %v4075_v32, 2  ;;  %9843 = vst [vmem:[#allocation38_spill] sm:$0xff] %v7987_v24  ;;  %9844 = vst [vmem:[#allocation39_spill] sm:$0xff] %v7989_v41 }
 0x205   : > { %9842 = vst [vmem:[#allocation37_spill] sm:$0xff] %v7983_v1  ;;  %v4096_v27 = vmax.f32 %v4094_v0, %v4095_v49  ;;  %v4101_v17 = vsel %vm3617_vm2, %v3553_v51, -inf  ;;  %v7992_v39 = vmax.f32 %v4061_v33, %v4062_v61  ;;  %v2967_v30 = vmul.f32 %v7517_v43, %v2764_v55  ;;  %v2148_v38 = vpop.f32.mrf.mxu0  ;;  %v2540_v7 = vpop.f32.mrf.mxu1 }
 0x206   : > { %v4084_v62 = vmax.f32 %v4082_v2, %v4083_v34  ;;  %v4090_v46 = vrot.slane %v4089_v45, 2  ;;  %v4071_v23 = vrot.slane %v4070_v58, 1  ;;  %v4077_v13 = vmax.f32 %v4075_v32, %v4076_v9 }
 0x207   : > { %v5034_v40 = vrot.slane %v7699_v14, 3  ;;  %v4097_v24 = vrot.slane %v4096_v27, 2  ;;  %v4102_v34 = vrot.slane %v4101_v17, 4  ;;  %v3170_v49 = vadd.f32 %v7532_v42, %v2967_v30  ;;  %v7997_v0 = vpop.f32.mrf.mxu0  ;;  %v7999_v51 = vpop.f32.mrf.mxu1 }
 0x208   : > { %v4085_v20 = vrot.slane %v4084_v62, 1  ;;  %v4091_v28 = vmax.f32 %v4089_v45, %v4090_v46  ;;  %v4072_v1 = vmax.f32 %v4070_v58, %v4071_v23  ;;  %v4078_v41 = vrot.slane %v4077_v13, 1  ;;  %9845 = vst [vmem:[#allocation40_spill] sm:$0xff] %v7997_v0  ;;  %9846 = vst [vmem:[#allocation41_spill] sm:$0xff] %v7999_v51 }
 0x209   : > { %v4098_v61 = vmax.f32 %v4096_v27, %v4097_v24  ;;  %v4402_v43 = vrot.slane %v7677_v12, 4  ;;  %v4064_v2 = vrot.slane %v7992_v39, 1  ;;  %v5035_v9 = vrot.slane %v7699_v14, 4  ;;  %v2151_v42 = vpop.f32.mrf.mxu0  ;;  %v2543_v46 = vpop.f32.mrf.mxu1 }
 0x20a   : > { %v4086_v33 = vmax.f32 %v4084_v62, %v4085_v20  ;;  %v4092_v32 = vrot.slane %v4091_v28, 1  ;;  %v4079_v45 = vmax.f32 %v4077_v13, %v4078_v41  ;;  %v9847_v58 = vmax.f32 %v7695_v18, %v7771_v21 }
 0x20b   : > { %v4099_v62 = vrot.slane %v4098_v61, 1  ;;  %v4590_v24 = vmul.f32 %v7677_v12, %v4072_v1  ;;  %v9848_v27 = vrot.slane %v7677_v12, 1  ;;  %v9849_v41 = vrot.slane %v7699_v14, 1  ;;  %v8014_v51 = vpop.f32.mrf.mxu0  ;;  %v8016_v18 = vpop.f32.mrf.mxu1 }
 0x20c   : > { %v8007_v55 = vmax.f32 %v9847_v58, %v3170_v49  ;;  %v4093_v23 = vmax.f32 %v4091_v28, %v4092_v32  ;;  %v4592_v30 = vmul.f32 %v4400_v15, %v4086_v33  ;;  %v5225_v38 = vmul.f32 %v5033_v25, %v4086_v33 }
 0x20d   : > { %v4591_v7 = vmul.f32 %v9848_v27, %v4079_v45  ;;  %v5224_v13 = vmul.f32 %v9849_v41, %v4079_v45  ;;  %v4103_v20 = vmax.f32 %v4101_v17, %v4102_v34  ;;  %v5223_v25 = vmul.f32 %v7699_v14, %v4072_v1  ;;  %v2156_v42 = vpop.f32.mrf.mxu0  ;;  %v2548_v46 = vpop.f32.mrf.mxu1 }
 0x20e   : > { %v4593_v21 = vmul.f32 %v4401_v53, %v4093_v23  ;;  %v4843_v49 = vrot.slane %v4592_v30, 6  ;;  %v5226_v58 = vmul.f32 %v5034_v40, %v4093_v23  ;;  %v5469_v28 = vrot.slane %v5225_v38, 6 }
 0x20f   : > { %v4841_v15 = vrot.slane %v4591_v7, 7  ;;  %v5467_v33 = vrot.slane %v5224_v13, 7  ;;  %v4100_v32 = vmax.f32 %v4098_v61, %v4099_v62  ;;  %v2861_v45 = vmax.f32 %v7798_v63, 0.0  ;;  %v8024_v23 = vpop.f32.mrf.mxu0  ;;  %v8026_v1 = vpop.f32.mrf.mxu1  ;;  %v8033_v63 = vld [vmem:[%s9720_s2] ss:$0 sm:$0xff] }
 0x210   : > { %v4845_v27 = vrot.slane %v4593_v21, 5  ;;  %v5471_v0 = vrot.slane %v5226_v58, 5  ;;  %v2765_v17 = vmax.f32 %v7832_v5, 0.0  ;;  %v2862_v40 = vmax.f32 %v7815_v6, 0.0 }
 0x211   : > { %v4842_v34 = vsel %vm4723_vm3, %v4841_v15, %v4590_v24  ;;  %v5468_v53 = vsel %vm4723_vm3, %v5467_v33, %v5223_v25  ;;  %v4594_v30 = vmul.f32 %v4402_v43, %v4100_v32  ;;  %v5227_v62 = vmul.f32 %v5035_v9, %v4100_v32  ;;  %v2159_v41 = vpop.f32.mrf.mxu0  ;;  %v2551_v13 = vpop.f32.mrf.mxu1  ;;  %v8042_v9 = vld [vmem:[%s9721_s3] ss:$0 sm:$0xff] }
 0x212   : > { %v4844_v61 = vsel %vm4726_vm4, %v4843_v49, %v4842_v34  ;;  %v5470_v38 = vsel %vm4726_vm4, %v5469_v28, %v5468_v53  ;;  %v2968_v5 = vmul.f32 %v8033_v63, %v2765_v17  ;;  %v4104_v24 = vrot.slane %v4103_v20, 2 }
 0x213   : > { %v4846_v43 = vsel %vm4729_vm5, %v4845_v27, %v4844_v61  ;;  %v5472_v6 = vsel %vm4729_vm5, %v5471_v0, %v5470_v38  ;;  %v4847_v7 = vrot.slane %v4594_v30, 4  ;;  %v5031_v21 = vrot.slane %v7293_v60, 7  ;;  %v8052_v60 = vpop.f32.mrf.mxu0  ;;  %v8054_v32 = vpop.f32.mrf.mxu1 }
 0x214   : > { %v5473_v49 = vrot.slane %v5227_v62, 4  ;;  %v3171_v58 = vadd.f32 %v8042_v9, %v2968_v5  ;;  %v2863_v28 = vmax.f32 %v7834_v19, 0.0  ;;  %v4065_v15 = vmax.f32 %v7992_v39, %v4064_v2 }
 0x215   : > { %v8049_v25 = vsel %vm4732_vm6, %v4847_v7, %v4846_v43  ;;  %v2766_v33 = vmax.f32 %v7843_v3, 0.0  ;;  %v3064_v46 = vmul.f32 %v8033_v63, %v2861_v45  ;;  %v3065_v19 = vmul.f32 %v8033_v63, %v2862_v40  ;;  %v2164_v53 = vpop.f32.mrf.mxu0  ;;  %v2556_v30 = vpop.f32.mrf.mxu1 }
 0x216   : > { %9850 = vst [vmem:[#allocation42_spill] sm:$0xff] %v8049_v25  ;;  %v8057_v42 = vsel %vm4732_vm6, %v5473_v49, %v5472_v6  ;;  %v9852_v39 = vmax.f32 %v7704_v47, %v7788_v8  ;;  %v8066_v27 = vmax.f32 %v4103_v20, %v4104_v24  ;;  %v2767_v34 = vmax.f32 %v7861_v22, 0.0  ;;  %v9857_v24 = vld [vmem:[#allocation32_spill] sm:$0xff]  ;;  %v8120_v53 = vld [vmem:[%s6754_s28 + $0x8] sm:$0xff]  }
 0x217   : > { %9851 = vst [vmem:[#allocation43_spill] sm:$0xff] %v8057_v42  ;;  %v2969_v17 = vmul.f32 %v8033_v63, %v2766_v33  ;;  %v3066_v61 = vmul.f32 %v8033_v63, %v2863_v28  ;;  %v2864_v45 = vmax.f32 %v7845_v11, 0.0  ;;  %v2768_v40 = vmax.f32 %v7879_v26, 0.0  ;;  %v8083_v5 = vpop.f32.mrf.mxu0  ;;  %v8085_v43 = vpop.f32.mrf.mxu1 }
 0x218   : > { %v8064_v2 = vmax.f32 %v9852_v39, %v3171_v58  ;;  %v2769_v47 = vmax.f32 %v7905_v52, 0.0  ;;  %v9853_v8 = vrot.slane %v7261_v57, 7  ;;  %v8079_v38 = vmul.f32 %v5031_v21, %v4065_v15 }
 0x219   : > { %v3172_v62 = vadd.f32 %v8042_v9, %v2969_v17  ;;  %v2970_v22 = vmul.f32 %v8033_v63, %v2767_v34  ;;  %v8088_v11 = vadd.f32 %v8042_v9, %v3064_v46  ;;  %v8091_v26 = vadd.f32 %v8042_v9, %v3065_v19  ;;  %v2167_v49 = vpop.f32.mrf.mxu0  ;;  %v2559_v58 = vpop.f32.mrf.mxu1 }
 0x21a   : > { %v8077_v20 = vmul.f32 %v9853_v8, %v4065_v15  ;;  %9855 = vst [vmem:[#allocation45_spill] sm:$0xff] %v8079_v38  ;;  %v2971_v57 = vmul.f32 %v8033_v63, %v2768_v40  ;;  %v2972_v52 = vmul.f32 %v8033_v63, %v2769_v47  ;;  %v9858_v7 = vmax.f32 %v7711_v35, %v9857_v24  ;;  %v9864_v8 = vld [vmem:[#allocation11_spill] sm:$0xff]  ;;  %v9866_v49 = vld [vmem:[#allocation37_spill] sm:$0xff] }
 0x21b   : > { %9856 = vst [vmem:[#allocation46_spill] sm:$0xff] %v8091_v26  ;;  %v3173_v13 = vadd.f32 %v8042_v9, %v2970_v22  ;;  %v2770_v21 = vmax.f32 %v7934_v54, 0.0  ;;  %v8104_v28 = vadd.f32 %v8042_v9, %v3066_v61  ;;  %v8107_v15 = vmul.f32 %v8033_v63, %v2864_v45  ;;  %v9860_v54 = vld [vmem:[#allocation33_spill] sm:$0xff]  ;;  %v8122_v30 = vpop.f32.mrf.mxu0  ;;  %v8124_v61 = vpop.f32.mrf.mxu1 }
 0x21c   : > { %9854 = vst [vmem:[#allocation44_spill] sm:$0xff] %v8077_v20  ;;  %v8099_v41 = vmax.f32 %v9858_v7, %v3172_v62  ;;  %v3174_v33 = vadd.f32 %v8042_v9, %v2971_v57  ;;  %v3175_v46 = vadd.f32 %v8042_v9, %v2972_v52  ;;  %v9859_v35 = vmax.f32 %v7828_v37, %v7903_v4  ;;  %v9865_v7 = vld [vmem:[#allocation12_spill] sm:$0xff] }
 0x21d   : > { %v2973_v34 = vmul.f32 %v8033_v63, %v2770_v21  ;;  %9861 = vst [vmem:[#allocation32_spill] sm:$0xff] %v8122_v30  ;;  %v9862_v45 = vmax.f32 %v7921_v59, %v7940_v48  ;;  %v9863_v37 = vmax.f32 %v7955_v31, %v7952_v50  ;;  %v2868_v52 = vmax.f32 %v7936_v29, 0.0  ;;  %v2172_v48 = vpop.f32.mrf.mxu0  ;;  %v2564_v24 = vpop.f32.mrf.mxu1  ;;  %v6487_v29 = vld [vmem:[%s6754_s28 + $0x38] sm:$0xff]  }
 0x21e   : > { %v8114_v19 = vmax.f32 %v9859_v35, %v3173_v13  ;;  %v2771_v59 = vmax.f32 %v7960_v44, 0.0  ;;  %v8144_v50 = vunpack.c.l.bf16 %v8120_v53  ;;  %v2869_v31 = vmax.f32 %v7962_v10, 0.0 }
 0x21f   : > { %v8129_v40 = vmax.f32 %v9862_v45, %v3174_v33  ;;  %v8134_v4 = vmax.f32 %v9863_v37, %v3175_v46  ;;  %v3176_v22 = vadd.f32 %v8042_v9, %v2973_v34  ;;  %v2772_v21 = vmax.f32 %v7974_v56, 0.0  ;;  %v8154_v44 = vpop.f32.mrf.mxu0  ;;  %v8156_v34 = vpop.f32.mrf.mxu1  ;;  %v9868_v56 = vld [vmem:[#allocation36_spill] sm:$0xff] }
 0x220   : > { %v3071_v33 = vmul.f32 %v8033_v63, %v2868_v52  ;;  %v2974_v46 = vmul.f32 %v8033_v63, %v2771_v59  ;;  %v8152_v35 = vunpack.c.h.bf16 %v6487_v29  ;;  %9867 = vst [vmem:[#allocation33_spill] sm:$0xff] %v8154_v44  ;;  %v3072_v37 = vmul.f32 %v8033_v63, %v2869_v31 }
 0x221   : > { %v3346_v58 = vmax.f32 %v9866_v49, %v3176_v22  ;;  %v2975_v10 = vmul.f32 %v8033_v63, %v2772_v21  ;;  %v2870_v48 = vmax.f32 %v9868_v56, 0.0  ;;  %v2175_v49 = vpop.f32.mrf.mxu0  ;;  %v2567_v29 = vpop.f32.mrf.mxu1  ;;  %v2876_v20 = vmax.f32 %v8085_v43, 0.0 }
 0x222   : > { %v8164_v59 = vadd.f32 %v8042_v9, %v3071_v33  ;;  %v3177_v24 = vadd.f32 %v8042_v9, %v2974_v46  ;;  %v8169_v6 = vadd.f32 %v8042_v9, %v3072_v37 }
 0x223   : > { %v3526_v22 = vcombine.high %v3346_v58, %v3346_v58  ;;  %v3716_v52 = vsel %vm3617_vm2, %v3346_v58, -inf  ;;  %v3178_v31 = vadd.f32 %v8042_v9, %v2975_v10  ;;  %v8177_v46 = vpop.f32.mrf.mxu0  ;;  %v8179_v49 = vpop.f32.mrf.mxu1 }
 0x224   : > { %v3717_v3 = vrot.slane %v3716_v52, 4  ;;  %9869 = vst [vmem:[#allocation11_spill] sm:$0xff] %v8169_v6  ;;  %v3349_v33 = vmax.f32 %v8007_v55, %v3177_v24  ;;  %9870 = vst [vmem:[#allocation12_spill] sm:$0xff] %v8177_v46  ;;  %v3073_v55 = vmul.f32 %v8033_v63, %v2870_v48 }
 0x225   : > { %v3723_v21 = vsel %vm3617_vm2, %v3526_v22, -inf  ;;  %v3352_v10 = vmax.f32 %v8064_v2, %v3178_v31  ;;  %v2180_v24 = vpop.f32.mrf.mxu0  ;;  %v2572_v39 = vpop.f32.mrf.mxu1  ;;  %v9871_v2 = vld [vmem:[#allocation38_spill] sm:$0xff] }
 0x226   : > { %v3718_v29 = vmax.f32 %v3716_v52, %v3717_v3  ;;  %v3724_v47 = vrot.slane %v3723_v21, 4  ;;  %v3527_v17 = vcombine.high %v3349_v33, %v3349_v33  ;;  %v3730_v22 = vsel %vm3617_vm2, %v3349_v33, -inf }
 0x227   : > { %v3731_v45 = vrot.slane %v3730_v22, 4  ;;  %v3528_v57 = vcombine.high %v3352_v10, %v3352_v10  ;;  %v3744_v52 = vsel %vm3617_vm2, %v3352_v10, -inf  ;;  %v8190_v37 = vadd.f32 %v8042_v9, %v3073_v55  ;;  %v8193_v33 = vpop.f32.mrf.mxu0  ;;  %v8195_v58 = vpop.f32.mrf.mxu1 }
 0x228   : > { %v3719_v56 = vrot.slane %v3718_v29, 2  ;;  %v3725_v0 = vmax.f32 %v3723_v21, %v3724_v47  ;;  %v3737_v3 = vsel %vm3617_vm2, %v3527_v17, -inf  ;;  %v2773_v31 = vmax.f32 %v9871_v2, 0.0  ;;  %9872 = vst [vmem:[#allocation37_spill] sm:$0xff] %v8193_v33 }
 0x229   : > { %v3732_v39 = vmax.f32 %v3730_v22, %v3731_v45  ;;  %v3738_v13 = vrot.slane %v3737_v3, 4  ;;  %v3745_v47 = vrot.slane %v3744_v52, 4  ;;  %v3751_v21 = vsel %vm3617_vm2, %v3528_v57, -inf  ;;  %v2183_v55 = vpop.f32.mrf.mxu0  ;;  %v2575_v62 = vpop.f32.mrf.mxu1 }
 0x22a   : > { %v3720_v48 = vmax.f32 %v3718_v29, %v3719_v56  ;;  %v3726_v24 = vrot.slane %v3725_v0, 2  ;;  %v2976_v10 = vmul.f32 %v8033_v63, %v2773_v31  ;;  %v3752_v33 = vrot.slane %v3751_v21, 4 }
 0x22b   : > { %v3733_v25 = vrot.slane %v3732_v39, 2  ;;  %v3739_v6 = vmax.f32 %v3737_v3, %v3738_v13  ;;  %v3746_v26 = vmax.f32 %v3744_v52, %v3745_v47  ;;  %v8203_v29 = vpop.f32.mrf.mxu0  ;;  %v8205_v57 = vpop.f32.mrf.mxu1  ;;  %v9875_v47 = vrot.slane %v9864_v8, 6 }
 0x22c   : > { %v3721_v42 = vrot.slane %v3720_v48, 1  ;;  %v3727_v2 = vmax.f32 %v3725_v0, %v3726_v24  ;;  %v3179_v45 = vadd.f32 %v8042_v9, %v2976_v10  ;;  %9873 = vst [vmem:[#allocation36_spill] sm:$0xff] %v8203_v29  ;;  %9874 = vst [vmem:[#allocation38_spill] sm:$0xff] %v8205_v57  ;;  %v3753_v62 = vmax.f32 %v3751_v21, %v3752_v33  ;;  %v9882_v57 = vld [vmem:[#allocation31_spill] sm:$0xff] }
 0x22d   : > { %v3734_v46 = vmax.f32 %v3732_v39, %v3733_v25  ;;  %v3740_v31 = vrot.slane %v3739_v6, 2  ;;  %v3747_v55 = vrot.slane %v3746_v26, 2  ;;  %v4991_v0 = vrot.slane %v8152_v35, 2  ;;  %v2188_v3 = vpop.f32.mrf.mxu0  ;;  %v2580_v52 = vpop.f32.mrf.mxu1 }
 0x22e   : > { %v3722_v22 = vmax.f32 %v3720_v48, %v3721_v42  ;;  %v3728_v17 = vrot.slane %v3727_v2, 1  ;;  %v3355_v13 = vmax.f32 %v8099_v41, %v3179_v45  ;;  %v9876_v56 = vrot.slane %v9865_v7, 6 }
 0x22f   : > { %v3735_v44 = vrot.slane %v3734_v46, 1  ;;  %v3741_v42 = vmax.f32 %v3739_v6, %v3740_v31  ;;  %v3748_v48 = vmax.f32 %v3746_v26, %v3747_v55  ;;  %v3754_v25 = vrot.slane %v3753_v62, 2  ;;  %v8214_v33 = vpop.f32.mrf.mxu0  ;;  %v8216_v21 = vpop.f32.mrf.mxu1  ;;  %v9881_v55 = vld [vmem:[#allocation30_spill] sm:$0xff] }
 0x230   : > { %v3729_v24 = vmax.f32 %v3727_v2, %v3728_v17  ;;  %v4540_v10 = vmul.f32 %v9875_v47, %v3722_v22  ;;  %v5173_v29 = vmul.f32 %v9876_v56, %v3722_v22  ;;  %v4992_v39 = vrot.slane %v8152_v35, 3  ;;  %9877 = vst [vmem:[#allocation47_spill] sm:$0xff] %v8214_v33  ;;  %9878 = vst [vmem:[#allocation48_spill] sm:$0xff] %v8216_v21 }
 0x231   : > { %v9879_v41 = vrot.slane %v9864_v8, 7  ;;  %v9880_v2 = vrot.slane %v9865_v7, 7  ;;  %v3736_v47 = vmax.f32 %v3734_v46, %v3735_v44  ;;  %v3742_v56 = vrot.slane %v3741_v42, 1  ;;  %v2191_v26 = vpop.f32.mrf.mxu0  ;;  %v2583_v31 = vpop.f32.mrf.mxu1 }
 0x232   : > { %v4753_v17 = vrot.slane %v4540_v10, 2  ;;  %v5379_v52 = vrot.slane %v5173_v29, 2  ;;  %v3749_v22 = vrot.slane %v3748_v48, 1  ;;  %v3755_v6 = vmax.f32 %v3753_v62, %v3754_v25 }
 0x233   : > { %v4541_v45 = vmul.f32 %v9879_v41, %v3729_v24  ;;  %v5174_v3 = vmul.f32 %v9880_v2, %v3729_v24  ;;  %v3743_v41 = vmax.f32 %v3741_v42, %v3742_v56  ;;  %v4542_v10 = vmul.f32 %v8144_v50, %v3736_v47  ;;  %v8227_v29 = vpop.f32.mrf.mxu0  ;;  %v8229_v44 = vpop.f32.mrf.mxu1 }
 0x234   : > { %v4754_v30 = vsel %vm4738_vm8, %v4753_v17, %v9881_v55  ;;  %v5380_v21 = vsel %vm4738_vm8, %v5379_v52, %v9882_v57  ;;  %v3750_v7 = vmax.f32 %v3748_v48, %v3749_v22  ;;  %v3529_v24 = vcombine.high %v3355_v13, %v3355_v13  ;;  %9883 = vst [vmem:[#allocation30_spill] sm:$0xff] %v8227_v29  ;;  %v9884_v17 = vld [vmem:[#allocation28_spill] sm:$0xff]  ;;  %v9885_v57 = vld [vmem:[#allocation29_spill] sm:$0xff] }
 0x235   : > { %v4755_v33 = vrot.slane %v4541_v45, 1  ;;  %v5381_v8 = vrot.slane %v5174_v3, 1  ;;  %v3756_v25 = vrot.slane %v3755_v6, 1  ;;  %v3758_v45 = vsel %vm3617_vm2, %v3355_v13, -inf  ;;  %v2196_v22 = vpop.f32.mrf.mxu0  ;;  %v2588_v26 = vpop.f32.mrf.mxu1 }
 0x236   : > { %v9886_v48 = vrot.slane %v8144_v50, 1  ;;  %v9887_v52 = vrot.slane %v8152_v35, 1  ;;  %v5177_v31 = vmul.f32 %v4991_v0, %v3750_v7  ;;  %v3759_v13 = vrot.slane %v3758_v45, 4 }
 0x237   : > { %v4756_v46 = vsel %vm4741_vm9, %v4755_v33, %v4754_v30  ;;  %v5382_v62 = vsel %vm4741_vm9, %v5381_v8, %v5380_v21  ;;  %v3757_v30 = vmax.f32 %v3755_v6, %v3756_v25  ;;  %v9888_v33 = vrot.slane %v8144_v50, 2 }
 0x238   : > { %v8235_v2 = vadd.f32 %v4756_v46, %v9884_v17  ;;  %v8238_v42 = vadd.f32 %v5382_v62, %v9885_v57  ;;  %v4543_v3 = vmul.f32 %v9886_v48, %v3743_v41  ;;  %v5176_v56 = vmul.f32 %v9887_v52, %v3743_v41  ;;  %v8248_v17 = vpop.f32.mrf.mxu0  ;;  %v8250_v57 = vpop.f32.mrf.mxu1 }
 0x239   : > { %v4544_v21 = vmul.f32 %v9888_v33, %v3750_v7  ;;  %v5175_v8 = vmul.f32 %v8152_v35, %v3736_v47  ;;  %v3765_v62 = vsel %vm3617_vm2, %v3529_v24, -inf  ;;  %v9889_v41 = vrot.slane %v8144_v50, 3 }
 0x23a   : > { %v4757_v55 = vrot.slane %v4543_v3, 7  ;;  %v5383_v46 = vrot.slane %v5176_v56, 7  ;;  %v5178_v6 = vmul.f32 %v4992_v39, %v3757_v30  ;;  %v5385_v25 = vrot.slane %v5177_v31, 6  ;;  %v2199_v47 = vpop.f32.mrf.mxu0  ;;  %v2591_v56 = vpop.f32.mrf.mxu1 }
 0x23b   : > { %v4545_v48 = vmul.f32 %v9889_v41, %v3757_v30  ;;  %v4759_v52 = vrot.slane %v4544_v21, 6  ;;  %v3760_v7 = vmax.f32 %v3758_v45, %v3759_v13  ;;  %v3766_v3 = vrot.slane %v3765_v62, 4  ;;  %v9890_v21 = vld [vmem:[#allocation39_spill] sm:$0xff] }
 0x23c   : > { %v4758_v22 = vsel %vm4723_vm3, %v4757_v55, %v4542_v10  ;;  %v5384_v0 = vsel %vm4723_vm3, %v5383_v46, %v5175_v8  ;;  %v5387_v29 = vrot.slane %v5178_v6, 5  ;;  %v8260_v41 = vadd.f32 %v8042_v9, %v8107_v15  ;;  %v8263_v31 = vpop.f32.mrf.mxu0  ;;  %v8265_v45 = vpop.f32.mrf.mxu1 }
 0x23d   : > { %v4760_v24 = vsel %vm4726_vm4, %v4759_v52, %v4758_v22  ;;  %v4761_v26 = vrot.slane %v4545_v48, 5  ;;  %v5386_v33 = vsel %vm4726_vm4, %v5385_v25, %v5384_v0  ;;  %v3761_v39 = vrot.slane %v3760_v7, 2  ;;  %9891 = vst [vmem:[#allocation31_spill] sm:$0xff] %v8265_v45  ;;  %v9893_v48 = vld [vmem:[#allocation40_spill] sm:$0xff] }
 0x23e   : > { %v3767_v30 = vmax.f32 %v3765_v62, %v3766_v3  ;;  %v2871_v10 = vmax.f32 %v9890_v21, 0.0  ;;  %v9892_v13 = vmax.f32 %v7863_v16, 0.0  ;;  %v5388_v46 = vsel %vm4729_vm5, %v5387_v29, %v5386_v33  ;;  %v2204_v0 = vpop.f32.mrf.mxu0  ;;  %v2596_v3 = vpop.f32.mrf.mxu1 }
 0x23f   : > { %v4762_v8 = vsel %vm4729_vm5, %v4761_v26, %v4760_v24  ;;  %v2774_v52 = vmax.f32 %v9893_v48, 0.0  ;;  %v9894_v15 = vmax.f32 %v9860_v54, 0.0  ;;  %v3762_v6 = vmax.f32 %v3760_v7, %v3761_v39  ;;  %v9895_v24 = vld [vmem:[#allocation41_spill] sm:$0xff] }
 0x240   : > { %v3068_v55 = vmul.f32 %v8033_v63, %v9892_v13  ;;  %v3768_v25 = vrot.slane %v3767_v30, 2  ;;  %v3074_v22 = vmul.f32 %v8033_v63, %v2871_v10  ;;  %v4360_v16 = vrot.slane %v8144_v50, 4  ;;  %v8285_v39 = vpop.f32.mrf.mxu0  ;;  %v8287_v21 = vpop.f32.mrf.mxu1 }
 0x241   : > { %v3069_v62 = vmul.f32 %v8033_v63, %v9894_v15  ;;  %v4993_v47 = vrot.slane %v8152_v35, 4  ;;  %v2977_v56 = vmul.f32 %v8033_v63, %v2774_v52  ;;  %v2872_v29 = vmax.f32 %v9895_v24, 0.0  ;;  %9896 = vst [vmem:[#allocation28_spill] sm:$0xff] %v8285_v39  ;;  %9897 = vst [vmem:[#allocation29_spill] sm:$0xff] %v8287_v21 }
 0x242   : > { %v3763_v26 = vrot.slane %v3762_v6, 1  ;;  %v3769_v33 = vmax.f32 %v3767_v30, %v3768_v25  ;;  %v8282_v54 = vadd.f32 %v8042_v9, %v3074_v22  ;;  %v2775_v7 = vmax.f32 %v8014_v51, 0.0  ;;  %v2207_v51 = vpop.f32.mrf.mxu0  ;;  %v2599_v22 = vpop.f32.mrf.mxu1 }
 0x243   : > { %v4361_v10 = vrot.slane %v8144_v50, 5  ;;  %v4994_v13 = vrot.slane %v8152_v35, 5  ;;  %v3180_v48 = vadd.f32 %v8042_v9, %v2977_v56  ;;  %v3075_v52 = vmul.f32 %v8033_v63, %v2872_v29 }
 0x244   : > { %v3764_v15 = vmax.f32 %v3762_v6, %v3763_v26  ;;  %v3770_v0 = vrot.slane %v3769_v33, 1  ;;  %v2978_v25 = vmul.f32 %v8033_v63, %v2775_v7  ;;  %v8297_v3 = vadd.f32 %v8042_v9, %v3068_v55  ;;  %v8307_v39 = vpop.f32.mrf.mxu0  ;;  %v8309_v7 = vpop.f32.mrf.mxu1 }
 0x245   : > { %v8300_v24 = vadd.f32 %v8042_v9, %v3069_v62  ;;  %v3358_v21 = vmax.f32 %v8114_v19, %v3180_v48  ;;  %v8304_v56 = vadd.f32 %v8042_v9, %v3075_v52  ;;  %9898 = vst [vmem:[#allocation39_spill] sm:$0xff] %v8307_v39  ;;  %9899 = vst [vmem:[#allocation40_spill] sm:$0xff] %v8309_v7  ;;  %v2873_v19 = vmax.f32 %v8016_v18, 0.0 }
 0x246   : > { %v3771_v6 = vmax.f32 %v3769_v33, %v3770_v0  ;;  %v4546_v29 = vmul.f32 %v4360_v16, %v3764_v15  ;;  %v5179_v26 = vmul.f32 %v4993_v47, %v3764_v15  ;;  %v3181_v30 = vadd.f32 %v8042_v9, %v2978_v25  ;;  %v2212_v16 = vpop.f32.mrf.mxu0  ;;  %v2604_v47 = vpop.f32.mrf.mxu1 }
 0x247   : > { %v3530_v51 = vcombine.high %v3358_v21, %v3358_v21  ;;  %v3772_v55 = vsel %vm3617_vm2, %v3358_v21, -inf  ;;  %v3076_v39 = vmul.f32 %v8033_v63, %v2873_v19  ;;  %v9922_v43 = vmax.f32 %v8260_v41, %v8282_v54 }
 0x248   : > { %v4547_v48 = vmul.f32 %v4361_v10, %v3771_v6  ;;  %v4763_v52 = vrot.slane %v4546_v29, 4  ;;  %v5180_v22 = vmul.f32 %v4994_v13, %v3771_v6  ;;  %v5389_v33 = vrot.slane %v5179_v26, 4  ;;  %v8320_v18 = vpop.f32.mrf.mxu0  ;;  %v8322_v10 = vpop.f32.mrf.mxu1 }
 0x249   : > { %v3773_v15 = vrot.slane %v3772_v55, 4  ;;  %v3779_v0 = vsel %vm3617_vm2, %v3530_v51, -inf  ;;  %v3361_v25 = vmax.f32 %v8129_v40, %v3181_v30  ;;  %9900 = vst [vmem:[#allocation41_spill] sm:$0xff] %v8320_v18  ;;  %9901 = vst [vmem:[#allocation49_spill] sm:$0xff] %v8322_v10  ;;  %v8332_v30 = vadd.f32 %v8042_v9, %v3076_v39 }
 0x24a   : > { %v4764_v21 = vsel %vm4732_vm6, %v4763_v52, %v4762_v8  ;;  %v4765_v7 = vrot.slane %v4547_v48, 3  ;;  %v5390_v62 = vsel %vm4732_vm6, %v5389_v33, %v5388_v46  ;;  %v5391_v45 = vrot.slane %v5180_v22, 3  ;;  %v2215_v46 = vpop.f32.mrf.mxu0  ;;  %v2607_v19 = vpop.f32.mrf.mxu1 }
 0x24b   : > { %v3774_v13 = vmax.f32 %v3772_v55, %v3773_v15  ;;  %v3780_v6 = vrot.slane %v3779_v0, 4  ;;  %v3531_v29 = vcombine.high %v3361_v25, %v3361_v25  ;;  %v3786_v26 = vsel %vm3617_vm2, %v3361_v25, -inf }
 0x24c   : > { %v8326_v51 = vsel %vm4735_vm7, %v4765_v7, %v4764_v21  ;;  %v8329_v40 = vsel %vm4735_vm7, %v5391_v45, %v5390_v62  ;;  %v3787_v8 = vrot.slane %v3786_v26, 4  ;;  %v2776_v22 = vmax.f32 %v8024_v23, 0.0  ;;  %v8341_v39 = vpop.f32.mrf.mxu0  ;;  %v8343_v62 = vpop.f32.mrf.mxu1  ;;  %v6062_v45 = vld [vmem:[%s6754_s28 + $0x40] sm:$0xff]  }
 0x24d   : > { %v3775_v48 = vrot.slane %v3774_v13, 2  ;;  %v3781_v52 = vmax.f32 %v3779_v0, %v3780_v6  ;;  %v3793_v55 = vsel %vm3617_vm2, %v3531_v29, -inf  ;;  %v9902_v33 = vmax.f32 %v7907_v36, 0.0  ;;  %9903 = vst [vmem:[#allocation50_spill] sm:$0xff] %v8341_v39  ;;  %9904 = vst [vmem:[#allocation51_spill] sm:$0xff] %v8343_v62 }
 0x24e   : > { %v3788_v16 = vmax.f32 %v3786_v26, %v3787_v8  ;;  %v3794_v47 = vrot.slane %v3793_v55, 4  ;;  %v9905_v15 = vrot.slane %v8066_v27, 1  ;;  %v2979_v36 = vmul.f32 %v8033_v63, %v2776_v22  ;;  %v2220_v8 = vpop.f32.mrf.mxu0  ;;  %v2612_v46 = vpop.f32.mrf.mxu1 }
 0x24f   : > { %v3070_v7 = vmul.f32 %v8033_v63, %v9902_v33  ;;  %v3776_v23 = vmax.f32 %v3774_v13, %v3775_v48  ;;  %v3782_v25 = vrot.slane %v3781_v52, 2  ;;  %v4362_v21 = vrot.slane %v8144_v50, 6 }
 0x250   : > { %v8348_v0 = vmax.f32 %v8066_v27, %v9905_v15  ;;  %v4995_v6 = vrot.slane %v8152_v35, 6  ;;  %v3789_v29 = vrot.slane %v3788_v16, 2  ;;  %v3795_v26 = vmax.f32 %v3793_v55, %v3794_v47  ;;  %v8361_v39 = vpop.f32.mrf.mxu0  ;;  %v8363_v55 = vpop.f32.mrf.mxu1 }
 0x251   : > { %v3777_v19 = vrot.slane %v3776_v23, 1  ;;  %v3783_v33 = vmax.f32 %v3781_v52, %v3782_v25  ;;  %v3182_v62 = vadd.f32 %v8042_v9, %v2979_v36  ;;  %v2874_v27 = vmax.f32 %v8026_v1, 0.0  ;;  %9906 = vst [vmem:[#allocation52_spill] sm:$0xff] %v8361_v39  ;;  %9907 = vst [vmem:[#allocation53_spill] sm:$0xff] %v8363_v55 }
 0x252   : > { %v8357_v13 = vadd.f32 %v8042_v9, %v3070_v7  ;;  %v4363_v48 = vrot.slane %v8144_v50, 7  ;;  %v4996_v22 = vrot.slane %v8152_v35, 7  ;;  %v3796_v15 = vrot.slane %v3795_v26, 2  ;;  %v2223_v35 = vpop.f32.mrf.mxu0  ;;  %v2615_v46 = vpop.f32.mrf.mxu1 }
 0x253   : > { %v3778_v47 = vmax.f32 %v3776_v23, %v3777_v19  ;;  %v3784_v8 = vrot.slane %v3783_v33, 1  ;;  %v3364_v52 = vmax.f32 %v8134_v4, %v3182_v62  ;;  %v3077_v25 = vmul.f32 %v8033_v63, %v2874_v27 }
 0x254   : > { %v3797_v36 = vmax.f32 %v3795_v26, %v3796_v15  ;;  %v8368_v1 = vunpack.c.h.bf16 %v8120_v53  ;;  %v8370_v7 = vunpack.c.l.bf16 %v6062_v45  ;;  %v2875_v50 = vmax.f32 %v8054_v32, 0.0  ;;  %v8377_v26 = vpop.f32.mrf.mxu0  ;;  %v8379_v53 = vpop.f32.mrf.mxu1 }
 0x255   : > { %v3785_v18 = vmax.f32 %v3783_v33, %v3784_v8  ;;  %v4548_v39 = vmul.f32 %v4362_v21, %v3778_v47  ;;  %v5181_v10 = vmul.f32 %v4995_v6, %v3778_v47  ;;  %v3790_v55 = vmax.f32 %v3788_v16, %v3789_v29 }
 0x256   : > { %9908 = vst [vmem:[#allocation54_spill] sm:$0xff] %v8368_v1  ;;  %9909 = vst [vmem:[#allocation55_spill] sm:$0xff] %v8370_v7  ;;  %v3798_v23 = vrot.slane %v3797_v36, 1  ;;  %v3532_v19 = vcombine.high %v3364_v52, %v3364_v52  ;;  %v3800_v4 = vsel %vm3617_vm2, %v3364_v52, -inf  ;;  %v8375_v62 = vadd.f32 %v8042_v9, %v3077_v25  ;;  %v2228_v29 = vpop.f32.mrf.mxu0  ;;  %v2620_v33 = vpop.f32.mrf.mxu1 }
 0x257   : > { %v4549_v45 = vmul.f32 %v4363_v48, %v3785_v18  ;;  %v4767_v27 = vrot.slane %v4548_v39, 2  ;;  %v5182_v32 = vmul.f32 %v4996_v22, %v3785_v18  ;;  %v5393_v15 = vrot.slane %v5181_v10, 2 }
 0x258   : > { %v3799_v35 = vmax.f32 %v3797_v36, %v3798_v23  ;;  %v4364_v21 = vrot.slane %v8368_v1, 1  ;;  %v3801_v6 = vrot.slane %v3800_v4, 4  ;;  %v3078_v16 = vmul.f32 %v8033_v63, %v2875_v50  ;;  %v8389_v22 = vpop.f32.mrf.mxu0  ;;  %v8391_v36 = vpop.f32.mrf.mxu1 }
 0x259   : > { %v4768_v47 = vsel %vm4738_vm8, %v4767_v27, %v8326_v51  ;;  %v4769_v8 = vrot.slane %v4549_v45, 1  ;;  %v5394_v52 = vsel %vm4738_vm8, %v5393_v15, %v8329_v40  ;;  %v5395_v25 = vrot.slane %v5182_v32, 1 }
 0x25a   : > { %v3791_v48 = vrot.slane %v3790_v55, 1  ;;  %v4997_v18 = vrot.slane %v8370_v7, 1  ;;  %v3802_v10 = vmax.f32 %v3800_v4, %v3801_v6  ;;  %v3807_v39 = vsel %vm3617_vm2, %v3532_v19, -inf  ;;  %v2231_v32 = vpop.f32.mrf.mxu0  ;;  %v2623_v15 = vpop.f32.mrf.mxu1  ;;  %v9914_v6 = vld [vmem:[#allocation26_spill] sm:$0xff] }
 0x25b   : > { %v4770_v50 = vsel %vm4741_vm9, %v4769_v8, %v4768_v47  ;;  %v5396_v46 = vsel %vm4741_vm9, %v5395_v25, %v5394_v52  ;;  %v3808_v51 = vrot.slane %v3807_v39, 4  ;;  %v9910_v40 = vrot.slane %v7677_v12, 5 }
 0x25c   : > { %v8403_v4 = vadd.f32 %v8235_v2, %v4770_v50  ;;  %v8406_v19 = vadd.f32 %v8238_v42, %v5396_v46  ;;  %v4551_v27 = vmul.f32 %v4364_v21, %v3799_v35  ;;  %v8410_v29 = vadd.f32 %v8042_v9, %v9914_v6  ;;  %v8417_v42 = vpop.f32.mrf.mxu1 }
 0x25d   : > { %v8400_v45 = vmul.f32 %v9910_v40, %v8348_v0  ;;  %v3803_v33 = vrot.slane %v3802_v10, 2  ;;  %v3809_v47 = vmax.f32 %v3807_v39, %v3808_v51  ;;  %v3281_v8 = vadd.f32 %v8042_v9, %v3078_v16  ;;  %v8415_v40 = vpop.f32.mrf.mxu0 }
 0x25e   : > { %9912 = vst [vmem:[#allocation57_spill] sm:$0xff] %v8403_v4  ;;  %9913 = vst [vmem:[#allocation58_spill] sm:$0xff] %v8406_v19  ;;  %v3792_v2 = vmax.f32 %v3790_v55, %v3791_v48  ;;  %v5184_v50 = vmul.f32 %v4997_v18, %v3799_v35  ;;  %v9916_v21 = vrot.slane %v7699_v14, 5  ;;  %v9918_v16 = vmax.f32 %v8088_v11, %v8164_v59  ;;  %v2628_v6 = vpop.f32.mrf.mxu1 }
 0x25f   : > { %9911 = vst [vmem:[#allocation56_spill] sm:$0xff] %v8400_v45  ;;  %9915 = vst [vmem:[#allocation26_spill] sm:$0xff] %v8410_v29  ;;  %v3804_v32 = vmax.f32 %v3802_v10, %v3803_v33  ;;  %v3810_v15 = vrot.slane %v3809_v47, 2  ;;  %v4771_v55 = vrot.slane %v4551_v27, 7  ;;  %v4365_v35 = vrot.slane %v8368_v1, 2  ;;  %v2236_v18 = vpop.f32.mrf.mxu0 }
 0x260   : > { %v8422_v46 = vmul.f32 %v9916_v21, %v8348_v0  ;;  %v8427_v39 = vmax.f32 %v9918_v16, %v3281_v8  ;;  %v2877_v48 = vmax.f32 %v8124_v61, 0.0  ;;  %v4998_v0 = vrot.slane %v8370_v7, 2  ;;  %v8439_v21 = vpop.f32.mrf.mxu1 }
 0x261   : > { %v3805_v25 = vrot.slane %v3804_v32, 1  ;;  %v3811_v52 = vmax.f32 %v3809_v47, %v3810_v15  ;;  %v2878_v10 = vmax.f32 %v8156_v34, 0.0  ;;  %v4550_v33 = vmul.f32 %v8368_v1, %v3792_v2  ;;  %v8437_v27 = vpop.f32.mrf.mxu0 }
 0x262   : > { %9917 = vst [vmem:[#allocation59_spill] sm:$0xff] %v8422_v46  ;;  %v5397_v11 = vrot.slane %v5184_v50, 7  ;;  %v4366_v59 = vrot.slane %v8368_v1, 3  ;;  %v3080_v8 = vmul.f32 %v8033_v63, %v2877_v48  ;;  %v4999_v18 = vrot.slane %v8370_v7, 3  ;;  %v2631_v48 = vpop.f32.mrf.mxu1 }
 0x263   : > { %v3806_v61 = vmax.f32 %v3804_v32, %v3805_v25  ;;  %v3812_v16 = vrot.slane %v3811_v52, 1  ;;  %v3081_v47 = vmul.f32 %v8033_v63, %v2878_v10  ;;  %v4772_v15 = vsel %vm4723_vm3, %v4771_v55, %v4550_v33  ;;  %v2239_v51 = vpop.f32.mrf.mxu0 }
 0x264   : > { %v5183_v34 = vmul.f32 %v8370_v7, %v3792_v2  ;;  %v2777_v50 = vmax.f32 %v8052_v60, 0.0  ;;  %v3283_v6 = vadd.f32 %v8042_v9, %v3080_v8  ;;  %v9919_v55 = vmax.f32 %v8104_v28, %v8190_v37  ;;  %v8458_v51 = vpop.f32.mrf.mxu1 }
 0x265   : > { %v3813_v23 = vmax.f32 %v3811_v52, %v3812_v16  ;;  %v4552_v38 = vmul.f32 %v4365_v35, %v3806_v61  ;;  %v5185_v45 = vmul.f32 %v4998_v0, %v3806_v61  ;;  %v3284_v25 = vadd.f32 %v8042_v9, %v3081_v47  ;;  %v8456_v2 = vpop.f32.mrf.mxu0  ;;  %9921 = vst [vmem:[#allocation61_spill] sm:$0xff] %v8458_v51 }
 0x266   : > { %v5398_v32 = vsel %vm4723_vm3, %v5397_v11, %v5183_v34  ;;  %v8453_v10 = vmax.f32 %v9919_v55, %v3283_v6  ;;  %v2879_v60 = vmax.f32 %v8179_v49, 0.0  ;;  %9920 = vst [vmem:[#allocation60_spill] sm:$0xff] %v8456_v2  ;;  %v2980_v11 = vmul.f32 %v8033_v63, %v2777_v50  ;;  %v2636_v61 = vpop.f32.mrf.mxu1  ;;  %v9926_v6 = vld [vmem:[#allocation38_spill] sm:$0xff] }
 0x267   : > { %v4553_v52 = vmul.f32 %v4366_v59, %v3813_v23  ;;  %v4773_v35 = vrot.slane %v4552_v38, 6  ;;  %v5186_v0 = vmul.f32 %v4999_v18, %v3813_v23  ;;  %v5399_v33 = vrot.slane %v5185_v45, 6  ;;  %v2244_v49 = vpop.f32.mrf.mxu0 }
 0x268   : > { %v8465_v28 = vmax.f32 %v9922_v43, %v3284_v25  ;;  %v3082_v37 = vmul.f32 %v8033_v63, %v2879_v60  ;;  %v2778_v45 = vmax.f32 %v8083_v5, 0.0  ;;  %v3079_v59 = vmul.f32 %v8033_v63, %v2876_v20  ;;  %v8476_v34 = vpop.f32.mrf.mxu1  ;;  %v9927_v25 = vld [vmem:[#allocation47_spill] sm:$0xff]  ;;  %v9931_v43 = vld [vmem:[#allocation33_spill] sm:$0xff]  ;;  %v9932_v49 = vld [vmem:[#allocation12_spill] sm:$0xff] }
 0x269   : > { %v4774_v16 = vsel %vm4726_vm4, %v4773_v35, %v4772_v15  ;;  %v4775_v47 = vrot.slane %v4553_v52, 5  ;;  %v5400_v38 = vsel %vm4726_vm4, %v5399_v33, %v5398_v32  ;;  %v5401_v23 = vrot.slane %v5186_v0, 5  ;;  %v8474_v54 = vpop.f32.mrf.mxu0  ;;  %9923 = vst [vmem:[#allocation62_spill] sm:$0xff] %v8476_v34  ;;  %v9928_v32 = vld [vmem:[#allocation32_spill] sm:$0xff] }
 0x26a   : > { %v3285_v18 = vadd.f32 %v8042_v9, %v3082_v37  ;;  %v2880_v41 = vmax.f32 %v8195_v58, 0.0  ;;  %v2881_v48 = vmax.f32 %v9926_v6, 0.0  ;;  %v2784_v5 = vmax.f32 %v9927_v25, 0.0  ;;  %v9930_v52 = vld [vmem:[#allocation48_spill] sm:$0xff]  ;;  %v2639_v33 = vpop.f32.mrf.mxu1 }
 0x26b   : > { %v8479_v50 = vsel %vm4729_vm5, %v4775_v47, %v4774_v16  ;;  %v8482_v15 = vsel %vm4729_vm5, %v5401_v23, %v5400_v38  ;;  %v2779_v20 = vmax.f32 %v9928_v32, 0.0  ;;  %v9929_v55 = vmax.f32 %v8297_v3, %v8304_v56  ;;  %v2247_v0 = vpop.f32.mrf.mxu0  ;;  %v9933_v3 = vld [vmem:[#allocation37_spill] sm:$0xff] }
 0x26c   : > { %9924 = vst [vmem:[#allocation63_spill] sm:$0xff] %v8479_v50  ;;  %9925 = vst [vmem:[#allocation64_spill] sm:$0xff] %v8482_v15  ;;  %v3083_v60 = vmul.f32 %v8033_v63, %v2880_v41  ;;  %v2882_v35 = vmax.f32 %v9930_v52, 0.0  ;;  %v2780_v37 = vmax.f32 %v9931_v43, 0.0  ;;  %v2781_v61 = vmax.f32 %v9932_v49, 0.0  ;;  %v8506_v6 = vpop.f32.mrf.mxu1 }
 0x26d   : > { %v8490_v58 = vmax.f32 %v9929_v55, %v3285_v18  ;;  %v3084_v16 = vmul.f32 %v8033_v63, %v2881_v48  ;;  %v2987_v47 = vmul.f32 %v8033_v63, %v2784_v5  ;;  %v8499_v38 = vadd.f32 %v8042_v9, %v2980_v11  ;;  %v8504_v41 = vpop.f32.mrf.mxu0  ;;  %9935 = vst [vmem:[#allocation47_spill] sm:$0xff] %v8506_v6 }
 0x26e   : > { %v2782_v56 = vmax.f32 %v9933_v3, 0.0  ;;  %v3286_v23 = vadd.f32 %v8042_v9, %v3083_v60  ;;  %v3085_v18 = vmul.f32 %v8033_v63, %v2882_v35  ;;  %9934 = vst [vmem:[#allocation38_spill] sm:$0xff] %v8504_v41  ;;  %v2981_v25 = vmul.f32 %v8033_v63, %v2778_v45  ;;  %v2644_v45 = vpop.f32.mrf.mxu1 }
 0x26f   : > { %v3282_v32 = vadd.f32 %v8042_v9, %v3079_v59  ;;  %v3287_v48 = vadd.f32 %v8042_v9, %v3084_v16  ;;  %v8512_v5 = vadd.f32 %v8042_v9, %v2987_v47  ;;  %v2982_v11 = vmul.f32 %v8033_v63, %v2779_v20  ;;  %v2252_v0 = vpop.f32.mrf.mxu0 }
 0x270   : > { %v9936_v55 = vmax.f32 %v8300_v24, %v8332_v30  ;;  %v3288_v52 = vadd.f32 %v8042_v9, %v3085_v18  ;;  %v2883_v35 = vmax.f32 %v8229_v44, 0.0  ;;  %v2983_v59 = vmul.f32 %v8033_v63, %v2780_v37  ;;  %v8537_v37 = vpop.f32.mrf.mxu1  ;;  %v9943_v18 = vld [vmem:[#allocation36_spill] sm:$0xff] }
 0x271   : > { %v2984_v33 = vmul.f32 %v8033_v63, %v2781_v61  ;;  %v9937_v43 = vmax.f32 %v8357_v13, %v8375_v62  ;;  %v2985_v30 = vmul.f32 %v8033_v63, %v2782_v56  ;;  %v2786_v16 = vmax.f32 %v8248_v17, 0.0  ;;  %v8535_v47 = vpop.f32.mrf.mxu0  ;;  %9939 = vst [vmem:[#allocation48_spill] sm:$0xff] %v8537_v37  ;;  %v9940_v13 = vld [vmem:[#allocation46_spill] sm:$0xff]  ;;  %v9941_v62 = vld [vmem:[#allocation11_spill] sm:$0xff] }
 0x272   : > { %v8518_v60 = vmax.f32 %v9936_v55, %v3286_v23  ;;  %v3430_v20 = vmax.f32 %v8427_v39, %v3288_v52  ;;  %v3086_v44 = vmul.f32 %v8033_v63, %v2883_v35  ;;  %9938 = vst [vmem:[#allocation32_spill] sm:$0xff] %v8535_v47  ;;  %v8540_v61 = vadd.f32 %v8042_v9, %v2981_v25  ;;  %v2647_v0 = vpop.f32.mrf.mxu1 }
 0x273   : > { %v8527_v49 = vmax.f32 %v9937_v43, %v3287_v48  ;;  %v9942_v3 = vmax.f32 %v9940_v13, %v9941_v62  ;;  %v2783_v48 = vmax.f32 %v9943_v18, 0.0  ;;  %v2884_v56 = vmax.f32 %v8250_v57, 0.0  ;;  %v2255_v35 = vpop.f32.mrf.mxu0 }
 0x274   : > { %v3554_v39 = vcombine.high %v3430_v20, %v3430_v20  ;;  %v4108_v55 = vsel %vm3617_vm2, %v3430_v20, -inf  ;;  %v3289_v17 = vadd.f32 %v8042_v9, %v3086_v44  ;;  %v2989_v52 = vmul.f32 %v8033_v63, %v2786_v16 }
 0x275   : > { %v3432_v23 = vmax.f32 %v9942_v3, %v3282_v32  ;;  %v8551_v25 = vadd.f32 %v8042_v9, %v2982_v11  ;;  %v8554_v45 = vadd.f32 %v8042_v9, %v2983_v59  ;;  %v4109_v32 = vrot.slane %v4108_v55, 4  ;;  %v8566_v13 = vpop.f32.mrf.mxu0  ;;  %v8568_v11 = vpop.f32.mrf.mxu1 }
 0x276   : > { %v3087_v43 = vmul.f32 %v8033_v63, %v2884_v56  ;;  %v8558_v57 = vadd.f32 %v8042_v9, %v2984_v33  ;;  %v8561_v20 = vadd.f32 %v8042_v9, %v2985_v30  ;;  %v8564_v16 = vadd.f32 %v8042_v9, %v2989_v52  ;;  %9946 = vst [vmem:[#allocation37_spill] sm:$0xff] %v8566_v13 }
 0x277   : > { %9944 = vst [vmem:[#allocation33_spill] sm:$0xff] %v8554_v45  ;;  %v3433_v44 = vmax.f32 %v3432_v23, %v3289_v17  ;;  %9947 = vst [vmem:[#allocation46_spill] sm:$0xff] %v8568_v11  ;;  %v8571_v59 = vmul.f32 %v8033_v63, %v2783_v48  ;;  %v4115_v62 = vsel %vm3617_vm2, %v3554_v39, -inf  ;;  %v2787_v56 = vmax.f32 %v8263_v31, 0.0  ;;  %v2260_v17 = vpop.f32.mrf.mxu0  ;;  %v2652_v52 = vpop.f32.mrf.mxu1  ;;  %v9948_v63 = vld [vmem:[#allocation30_spill] sm:$0xff] }
 0x278   : > { %9945 = vst [vmem:[#allocation12_spill] sm:$0xff] %v8564_v16  ;;  %v3290_v33 = vadd.f32 %v8042_v9, %v3087_v43  ;;  %v4110_v35 = vmax.f32 %v4108_v55, %v4109_v32  ;;  %v2785_v48 = vmax.f32 %v9948_v63, 0.0  ;;  %v9949_v17 = vld [vmem:[#allocation31_spill] sm:$0xff]  ;;  %v4116_v63 = vrot.slane %v4115_v62, 4 }
 0x279   : > { %v3555_v18 = vcombine.high %v3433_v44, %v3433_v44  ;;  %v4122_v30 = vsel %vm3617_vm2, %v3433_v44, -inf  ;;  %v8587_v44 = vld [vmem:[%s9720_s2] ss:$0 sm:$0xff]  ;;  %v2885_v52 = vmax.f32 %v9949_v17, 0.0  ;;  %v8591_v55 = vpop.f32.mrf.mxu0  ;;  %v8593_v32 = vpop.f32.mrf.mxu1 }
 0x27a   : > { %v4123_v39 = vrot.slane %v4122_v30, 4  ;;  %v3436_v0 = vmax.f32 %v8453_v10, %v3290_v33  ;;  %v2990_v31 = vmul.f32 %v8587_v44, %v2787_v56  ;;  %9950 = vst [vmem:[#allocation11_spill] sm:$0xff] %v8591_v55  ;;  %9951 = vst [vmem:[#allocation36_spill] sm:$0xff] %v8593_v32  ;;  %v6489_v33 = vld [vmem:[%s6754_s28 + $0x20] sm:$0xff]   ;;  %v8605_v56 = vld [vmem:[%s9721_s3] ss:$0 sm:$0xff] }
 0x27b   : > { %v4129_v43 = vsel %vm3617_vm2, %v3555_v18, -inf  ;;  %v8596_v23 = vunpack.c.h.bf16 %v6489_v33  ;;  %v8599_v18 = vld [vmem:[%s6754_s28 + $0x58] sm:$0xff]   ;;  %v3088_v3 = vmul.f32 %v8587_v44, %v2885_v52  ;;  %v4111_v46 = vrot.slane %v4110_v35, 2 }
 0x27c   : > { %v4124_v8 = vmax.f32 %v4122_v30, %v4123_v39  ;;  %v4130_v10 = vrot.slane %v4129_v43, 4  ;;  %v3556_v24 = vcombine.high %v3436_v0, %v3436_v0  ;;  %v4136_v9 = vsel %vm3617_vm2, %v3436_v0, -inf  ;;  %v2263_v30 = vpop.f32.mrf.mxu0  ;;  %v2655_v39 = vpop.f32.mrf.mxu1 }
 0x27d   : > { %v8608_v17 = vadd.f32 %v8605_v56, %v2990_v31  ;;  %v2988_v33 = vmul.f32 %v8587_v44, %v2785_v48  ;;  %v4137_v11 = vrot.slane %v4136_v9, 4  ;;  %v3291_v55 = vadd.f32 %v8605_v56, %v3088_v3 }
 0x27e   : > { %v4125_v29 = vrot.slane %v4124_v8, 2  ;;  %v4131_v32 = vmax.f32 %v4129_v43, %v4130_v10  ;;  %v4143_v0 = vsel %vm3617_vm2, %v3556_v24, -inf  ;;  %v8616_v19 = vpop.f32.mrf.mxu0  ;;  %v8618_v31 = vpop.f32.mrf.mxu1  ;;  %v4117_v52 = vmax.f32 %v4115_v62, %v4116_v63 }
 0x27f   : > { %9952 = vst [vmem:[#allocation30_spill] sm:$0xff] %v8608_v17  ;;  %9953 = vst [vmem:[#allocation31_spill] sm:$0xff] %v8616_v19  ;;  %v8621_v4 = vunpack.c.l.bf16 %v8599_v18  ;;  %v4138_v43 = vmax.f32 %v4136_v9, %v4137_v11  ;;  %v4144_v10 = vrot.slane %v4143_v0, 4  ;;  %v3439_v24 = vmax.f32 %v8465_v28, %v3291_v55 }
 0x280   : > { %9954 = vst [vmem:[#allocation65_spill] sm:$0xff] %v8618_v31  ;;  %v4126_v30 = vmax.f32 %v4124_v8, %v4125_v29  ;;  %v4132_v39 = vrot.slane %v4131_v32, 2  ;;  %v2268_v6 = vpop.f32.mrf.mxu0  ;;  %v2660_v37 = vpop.f32.mrf.mxu1  ;;  %v4112_v34 = vmax.f32 %v4110_v35, %v4111_v46  ;;  %v8626_v3 = vadd.f32 %v8605_v56, %v2988_v33 }
 0x281   : > { %v4406_v62 = vrot.slane %v8596_v23, 1  ;;  %v4139_v8 = vrot.slane %v4138_v43, 2  ;;  %v4145_v63 = vmax.f32 %v4143_v0, %v4144_v10  ;;  %v3557_v31 = vcombine.high %v3439_v24, %v3439_v24 }
 0x282   : > { %v4127_v19 = vrot.slane %v4126_v30, 1  ;;  %v4133_v29 = vmax.f32 %v4131_v32, %v4132_v39  ;;  %v8629_v15 = vpop.f32.mrf.mxu0  ;;  %v8631_v48 = vpop.f32.mrf.mxu1  ;;  %v4118_v11 = vrot.slane %v4117_v52, 2  ;;  %v5039_v28 = vrot.slane %v8621_v4, 1 }
 0x283   : > { %9955 = vst [vmem:[#allocation66_spill] sm:$0xff] %v8629_v15  ;;  %9956 = vst [vmem:[#allocation67_spill] sm:$0xff] %v8631_v48  ;;  %v4407_v6 = vrot.slane %v8596_v23, 2  ;;  %v4408_v46 = vrot.slane %v8596_v23, 3  ;;  %v4140_v9 = vmax.f32 %v4138_v43, %v4139_v8  ;;  %v4146_v55 = vrot.slane %v4145_v63, 2 }
 0x284   : > { %v4128_v37 = vmax.f32 %v4126_v30, %v4127_v19  ;;  %v4134_v35 = vrot.slane %v4133_v29, 1  ;;  %v2271_v33 = vpop.f32.mrf.mxu0  ;;  %v2663_v32 = vpop.f32.mrf.mxu1  ;;  %v5040_v0 = vrot.slane %v8621_v4, 2  ;;  %v5041_v39 = vrot.slane %v8621_v4, 3 }
 0x285   : > { %v4150_v10 = vsel %vm3617_vm2, %v3439_v24, -inf  ;;  %v4157_v48 = vsel %vm3617_vm2, %v3557_v31, -inf  ;;  %v4113_v15 = vrot.slane %v4112_v34, 1  ;;  %v4141_v13 = vrot.slane %v4140_v9, 1 }
 0x286   : > { %v4135_v50 = vmax.f32 %v4133_v29, %v4134_v35  ;;  %v8641_v47 = vpop.f32.mrf.mxu0  ;;  %v4119_v19 = vmax.f32 %v4117_v52, %v4118_v11  ;;  %v4147_v30 = vmax.f32 %v4145_v63, %v4146_v55  ;;  %v4151_v43 = vrot.slane %v4150_v10, 4  ;;  %v8643_v33 = vpop.f32.mrf.mxu1 }
 0x287   : > { %9957 = vst [vmem:[#allocation68_spill] sm:$0xff] %v8641_v47  ;;  %v4158_v8 = vrot.slane %v4157_v48, 4  ;;  %9958 = vst [vmem:[#allocation69_spill] sm:$0xff] %v8643_v33  ;;  %v4598_v32 = vmul.f32 %v8596_v23, %v4128_v37  ;;  %v4142_v24 = vmax.f32 %v4140_v9, %v4141_v13  ;;  %v5231_v31 = vmul.f32 %v8621_v4, %v4128_v37 }
 0x288   : > { %v4599_v1 = vmul.f32 %v4406_v62, %v4135_v50  ;;  %v5232_v41 = vmul.f32 %v5039_v28, %v4135_v50  ;;  %v2276_v51 = vpop.f32.mrf.mxu0  ;;  %v4148_v29 = vrot.slane %v4147_v30, 1  ;;  %v4152_v35 = vmax.f32 %v4150_v10, %v4151_v43  ;;  %v2668_v7 = vpop.f32.mrf.mxu1  ;;  %v9960_v10 = vld [vmem:[#allocation29_spill] sm:$0xff] }
 0x289   : > { %v4159_v2 = vmax.f32 %v4157_v48, %v4158_v8  ;;  %v4600_v52 = vmul.f32 %v4407_v6, %v4142_v24  ;;  %v5233_v63 = vmul.f32 %v5040_v0, %v4142_v24  ;;  %v4114_v55 = vmax.f32 %v4112_v34, %v4113_v15  ;;  %v9959_v6 = vld [vmem:[#allocation28_spill] sm:$0xff] }
 0x28a   : > { %v4855_v17 = vrot.slane %v4599_v1, 7  ;;  %v5481_v47 = vrot.slane %v5232_v41, 7  ;;  %v8647_v11 = vpop.f32.mrf.mxu0  ;;  %v4120_v33 = vrot.slane %v4119_v19, 1  ;;  %v4149_v45 = vmax.f32 %v4147_v30, %v4148_v29  ;;  %v8649_v62 = vpop.f32.mrf.mxu1 }
 0x28b   : > { %v4153_v16 = vrot.slane %v4152_v35, 2  ;;  %v4857_v13 = vrot.slane %v4600_v52, 6  ;;  %v5483_v28 = vrot.slane %v5233_v63, 6  ;;  %v2788_v37 = vmax.f32 %v9959_v6, 0.0 }
 0x28c   : > { %v4856_v51 = vsel %vm4723_vm3, %v4855_v17, %v4598_v32  ;;  %v5482_v50 = vsel %vm4723_vm3, %v5481_v47, %v5231_v31  ;;  %v2279_v48 = vpop.f32.mrf.mxu0  ;;  %v4601_v7 = vmul.f32 %v4408_v46, %v4149_v45  ;;  %v5234_v1 = vmul.f32 %v5041_v39, %v4149_v45  ;;  %v2671_v9 = vpop.f32.mrf.mxu1 }
 0x28d   : > { %v4154_v41 = vmax.f32 %v4152_v35, %v4153_v16  ;;  %v4858_v34 = vsel %vm4726_vm4, %v4857_v13, %v4856_v51  ;;  %v5484_v15 = vsel %vm4726_vm4, %v5483_v28, %v5482_v50  ;;  %v4160_v0 = vrot.slane %v4159_v2, 2 }
 0x28e   : > { %v2886_v30 = vmax.f32 %v9960_v10, 0.0  ;;  %v8657_v43 = vpop.f32.mrf.mxu0  ;;  %v4859_v17 = vrot.slane %v4601_v7, 5  ;;  %v5485_v47 = vrot.slane %v5234_v1, 5  ;;  %v5042_v32 = vrot.slane %v8621_v4, 4  ;;  %v8660_v46 = vpop.f32.mrf.mxu1  ;;  %v9968_v10 = vld [vmem:[#allocation40_spill] sm:$0xff] }
 0x28f   : > { %v4155_v8 = vrot.slane %v4154_v41, 1  ;;  %v4121_v45 = vmax.f32 %v4119_v19, %v4120_v33  ;;  %v9961_v16 = vrot.slane %v7677_v12, 6  ;;  %v5038_v24 = vrot.slane %v7699_v14, 7 }
 0x290   : > { %v3089_v31 = vmul.f32 %v8587_v44, %v2886_v30  ;;  %v2284_v29 = vpop.f32.mrf.mxu0  ;;  %v4860_v35 = vsel %vm4729_vm5, %v4859_v17, %v4858_v34  ;;  %v5486_v52 = vsel %vm4729_vm5, %v5485_v47, %v5484_v15  ;;  %v2991_v51 = vmul.f32 %v8587_v44, %v2788_v37  ;;  %v2676_v50 = vpop.f32.mrf.mxu1 }
 0x291   : > { %v8664_v39 = vmul.f32 %v9961_v16, %v4114_v55  ;;  %v4156_v63 = vmax.f32 %v4154_v41, %v4155_v8  ;;  %v8673_v19 = vadd.f32 %v8605_v56, %v8571_v59  ;;  %v4161_v13 = vmax.f32 %v4159_v2, %v4160_v0 }
 0x292   : > { %v3292_v28 = vadd.f32 %v8605_v56, %v3089_v31  ;;  %v8678_v48 = vpop.f32.mrf.mxu0  ;;  %v9963_v7 = vrot.slane %v7699_v14, 6  ;;  %v4410_v41 = vrot.slane %v8596_v23, 5  ;;  %v9965_v6 = vrot.slane %v8596_v23, 4  ;;  %v8687_v59 = vpop.f32.mrf.mxu1 }
 0x293   : > { %9962 = vst [vmem:[#allocation28_spill] sm:$0xff] %v8664_v39  ;;  %v5235_v9 = vmul.f32 %v5042_v32, %v4156_v63  ;;  %v9966_v34 = vrot.slane %v7677_v12, 7  ;;  %v2887_v14 = vmax.f32 %v9968_v10, 0.0  ;;  %v8696_v30 = vmul.f32 %v5038_v24, %v4121_v45 }
 0x294   : > { %v8682_v1 = vmul.f32 %v9963_v7, %v4114_v55  ;;  %v4602_v37 = vmul.f32 %v9965_v6, %v4156_v63  ;;  %v3442_v0 = vmax.f32 %v8490_v58, %v3292_v28  ;;  %v2287_v55 = vpop.f32.mrf.mxu0  ;;  %v8699_v8 = vadd.f32 %v8605_v56, %v2991_v51  ;;  %v2679_v32 = vpop.f32.mrf.mxu1  ;;  %v9972_v6 = vld [vmem:[#allocation39_spill] sm:$0xff] }
 0x295   : > { %v8691_v15 = vmul.f32 %v9966_v34, %v4121_v45  ;;  %9969 = vst [vmem:[#allocation40_spill] sm:$0xff] %v8696_v30  ;;  %v5487_v47 = vrot.slane %v5235_v9, 4  ;;  %v4162_v16 = vrot.slane %v4161_v13, 1  ;;  %v3090_v29 = vmul.f32 %v8587_v44, %v2887_v14  ;;  %v9973_v14 = vld [vmem:[#allocation49_spill] sm:$0xff] }
 0x296   : > { %9964 = vst [vmem:[#allocation29_spill] sm:$0xff] %v8682_v1  ;;  %v4861_v17 = vrot.slane %v4602_v37, 4  ;;  %v3558_v31 = vcombine.high %v3442_v0, %v3442_v0  ;;  %v4164_v12 = vsel %vm3617_vm2, %v3442_v0, -inf  ;;  %v8703_v63 = vpop.f32.mrf.mxu0  ;;  %v8712_v51 = vpop.f32.mrf.mxu1  ;;  %v2789_v37 = vmax.f32 %v9972_v6, 0.0 }
 0x297   : > { %9967 = vst [vmem:[#allocation70_spill] sm:$0xff] %v8691_v15  ;;  %v8710_v45 = vsel %vm4732_vm6, %v5487_v47, %v5486_v52  ;;  %v4165_v24 = vrot.slane %v4164_v12, 4  ;;  %v3293_v9 = vadd.f32 %v8605_v56, %v3090_v29  ;;  %v2888_v55 = vmax.f32 %v9973_v14, 0.0 }
 0x298   : > { %v8707_v50 = vsel %vm4732_vm6, %v4861_v17, %v4860_v35  ;;  %9971 = vst [vmem:[#allocation72_spill] sm:$0xff] %v8710_v45  ;;  %v4171_v7 = vsel %vm3617_vm2, %v3558_v31, -inf  ;;  %v2292_v34 = vpop.f32.mrf.mxu0  ;;  %v2684_v52 = vpop.f32.mrf.mxu1  ;;  %v4163_v17 = vmax.f32 %v4161_v13, %v4162_v16  ;;  %v5043_v47 = vrot.slane %v8621_v4, 5 }
 0x299   : > { %9970 = vst [vmem:[#allocation71_spill] sm:$0xff] %v8707_v50  ;;  %v4166_v10 = vmax.f32 %v4164_v12, %v4165_v24  ;;  %v4172_v35 = vrot.slane %v4171_v7, 4  ;;  %v3445_v31 = vmax.f32 %v8518_v60, %v3293_v9  ;;  %v3091_v12 = vmul.f32 %v8587_v44, %v2888_v55  ;;  %v9975_v52 = vld [vmem:[#allocation41_spill] sm:$0xff] }
 0x29a   : > { %v8724_v6 = vpop.f32.mrf.mxu0  ;;  %v8728_v24 = vpop.f32.mrf.mxu1  ;;  %v2992_v13 = vmul.f32 %v8587_v44, %v2789_v37  ;;  %v2790_v58 = vmax.f32 %v9975_v52, 0.0  ;;  %v8736_v33 = vmul.f32 %v4410_v41, %v4163_v17  ;;  %v8743_v52 = vmul.f32 %v5043_v47, %v4163_v17  ;;  %v9980_v17 = vld [vmem:[#allocation50_spill] sm:$0xff] }
 0x29b   : > { %v4167_v29 = vrot.slane %v4166_v10, 2  ;;  %v4173_v34 = vmax.f32 %v4171_v7, %v4172_v35  ;;  %9974 = vst [vmem:[#allocation39_spill] sm:$0xff] %v8728_v24  ;;  %v3559_v16 = vcombine.high %v3445_v31, %v3445_v31  ;;  %v4178_v14 = vsel %vm3617_vm2, %v3445_v31, -inf  ;;  %v6060_v35 = vld [vmem:[%s6754_s28 + $0x28] sm:$0xff]  }
 0x29c   : > { %v2295_v28 = vpop.f32.mrf.mxu0  ;;  %v4179_v7 = vrot.slane %v4178_v14, 4  ;;  %v2687_v32 = vpop.f32.mrf.mxu1  ;;  %9976 = vst [vmem:[#allocation49_spill] sm:$0xff] %v8736_v33  ;;  %v3294_v0 = vadd.f32 %v8605_v56, %v3091_v12  ;;  %9978 = vst [vmem:[#allocation73_spill] sm:$0xff] %v8743_v52  ;;  %v8748_v2 = vadd.f32 %v8605_v56, %v2992_v13  ;;  %v8750_v41 = vunpack.c.l.bf16 %v6060_v35  ;;  %v9981_v13 = vld [vmem:[#allocation51_spill] sm:$0xff] }
 0x29d   : > { %v4174_v60 = vrot.slane %v4173_v34, 2  ;;  %v4185_v37 = vsel %vm3617_vm2, %v3559_v16, -inf  ;;  %v4168_v28 = vmax.f32 %v4166_v10, %v4167_v29  ;;  %v2993_v32 = vmul.f32 %v8587_v44, %v2790_v58 }
 0x29e   : > { %v8741_v31 = vpop.f32.mrf.mxu0  ;;  %v4180_v30 = vmax.f32 %v4178_v14, %v4179_v7  ;;  %v4186_v9 = vrot.slane %v4185_v37, 4  ;;  %v8745_v1 = vpop.f32.mrf.mxu1  ;;  %v3448_v16 = vmax.f32 %v8527_v49, %v3294_v0  ;;  %v2791_v47 = vmax.f32 %v9980_v17, 0.0 }
 0x29f   : > { %9977 = vst [vmem:[#allocation41_spill] sm:$0xff] %v8741_v31  ;;  %9979 = vst [vmem:[#allocation74_spill] sm:$0xff] %v8745_v1  ;;  %v4175_v12 = vmax.f32 %v4173_v34, %v4174_v60  ;;  %v2889_v39 = vmax.f32 %v9981_v13, 0.0  ;;  %v4169_v50 = vrot.slane %v4168_v28, 1  ;;  %v8762_v0 = vunpack.c.h.bf16 %v8599_v18 }
 0x2a0   : > { %v2300_v55 = vpop.f32.mrf.mxu0  ;;  %v4181_v45 = vrot.slane %v4180_v30, 2  ;;  %v4187_v15 = vmax.f32 %v4185_v37, %v4186_v9  ;;  %v2692_v10 = vpop.f32.mrf.mxu1  ;;  %v3560_v14 = vcombine.high %v3448_v16, %v3448_v16  ;;  %v4192_v7 = vsel %vm3617_vm2, %v3448_v16, -inf }
 0x2a1   : > { %v4413_v9 = vrot.slane %v8750_v41, 1  ;;  %v4193_v55 = vrot.slane %v4192_v7, 4  ;;  %v4176_v17 = vrot.slane %v4175_v12, 1  ;;  %v8771_v13 = vadd.f32 %v8605_v56, %v2993_v32 }
 0x2a2   : > { %v8758_v35 = vpop.f32.mrf.mxu0  ;;  %v4182_v49 = vmax.f32 %v4180_v30, %v4181_v45  ;;  %v8764_v34 = vpop.f32.mrf.mxu1  ;;  %v4188_v60 = vrot.slane %v4187_v15, 2  ;;  %v4199_v37 = vsel %vm3617_vm2, %v3560_v14, -inf  ;;  %v2994_v30 = vmul.f32 %v8587_v44, %v2791_v47 }
 0x2a3   : > { %9982 = vst [vmem:[#allocation50_spill] sm:$0xff] %v8758_v35  ;;  %9983 = vst [vmem:[#allocation51_spill] sm:$0xff] %v8764_v34  ;;  %v4194_v58 = vmax.f32 %v4192_v7, %v4193_v55  ;;  %v4200_v29 = vrot.slane %v4199_v37, 4  ;;  %v3092_v52 = vmul.f32 %v8587_v44, %v2889_v39  ;;  %v4170_v34 = vmax.f32 %v4168_v28, %v4169_v50 }
 0x2a4   : > { %v2303_v16 = vpop.f32.mrf.mxu0  ;;  %v2695_v18 = vpop.f32.mrf.mxu1  ;;  %v4189_v45 = vmax.f32 %v4187_v15, %v4188_v60  ;;  %v4183_v14 = vrot.slane %v4182_v49, 1  ;;  %v4414_v1 = vrot.slane %v8750_v41, 2  ;;  %v4177_v7 = vmax.f32 %v4175_v12, %v4176_v17 }
 0x2a5   : > { %v5046_v16 = vrot.slane %v8762_v0, 1  ;;  %v4195_v31 = vrot.slane %v4194_v58, 2  ;;  %v4201_v24 = vmax.f32 %v4199_v37, %v4200_v29  ;;  %v5047_v60 = vrot.slane %v8762_v0, 2 }
 0x2a6   : > { %v8775_v33 = vpop.f32.mrf.mxu0  ;;  %v8779_v10 = vpop.f32.mrf.mxu1  ;;  %v4190_v32 = vrot.slane %v4189_v45, 1  ;;  %v3197_v50 = vadd.f32 %v8605_v56, %v2994_v30  ;;  %v9987_v37 = vrot.slane %v8596_v23, 6  ;;  %v9989_v17 = vrot.slane %v8621_v4, 6 }
 0x2a7   : > { %9984 = vst [vmem:[#allocation75_spill] sm:$0xff] %v8775_v33  ;;  %9985 = vst [vmem:[#allocation76_spill] sm:$0xff] %v8779_v10  ;;  %v4196_v33 = vmax.f32 %v4194_v58, %v4195_v31  ;;  %v8788_v10 = vadd.f32 %v8605_v56, %v3092_v52  ;;  %v4184_v30 = vmax.f32 %v4182_v49, %v4183_v14  ;;  %v9991_v58 = vld [vmem:[#allocation52_spill] sm:$0xff]  ;;  %v9992_v47 = vrot.slane %v8596_v23, 7 }
 0x2a8   : > { %v2308_v15 = vpop.f32.mrf.mxu0  ;;  %v2700_v28 = vpop.f32.mrf.mxu1  ;;  %v4191_v55 = vmax.f32 %v4189_v45, %v4190_v32  ;;  %v8794_v12 = vmul.f32 %v9987_v37, %v4170_v34  ;;  %v2792_v52 = vmax.f32 %v9991_v58, 0.0  ;;  %v9994_v35 = vmax.f32 %v8499_v38, %v8512_v5  ;;  %v9998_v5 = vld [vmem:[#allocation53_spill] sm:$0xff] }
 0x2a9   : > { %v8798_v15 = vmul.f32 %v9989_v17, %v4170_v34  ;;  %v4202_v28 = vrot.slane %v4201_v24, 2  ;;  %v4197_v31 = vrot.slane %v4196_v33, 1  ;;  %v2793_v49 = vmax.f32 %v8377_v26, 0.0 }
 0x2aa   : > { %v8790_v29 = vpop.f32.mrf.mxu0  ;;  %9988 = vst [vmem:[#allocation78_spill] sm:$0xff] %v8794_v12  ;;  %v8800_v45 = vpop.f32.mrf.mxu1  ;;  %v4607_v32 = vmul.f32 %v4413_v9, %v4191_v55  ;;  %v5240_v18 = vmul.f32 %v5046_v16, %v4191_v55  ;;  %v8810_v34 = vmax.f32 %v9994_v35, %v3197_v50  ;;  %v2794_v55 = vmax.f32 %v8389_v22, 0.0 }
 0x2ab   : > { %9986 = vst [vmem:[#allocation77_spill] sm:$0xff] %v8790_v29  ;;  %9990 = vst [vmem:[#allocation79_spill] sm:$0xff] %v8798_v15  ;;  %v8805_v29 = vmul.f32 %v9992_v47, %v4177_v7  ;;  %v4203_v37 = vmax.f32 %v4201_v24, %v4202_v28  ;;  %v4198_v16 = vmax.f32 %v4196_v33, %v4197_v31  ;;  %v9996_v23 = vrot.slane %v8621_v4, 7  ;;  %v6491_v15 = vld [vmem:[%s6754_s28 + $0x40] sm:$0xff]  }
 0x2ac   : > { %v2311_v39 = vpop.f32.mrf.mxu0  ;;  %v2703_v14 = vpop.f32.mrf.mxu1  ;;  %v4869_v17 = vrot.slane %v4607_v32, 7  ;;  %v5495_v9 = vrot.slane %v5240_v18, 7  ;;  %v4606_v24 = vmul.f32 %v8750_v41, %v4184_v30  ;;  %v5239_v38 = vmul.f32 %v8762_v0, %v4184_v30 }
 0x2ad   : > { %9993 = vst [vmem:[#allocation52_spill] sm:$0xff] %v8805_v29  ;;  %v8818_v47 = vmul.f32 %v9996_v23, %v4177_v7  ;;  %v2890_v35 = vmax.f32 %v9998_v5, 0.0  ;;  %v4204_v39 = vrot.slane %v4203_v37, 1  ;;  %v4608_v26 = vmul.f32 %v4414_v1, %v4198_v16 }
 0x2ae   : > { %v8814_v58 = vpop.f32.mrf.mxu0  ;;  %v5241_v50 = vmul.f32 %v5047_v60, %v4198_v16  ;;  %v2995_v18 = vmul.f32 %v8587_v44, %v2792_v52  ;;  %v8824_v33 = vpop.f32.mrf.mxu1  ;;  %v4870_v28 = vsel %vm4723_vm3, %v4869_v17, %v4606_v24  ;;  %v5496_v4 = vsel %vm4723_vm3, %v5495_v9, %v5239_v38  ;;  %v10022_v52 = vld [vmem:[#allocation37_spill] sm:$0xff] }
 0x2af   : > { %9995 = vst [vmem:[#allocation80_spill] sm:$0xff] %v8814_v58  ;;  %9997 = vst [vmem:[#allocation81_spill] sm:$0xff] %v8818_v47  ;;  %v2996_v7 = vmul.f32 %v8587_v44, %v2793_v49  ;;  %v2891_v32 = vmax.f32 %v8379_v53, 0.0  ;;  %v4871_v31 = vrot.slane %v4608_v26, 6  ;;  %v2997_v14 = vmul.f32 %v8587_v44, %v2794_v55 }
 0x2b0   : > { %9999 = vst [vmem:[#allocation53_spill] sm:$0xff] %v8824_v33  ;;  %v2316_v22 = vpop.f32.mrf.mxu0  ;;  %v5497_v30 = vrot.slane %v5241_v50, 6  ;;  %v2795_v1 = vmax.f32 %v8415_v40, 0.0  ;;  %v2708_v60 = vpop.f32.mrf.mxu1  ;;  %v3093_v16 = vmul.f32 %v8587_v44, %v2890_v35  ;;  %v2892_v23 = vmax.f32 %v8391_v36, 0.0 }
 0x2b1   : > { %v2796_v17 = vmax.f32 %v8437_v27, 0.0  ;;  %v4205_v9 = vmax.f32 %v4203_v37, %v4204_v39  ;;  %v8837_v49 = vsel %vm4726_vm4, %v4871_v31, %v4870_v28  ;;  %v2893_v55 = vmax.f32 %v8417_v42, 0.0 }
 0x2b2   : > { %10000 = vst [vmem:[#allocation82_spill] sm:$0xff] %v8837_v49  ;;  %v8840_v53 = vsel %vm4726_vm4, %v5497_v30, %v5496_v4  ;;  %v3198_v24 = vadd.f32 %v8605_v56, %v2995_v18  ;;  %v3199_v38 = vadd.f32 %v8605_v56, %v2996_v7  ;;  %v3094_v5 = vmul.f32 %v8587_v44, %v2891_v32 }
 0x2b3   : > { %10001 = vst [vmem:[#allocation83_spill] sm:$0xff] %v8840_v53  ;;  %v3200_v37 = vadd.f32 %v8605_v56, %v2997_v14  ;;  %v2998_v35 = vmul.f32 %v8587_v44, %v2795_v1  ;;  %v8852_v39 = vadd.f32 %v8605_v56, %v3093_v16  ;;  %v3095_v42 = vmul.f32 %v8587_v44, %v2892_v23  ;;  %v10007_v14 = vld [vmem:[#allocation12_spill] sm:$0xff]  ;;  %v10009_v23 = vld [vmem:[#allocation33_spill] sm:$0xff] }
 0x2b4   : > { %v2999_v26 = vmul.f32 %v8587_v44, %v2796_v17  ;;  %v2798_v50 = vmax.f32 %v8474_v54, 0.0  ;;  %v10002_v18 = vrot.slane %v8750_v41, 3  ;;  %v10004_v28 = vrot.slane %v8762_v0, 3  ;;  %v10010_v17 = vld [vmem:[#allocation30_spill] sm:$0xff] }
 0x2b5   : > { %v3096_v7 = vmul.f32 %v8587_v44, %v2893_v55  ;;  %v2894_v32 = vmax.f32 %v8439_v21, 0.0  ;;  %v10006_v31 = vmax.f32 %v8540_v61, %v8626_v3  ;;  %v10008_v1 = vmax.f32 %v8551_v25, %v10007_v14  ;;  %v10012_v55 = vld [vmem:[#allocation60_spill] sm:$0xff]  ;;  %v10013_v61 = vld [vmem:[#allocation61_spill] sm:$0xff] }
 0x2b6   : > { %v8859_v22 = vmul.f32 %v10002_v18, %v4205_v9  ;;  %v8863_v4 = vmul.f32 %v10004_v28, %v4205_v9  ;;  %v8874_v60 = vadd.f32 %v8605_v56, %v3094_v5  ;;  %v3001_v16 = vmul.f32 %v8587_v44, %v2798_v50  ;;  %v10014_v5 = vld [vmem:[#allocation38_spill] sm:$0xff] }
 0x2b7   : > { %v3369_v30 = vmax.f32 %v10006_v31, %v3198_v24  ;;  %v3372_v54 = vmax.f32 %v10008_v1, %v3199_v38  ;;  %v10011_v9 = vmax.f32 %v10009_v23, %v10010_v17  ;;  %v3201_v21 = vadd.f32 %v8605_v56, %v2998_v35  ;;  %v8891_v31 = vpop.f32.mrf.mxu0  ;;  %v10016_v23 = vld [vmem:[#allocation54_spill] sm:$0xff] }
 0x2b8   : > { %10003 = vst [vmem:[#allocation84_spill] sm:$0xff] %v8859_v22  ;;  %10005 = vst [vmem:[#allocation85_spill] sm:$0xff] %v8863_v4  ;;  %v2797_v28 = vmax.f32 %v10012_v55, 0.0  ;;  %v2895_v3 = vmax.f32 %v10013_v61, 0.0  ;;  %v8886_v24 = vadd.f32 %v8605_v56, %v3095_v42  ;;  %v3202_v25 = vadd.f32 %v8605_v56, %v2999_v26  ;;  %v8903_v55 = vpop.f32.mrf.mxu1 }
 0x2b9   : > { %v8880_v18 = vmax.f32 %v10011_v9, %v3200_v37  ;;  %v3204_v38 = vadd.f32 %v8605_v56, %v3001_v16  ;;  %v2799_v50 = vmax.f32 %v10014_v5, 0.0  ;;  %10015 = vst [vmem:[#allocation12_spill] sm:$0xff] %v8891_v31  ;;  %v8896_v35 = vadd.f32 %v8605_v56, %v3096_v7  ;;  %v10017_v16 = vld [vmem:[#allocation32_spill] sm:$0xff]  ;;  %10018 = vst [vmem:[#allocation33_spill] sm:$0xff] %v8903_v55  ;;  %v2319_v61 = vpop.f32.mrf.mxu0 }
 0x2ba   : > { %v3097_v1 = vmul.f32 %v8587_v44, %v2894_v32  ;;  %v2800_v9 = vmax.f32 %v10017_v16, 0.0  ;;  %v10019_v5 = vmax.f32 %v8558_v57, %v8699_v8  ;;  %v8911_v7 = vmul.f32 %v8587_v44, %v2797_v28  ;;  %v2711_v8 = vpop.f32.mrf.mxu1 }
 0x2bb   : > { %v3367_v42 = vmax.f32 %v8810_v34, %v3204_v38  ;;  %v3002_v26 = vmul.f32 %v8587_v44, %v2799_v50  ;;  %v8914_v32 = vmul.f32 %v8587_v44, %v2895_v3  ;;  %v10020_v38 = vmax.f32 %v8561_v20, %v8748_v2  ;;  %v10021_v3 = vld [vmem:[#allocation55_spill] sm:$0xff] }
 0x2bc   : > { %v8908_v14 = vmax.f32 %v10019_v5, %v3201_v21  ;;  %v8925_v21 = vadd.f32 %v8605_v56, %v3097_v1  ;;  %v5000_v5 = vrot.slane %v10021_v3, 4  ;;  %v3003_v27 = vmul.f32 %v8587_v44, %v2800_v9  ;;  %v8935_v1 = vld [vmem:[%s6754_s28 + $0x10] sm:$0xff]  }
 0x2bd   : > { %v8920_v50 = vmax.f32 %v10020_v38, %v3202_v25  ;;  %v3533_v16 = vcombine.high %v3367_v42, %v3367_v42  ;;  %v3814_v61 = vsel %vm3617_vm2, %v3367_v42, -inf  ;;  %v3205_v57 = vadd.f32 %v8605_v56, %v3002_v26 }
 0x2be   : > { %v3815_v28 = vrot.slane %v3814_v61, 4  ;;  %v5001_v20 = vrot.slane %v10021_v3, 5  ;;  %v3206_v8 = vadd.f32 %v8605_v56, %v3003_v27  ;;  %v5002_v9 = vrot.slane %v10021_v3, 6 }
 0x2bf   : > { %v3821_v40 = vsel %vm3617_vm2, %v3533_v16, -inf  ;;  %v3370_v2 = vmax.f32 %v3369_v30, %v3205_v57  ;;  %v2801_v16 = vmax.f32 %v10022_v52, 0.0  ;;  %v8943_v27 = vunpack.c.l.bf16 %v8935_v1 }
 0x2c0   : > { %v3816_v38 = vmax.f32 %v3814_v61, %v3815_v28  ;;  %v3822_v42 = vrot.slane %v3821_v40, 4  ;;  %v3373_v25 = vmax.f32 %v3372_v54, %v3206_v8  ;;  %v5003_v28 = vrot.slane %v10021_v3, 7 }
 0x2c1   : > { %v3534_v36 = vcombine.high %v3370_v2, %v3370_v2  ;;  %v3828_v37 = vsel %vm3617_vm2, %v3370_v2, -inf  ;;  %v3004_v26 = vmul.f32 %v8587_v44, %v2801_v16 }
 0x2c2   : > { %v3817_v34 = vrot.slane %v3816_v38, 2  ;;  %v3823_v30 = vmax.f32 %v3821_v40, %v3822_v42  ;;  %v3829_v57 = vrot.slane %v3828_v37, 4  ;;  %v3535_v47 = vcombine.high %v3373_v25, %v3373_v25 }
 0x2c3   : > { %v3835_v61 = vsel %vm3617_vm2, %v3534_v36, -inf  ;;  %v3842_v52 = vsel %vm3617_vm2, %v3373_v25, -inf  ;;  %v8948_v40 = vunpack.c.h.bf16 %v6491_v15  ;;  %v3207_v54 = vadd.f32 %v8605_v56, %v3004_v26 }
 0x2c4   : > { %v3818_v17 = vmax.f32 %v3816_v38, %v3817_v34  ;;  %v3824_v2 = vrot.slane %v3823_v30, 2  ;;  %v3830_v4 = vmax.f32 %v3828_v37, %v3829_v57  ;;  %v3836_v53 = vrot.slane %v3835_v61, 4 }
 0x2c5   : > { %v3843_v29 = vrot.slane %v3842_v52, 4  ;;  %v3849_v22 = vsel %vm3617_vm2, %v3535_v47, -inf  ;;  %v3376_v37 = vmax.f32 %v8880_v18, %v3207_v54  ;;  %v10024_v18 = vrot.slane %v10016_v23, 5 }
 0x2c6   : > { %v3819_v36 = vrot.slane %v3818_v17, 1  ;;  %v3825_v42 = vmax.f32 %v3823_v30, %v3824_v2  ;;  %v3831_v3 = vrot.slane %v3830_v4, 2  ;;  %v3837_v8 = vmax.f32 %v3835_v61, %v3836_v53 }
 0x2c7   : > { %v3844_v49 = vmax.f32 %v3842_v52, %v3843_v29  ;;  %v3850_v15 = vrot.slane %v3849_v22, 4  ;;  %v3536_v12 = vcombine.high %v3376_v37, %v3376_v37  ;;  %v3856_v26 = vsel %vm3617_vm2, %v3376_v37, -inf  ;;  %v8959_v52 = vpop.f32.mrf.mxu0 }
 0x2c8   : > { %v3820_v38 = vmax.f32 %v3818_v17, %v3819_v36  ;;  %v3826_v16 = vrot.slane %v3825_v42, 1  ;;  %v3832_v57 = vmax.f32 %v3830_v4, %v3831_v3  ;;  %v3838_v25 = vrot.slane %v3837_v8, 2  ;;  %10025 = vst [vmem:[#allocation30_spill] sm:$0xff] %v8959_v52 }
 0x2c9   : > { %v10023_v30 = vrot.slane %v10016_v23, 4  ;;  %v3845_v31 = vrot.slane %v3844_v49, 2  ;;  %v3851_v34 = vmax.f32 %v3849_v22, %v3850_v15  ;;  %v3857_v33 = vrot.slane %v3856_v26, 4  ;;  %v2324_v15 = vpop.f32.mrf.mxu0 }
 0x2ca   : > { %v3827_v55 = vmax.f32 %v3825_v42, %v3826_v16  ;;  %v5187_v61 = vmul.f32 %v5000_v5, %v3820_v38  ;;  %v3833_v2 = vrot.slane %v3832_v57, 1  ;;  %v3839_v47 = vmax.f32 %v3837_v8, %v3838_v25  ;;  %v10026_v16 = vld [vmem:[#allocation63_spill] sm:$0xff]  ;;  %v10027_v8 = vld [vmem:[#allocation64_spill] sm:$0xff] }
 0x2cb   : > { %v4554_v53 = vmul.f32 %v10023_v30, %v3820_v38  ;;  %v3846_v42 = vmax.f32 %v3844_v49, %v3845_v31  ;;  %v3852_v37 = vrot.slane %v3851_v34, 2 }
 0x2cc   : > { %v4555_v17 = vmul.f32 %v10024_v18, %v3827_v55  ;;  %v5188_v54 = vmul.f32 %v5001_v20, %v3827_v55  ;;  %v5403_v29 = vrot.slane %v5187_v61, 4  ;;  %v3834_v36 = vmax.f32 %v3832_v57, %v3833_v2  ;;  %v8967_v18 = vpop.f32.mrf.mxu1 }
 0x2cd   : > { %v4777_v4 = vrot.slane %v4554_v53, 4  ;;  %v3840_v3 = vrot.slane %v3839_v47, 1  ;;  %v10028_v53 = vrot.slane %v10016_v23, 6  ;;  %v3847_v61 = vrot.slane %v3846_v42, 1  ;;  %10029 = vst [vmem:[#allocation60_spill] sm:$0xff] %v8967_v18 }
 0x2ce   : > { %v4779_v38 = vrot.slane %v4555_v17, 3  ;;  %v5404_v22 = vsel %vm4732_vm6, %v5403_v29, %v10027_v8  ;;  %v5405_v25 = vrot.slane %v5188_v54, 3  ;;  %v5189_v20 = vmul.f32 %v5002_v9, %v3834_v36 }
 0x2cf   : > { %v4778_v5 = vsel %vm4732_vm6, %v4777_v4, %v10026_v16  ;;  %v3841_v30 = vmax.f32 %v3839_v47, %v3840_v3  ;;  %v4556_v55 = vmul.f32 %v10028_v53, %v3834_v36  ;;  %v3853_v57 = vmax.f32 %v3851_v34, %v3852_v37  ;;  %v2716_v47 = vpop.f32.mrf.mxu1 }
 0x2d0   : > { %v4780_v49 = vsel %vm4735_vm7, %v4779_v38, %v4778_v5  ;;  %v5406_v31 = vsel %vm4735_vm7, %v5405_v25, %v5404_v22  ;;  %v3858_v2 = vmax.f32 %v3856_v26, %v3857_v33  ;;  %v10030_v17 = vrot.slane %v10016_v23, 7  ;;  %v10031_v33 = vld [vmem:[#allocation62_spill] sm:$0xff]  ;;  %v10032_v23 = vld [vmem:[#allocation47_spill] sm:$0xff] }
 0x2d1   : > { %v4781_v29 = vrot.slane %v4556_v55, 2  ;;  %v5190_v54 = vmul.f32 %v5003_v28, %v3841_v30  ;;  %v5407_v16 = vrot.slane %v5189_v20, 2  ;;  %v3854_v3 = vrot.slane %v3853_v57, 1  ;;  %v10033_v20 = vld [vmem:[#allocation57_spill] sm:$0xff] }
 0x2d2   : > { %v4557_v4 = vmul.f32 %v10030_v17, %v3841_v30  ;;  %v5004_v8 = vrot.slane %v8948_v40, 1  ;;  %v3859_v9 = vrot.slane %v3858_v2, 2  ;;  %v3863_v36 = vsel %vm3617_vm2, %v3536_v12, -inf }
 0x2d3   : > { %v4782_v15 = vsel %vm4738_vm8, %v4781_v29, %v4780_v49  ;;  %v5408_v38 = vsel %vm4738_vm8, %v5407_v16, %v5406_v31  ;;  %v5409_v34 = vrot.slane %v5190_v54, 1  ;;  %v2896_v26 = vmax.f32 %v10031_v33, 0.0  ;;  %v10034_v49 = vld [vmem:[#allocation58_spill] sm:$0xff] }
 0x2d4   : > { %v4783_v5 = vrot.slane %v4557_v4, 1  ;;  %v2897_v37 = vmax.f32 %v10032_v23, 0.0  ;;  %v3855_v22 = vmax.f32 %v3853_v57, %v3854_v3  ;;  %v3860_v28 = vmax.f32 %v3858_v2, %v3859_v9  ;;  %v10036_v3 = vld [vmem:[#allocation11_spill] sm:$0xff] }
 0x2d5   : > { %v5410_v30 = vsel %vm4741_vm9, %v5409_v34, %v5408_v38  ;;  %v3848_v53 = vmax.f32 %v3846_v42, %v3847_v61  ;;  %v3864_v55 = vrot.slane %v3863_v36, 4  ;;  %v10035_v31 = vrot.slane %v8943_v27, 1 }
 0x2d6   : > { %v4784_v25 = vsel %vm4741_vm9, %v4783_v5, %v4782_v15  ;;  %v8985_v17 = vadd.f32 %v10034_v49, %v5410_v30  ;;  %v5192_v29 = vmul.f32 %v5004_v8, %v3855_v22  ;;  %v3861_v54 = vrot.slane %v3860_v28, 1  ;;  %v10037_v5 = vld [vmem:[#allocation48_spill] sm:$0xff] }
 0x2d7   : > { %v8982_v12 = vadd.f32 %v10033_v20, %v4784_v25  ;;  %v4559_v4 = vmul.f32 %v10035_v31, %v3855_v22  ;;  %v3865_v16 = vmax.f32 %v3863_v36, %v3864_v55  ;;  %v4372_v57 = vrot.slane %v8943_v27, 2  ;;  %v9000_v25 = vpop.f32.mrf.mxu0 }
 0x2d8   : > { %v5005_v2 = vrot.slane %v8948_v40, 2  ;;  %v3203_v42 = vadd.f32 %v8605_v56, %v8911_v7  ;;  %v5411_v47 = vrot.slane %v5192_v29, 7  ;;  %v2802_v9 = vmax.f32 %v10036_v3, 0.0  ;;  %10038 = vst [vmem:[#allocation61_spill] sm:$0xff] %v9000_v25 }
 0x2d9   : > { %v4785_v61 = vrot.slane %v4559_v4, 7  ;;  %v3099_v15 = vmul.f32 %v8587_v44, %v2896_v26  ;;  %v2898_v38 = vmax.f32 %v10037_v5, 0.0  ;;  %v3862_v34 = vmax.f32 %v3860_v28, %v3861_v54  ;;  %v2327_v4 = vpop.f32.mrf.mxu0 }
 0x2da   : > { %v3866_v33 = vrot.slane %v3865_v16, 2  ;;  %v3100_v8 = vmul.f32 %v8587_v44, %v2897_v37  ;;  %v4558_v36 = vmul.f32 %v8943_v27, %v3848_v53  ;;  %v5191_v23 = vmul.f32 %v8948_v40, %v3848_v53  ;;  %v10039_v37 = vld [vmem:[#allocation31_spill] sm:$0xff] }
 0x2db   : > { %v3005_v22 = vmul.f32 %v8587_v44, %v2802_v9  ;;  %v4373_v30 = vrot.slane %v8943_v27, 3  ;;  %v4560_v55 = vmul.f32 %v4372_v57, %v3862_v34  ;;  %v5193_v20 = vmul.f32 %v5005_v2, %v3862_v34 }
 0x2dc   : > { %v3867_v7 = vmax.f32 %v3865_v16, %v3866_v33  ;;  %v4786_v26 = vsel %vm4723_vm3, %v4785_v61, %v4558_v36  ;;  %v5412_v28 = vsel %vm4723_vm3, %v5411_v47, %v5191_v23  ;;  %v2803_v31 = vmax.f32 %v10039_v37, 0.0  ;;  %v9020_v36 = vpop.f32.mrf.mxu1 }
 0x2dd   : > { %v3208_v49 = vadd.f32 %v8605_v56, %v3005_v22  ;;  %v4787_v53 = vrot.slane %v4560_v55, 6  ;;  %v5006_v54 = vrot.slane %v8948_v40, 3  ;;  %v5413_v3 = vrot.slane %v5193_v20, 6  ;;  %10041 = vst [vmem:[#allocation38_spill] sm:$0xff] %v9020_v36  ;;  %v10042_v20 = vld [vmem:[#allocation46_spill] sm:$0xff] }
 0x2de   : > { %v3868_v29 = vrot.slane %v3867_v7, 1  ;;  %v9010_v16 = vadd.f32 %v8605_v56, %v8914_v32  ;;  %v3101_v57 = vmul.f32 %v8587_v44, %v2898_v38  ;;  %v3006_v61 = vmul.f32 %v8587_v44, %v2803_v31 }
 0x2df   : > { %v3379_v2 = vmax.f32 %v8908_v14, %v3208_v49  ;;  %v10040_v47 = vmax.f32 %v8673_v19, %v8771_v13  ;;  %v4788_v34 = vsel %vm4726_vm4, %v4787_v53, %v4786_v26  ;;  %v5414_v33 = vsel %vm4726_vm4, %v5413_v3, %v5412_v28  ;;  %v10043_v53 = vld [vmem:[#allocation66_spill] sm:$0xff] }
 0x2e0   : > { %v3869_v5 = vmax.f32 %v3867_v7, %v3868_v29  ;;  %v9023_v32 = vadd.f32 %v8605_v56, %v3099_v15  ;;  %v3209_v14 = vadd.f32 %v8605_v56, %v3006_v61  ;;  %v9028_v22 = vadd.f32 %v8605_v56, %v3100_v8  ;;  %v2719_v7 = vpop.f32.mrf.mxu1 }
 0x2e1   : > { %v3384_v9 = vmax.f32 %v10040_v47, %v3203_v42  ;;  %v3537_v23 = vcombine.high %v3379_v2, %v3379_v2  ;;  %v3870_v38 = vsel %vm3617_vm2, %v3379_v2, -inf  ;;  %v9031_v55 = vadd.f32 %v8605_v56, %v3101_v57 }
 0x2e2   : > { %v4561_v19 = vmul.f32 %v4373_v30, %v3869_v5  ;;  %v5194_v13 = vmul.f32 %v5006_v54, %v3869_v5  ;;  %v3871_v42 = vrot.slane %v3870_v38, 4  ;;  %v2899_v26 = vmax.f32 %v10042_v20, 0.0 }
 0x2e3   : > { %v3877_v15 = vsel %vm3617_vm2, %v3537_v23, -inf  ;;  %v3382_v28 = vmax.f32 %v8920_v50, %v3209_v14  ;;  %v4374_v8 = vrot.slane %v8943_v27, 4  ;;  %v2804_v54 = vmax.f32 %v10043_v53, 0.0  ;;  %v9048_v23 = vld [vmem:[%s9720_s2] ss:$0 sm:$0xff] }
 0x2e4   : > { %v4789_v49 = vrot.slane %v4561_v19, 5  ;;  %v5415_v37 = vrot.slane %v5194_v13, 5  ;;  %v3872_v31 = vmax.f32 %v3870_v38, %v3871_v42  ;;  %v3878_v4 = vrot.slane %v3877_v15, 4 }
 0x2e5   : > { %v3538_v29 = vcombine.high %v3382_v28, %v3382_v28  ;;  %v3884_v30 = vsel %vm3617_vm2, %v3382_v28, -inf  ;;  %v9042_v47 = vmul.f32 %v8587_v44, %v2899_v26  ;;  %v3007_v38 = vmul.f32 %v9048_v23, %v2804_v54 }
 0x2e6   : > { %v4790_v3 = vsel %vm4729_vm5, %v4789_v49, %v4788_v34  ;;  %v5416_v57 = vsel %vm4729_vm5, %v5415_v37, %v5414_v33  ;;  %v3873_v2 = vrot.slane %v3872_v31, 2  ;;  %v3879_v61 = vmax.f32 %v3877_v15, %v3878_v4  ;;  %v10044_v15 = vld [vmem:[#allocation36_spill] sm:$0xff] }
 0x2e7   : > { %v3885_v50 = vrot.slane %v3884_v30, 4  ;;  %v3891_v5 = vsel %vm3617_vm2, %v3538_v29, -inf  ;;  %v4375_v34 = vrot.slane %v8943_v27, 5  ;;  %v5007_v13 = vrot.slane %v8948_v40, 4 }
 0x2e8   : > { %v3874_v14 = vmax.f32 %v3872_v31, %v3873_v2  ;;  %v3880_v19 = vrot.slane %v3879_v61, 2  ;;  %v3892_v33 = vrot.slane %v3891_v5, 4  ;;  %v5008_v44 = vrot.slane %v8948_v40, 5 }
 0x2e9   : > { %v3886_v42 = vmax.f32 %v3884_v30, %v3885_v50  ;;  %v3210_v7 = vadd.f32 %v8605_v56, %v3007_v38  ;;  %v2900_v28 = vmax.f32 %v10044_v15, 0.0  ;;  %v4376_v4 = vrot.slane %v8943_v27, 6  ;;  %v10045_v15 = vld [vmem:[#allocation65_spill] sm:$0xff] }
 0x2ea   : > { %v3875_v20 = vrot.slane %v3874_v14, 1  ;;  %v3881_v26 = vmax.f32 %v3879_v61, %v3880_v19  ;;  %v3893_v49 = vmax.f32 %v3891_v5, %v3892_v33  ;;  %v4377_v31 = vrot.slane %v8943_v27, 7 }
 0x2eb   : > { %v3887_v37 = vrot.slane %v3886_v42, 2  ;;  %v3385_v29 = vmax.f32 %v3384_v9, %v3210_v7  ;;  %v5009_v36 = vrot.slane %v8948_v40, 6  ;;  %v5010_v30 = vrot.slane %v8948_v40, 7 }
 0x2ec   : > { %v3876_v53 = vmax.f32 %v3874_v14, %v3875_v20  ;;  %v3882_v54 = vrot.slane %v3881_v26, 1  ;;  %v3894_v2 = vrot.slane %v3893_v49, 2  ;;  %v2901_v18 = vmax.f32 %v10045_v15, 0.0 }
 0x2ed   : > { %v3888_v25 = vmax.f32 %v3886_v42, %v3887_v37  ;;  %v3539_v56 = vcombine.high %v3385_v29, %v3385_v29  ;;  %v3898_v61 = vsel %vm3617_vm2, %v3385_v29, -inf }
 0x2ee   : > { %v3883_v50 = vmax.f32 %v3881_v26, %v3882_v54  ;;  %v4562_v38 = vmul.f32 %v4374_v8, %v3876_v53  ;;  %v5195_v5 = vmul.f32 %v5007_v13, %v3876_v53  ;;  %v3895_v19 = vmax.f32 %v3893_v49, %v3894_v2 }
 0x2ef   : > { %v3889_v33 = vrot.slane %v3888_v25, 1  ;;  %v3899_v27 = vrot.slane %v3898_v61, 4  ;;  %v3905_v9 = vsel %vm3617_vm2, %v3539_v56, -inf }
 0x2f0   : > { %v4563_v14 = vmul.f32 %v4375_v34, %v3883_v50  ;;  %v4791_v7 = vrot.slane %v4562_v38, 4  ;;  %v5196_v20 = vmul.f32 %v5008_v44, %v3883_v50  ;;  %v5417_v52 = vrot.slane %v5195_v5, 4 }
 0x2f1   : > { %v3890_v42 = vmax.f32 %v3888_v25, %v3889_v33  ;;  %v3896_v37 = vrot.slane %v3895_v19, 1  ;;  %v3900_v40 = vmax.f32 %v3898_v61, %v3899_v27  ;;  %v3906_v58 = vrot.slane %v3905_v9, 4  ;;  %v10046_v25 = vld [vmem:[#allocation67_spill] sm:$0xff] }
 0x2f2   : > { %v4792_v29 = vsel %vm4732_vm6, %v4791_v7, %v4790_v3  ;;  %v4793_v8 = vrot.slane %v4563_v14, 3  ;;  %v5418_v13 = vsel %vm4732_vm6, %v5417_v52, %v5416_v57  ;;  %v5419_v26 = vrot.slane %v5196_v20, 3  ;;  %v6063_v33 = vld [vmem:[%s6754_s28 + $0x48] sm:$0xff]  }
 0x2f3   : > { %v3897_v49 = vmax.f32 %v3895_v19, %v3896_v37  ;;  %v4564_v53 = vmul.f32 %v4376_v4, %v3890_v42  ;;  %v5197_v54 = vmul.f32 %v5009_v36, %v3890_v42  ;;  %v3901_v2 = vrot.slane %v3900_v40, 2  ;;  %v9072_v52 = vld [vmem:[%s9721_s3] ss:$0 sm:$0xff]  ;;  %v10047_v42 = vld [vmem:[#allocation69_spill] sm:$0xff] }
 0x2f4   : > { %v4794_v34 = vsel %vm4735_vm7, %v4793_v8, %v4792_v29  ;;  %v5420_v44 = vsel %vm4735_vm7, %v5419_v26, %v5418_v13  ;;  %v3907_v56 = vmax.f32 %v3905_v9, %v3906_v58  ;;  %v2902_v50 = vmax.f32 %v10046_v25, 0.0  ;;  %v10048_v8 = vld [vmem:[#allocation68_spill] sm:$0xff] }
 0x2f5   : > { %v4565_v61 = vmul.f32 %v4377_v31, %v3897_v49  ;;  %v4795_v38 = vrot.slane %v4564_v53, 2  ;;  %v5198_v5 = vmul.f32 %v5010_v30, %v3897_v49  ;;  %v5421_v3 = vrot.slane %v5197_v54, 2 }
 0x2f6   : > { %v9076_v36 = vadd.f32 %v9072_v52, %v9042_v47  ;;  %v3103_v57 = vmul.f32 %v9048_v23, %v2900_v28  ;;  %v3902_v4 = vmax.f32 %v3900_v40, %v3901_v2  ;;  %v3908_v58 = vrot.slane %v3907_v56, 2 }
 0x2f7   : > { %v4796_v19 = vsel %vm4738_vm8, %v4795_v38, %v4794_v34  ;;  %v4797_v31 = vrot.slane %v4565_v61, 1  ;;  %v5422_v30 = vsel %vm4738_vm8, %v5421_v3, %v5420_v44  ;;  %v5423_v15 = vrot.slane %v5198_v5, 1 }
 0x2f8   : > { %v3104_v27 = vmul.f32 %v9048_v23, %v2901_v18  ;;  %v3909_v9 = vmax.f32 %v3907_v56, %v3908_v58  ;;  %v9083_v14 = vunpack.c.h.bf16 %v8935_v1  ;;  %v9085_v7 = vunpack.c.l.bf16 %v6063_v33 }
 0x2f9   : > { %v4798_v47 = vsel %vm4741_vm9, %v4797_v31, %v4796_v19  ;;  %v5424_v28 = vsel %vm4741_vm9, %v5423_v15, %v5422_v30  ;;  %v3105_v20 = vmul.f32 %v9048_v23, %v2902_v50  ;;  %v2903_v37 = vmax.f32 %v10047_v42, 0.0 }
 0x2fa   : > { %v9092_v40 = vadd.f32 %v8982_v12, %v4798_v47  ;;  %v9095_v29 = vadd.f32 %v8985_v17, %v5424_v28  ;;  %v3910_v18 = vrot.slane %v3909_v9, 1  ;;  %v2805_v1 = vmax.f32 %v10048_v8, 0.0  ;;  %v10049_v47 = vld [vmem:[#allocation50_spill] sm:$0xff] }
 0x2fb   : > { %v3449_v13 = vmax.f32 %v8788_v10, %v9023_v32  ;;  %v3452_v26 = vmax.f32 %v8852_v39, %v9028_v22  ;;  %v3903_v49 = vrot.slane %v3902_v4, 1  ;;  %v2904_v53 = vmax.f32 %v8649_v62, 0.0 }
 0x2fc   : > { %v9104_v54 = vadd.f32 %v9072_v52, %v3103_v57  ;;  %v9107_v12 = vadd.f32 %v9072_v52, %v3104_v27  ;;  %v4378_v17 = vrot.slane %v9083_v14, 1  ;;  %v2806_v2 = vmax.f32 %v8647_v11, 0.0 }
 0x2fd   : > { %v3911_v34 = vmax.f32 %v3909_v9, %v3910_v18  ;;  %v5011_v44 = vrot.slane %v9085_v7, 1  ;;  %v9113_v10 = vadd.f32 %v9072_v52, %v3105_v20  ;;  %v3106_v39 = vmul.f32 %v9048_v23, %v2903_v37  ;;  %v10050_v18 = vld [vmem:[#allocation39_spill] sm:$0xff] }
 0x2fe   : > { %v3455_v62 = vmax.f32 %v8874_v60, %v9031_v55  ;;  %v3458_v32 = vmax.f32 %v8886_v24, %v9076_v36  ;;  %v3008_v22 = vmul.f32 %v9048_v23, %v2805_v1  ;;  %v2905_v56 = vmax.f32 %v8660_v46, 0.0 }
 0x2ff   : > { %v3904_v25 = vmax.f32 %v3902_v4, %v3903_v49  ;;  %v3107_v11 = vmul.f32 %v9048_v23, %v2904_v53  ;;  %v2807_v50 = vmax.f32 %v8657_v43, 0.0  ;;  %v2906_v61 = vmax.f32 %v8687_v59, 0.0 }
 0x300   : > { %v3461_v38 = vmax.f32 %v8896_v35, %v9104_v54  ;;  %v3464_v60 = vmax.f32 %v8925_v21, %v9107_v12  ;;  %v9129_v55 = vunpack.c.h.bf16 %v6063_v33  ;;  %v3009_v24 = vmul.f32 %v9048_v23, %v2806_v2  ;;  %v10051_v54 = vld [vmem:[#allocation41_spill] sm:$0xff]  ;;  %v10052_v2 = vld [vmem:[#allocation74_spill] sm:$0xff] }
 0x301   : > { %v4567_v5 = vmul.f32 %v4378_v17, %v3911_v34  ;;  %v5200_v3 = vmul.f32 %v5011_v44, %v3911_v34  ;;  %v3467_v46 = vmax.f32 %v9010_v16, %v9113_v10  ;;  %v3309_v36 = vadd.f32 %v9072_v52, %v3106_v39  ;;  %v10058_v21 = vld [vmem:[#allocation14_spill] sm:$0xff] }
 0x302   : > { %v3211_v43 = vadd.f32 %v9072_v52, %v3008_v22  ;;  %v3108_v59 = vmul.f32 %v9048_v23, %v2905_v56  ;;  %v2808_v35 = vmax.f32 %v8678_v48, 0.0  ;;  %v2907_v57 = vmax.f32 %v8712_v51, 0.0  ;;  %v10053_v22 = vld [vmem:[#allocation51_spill] sm:$0xff] }
 0x303   : > { %v4566_v33 = vmul.f32 %v9083_v14, %v3904_v25  ;;  %v3310_v4 = vadd.f32 %v9072_v52, %v3107_v11  ;;  %v3010_v58 = vmul.f32 %v9048_v23, %v2807_v50  ;;  %v3109_v19 = vmul.f32 %v9048_v23, %v2906_v61 }
 0x304   : > { %v5199_v31 = vmul.f32 %v9085_v7, %v3904_v25  ;;  %v9145_v30 = vadd.f32 %v9072_v52, %v3009_v24  ;;  %v2809_v15 = vmax.f32 %v8703_v63, 0.0  ;;  %v2810_v27 = vmax.f32 %v8724_v6, 0.0 }
 0x305   : > { %v4799_v48 = vrot.slane %v4567_v5, 7  ;;  %v5425_v9 = vrot.slane %v5200_v3, 7  ;;  %v3450_v51 = vmax.f32 %v3449_v13, %v3309_v36  ;;  %v2812_v28 = vmax.f32 %v10049_v47, 0.0  ;;  %v10054_v36 = vld [vmem:[#allocation75_spill] sm:$0xff]  ;;  %v10057_v47 = vld [vmem:[#allocation20_spill] sm:$0xff] }
 0x306   : > { %v3311_v20 = vadd.f32 %v9072_v52, %v3108_v59  ;;  %v3011_v42 = vmul.f32 %v9048_v23, %v2808_v35  ;;  %v3110_v37 = vmul.f32 %v9048_v23, %v2907_v57  ;;  %v2908_v8 = vmax.f32 %v10050_v18, 0.0 }
 0x307   : > { %v9154_v1 = vmax.f32 %v3452_v26, %v3310_v4  ;;  %v9157_v49 = vadd.f32 %v9072_v52, %v3010_v58  ;;  %v3312_v63 = vadd.f32 %v9072_v52, %v3109_v19  ;;  %v3015_v6 = vmul.f32 %v9048_v23, %v2812_v28  ;;  %v10055_v4 = vld [vmem:[#allocation13_spill] sm:$0xff]  ;;  %v10056_v19 = vld [vmem:[#allocation76_spill] sm:$0xff] }
 0x308   : > { %v3012_v13 = vmul.f32 %v9048_v23, %v2809_v15  ;;  %v3013_v53 = vmul.f32 %v9048_v23, %v2810_v27  ;;  %v2811_v17 = vmax.f32 %v10051_v54, 0.0  ;;  %v2909_v34 = vmax.f32 %v10052_v2, 0.0 }
 0x309   : > { %v9166_v44 = vsel %vm4723_vm3, %v4799_v48, %v4566_v33  ;;  %v9169_v26 = vsel %vm4723_vm3, %v5425_v9, %v5199_v31  ;;  %v3218_v39 = vadd.f32 %v9072_v52, %v3015_v6  ;;  %v2910_v56 = vmax.f32 %v10053_v22, 0.0 }
 0x30a   : > { %v9173_v25 = vmax.f32 %v3455_v62, %v3311_v20  ;;  %v9176_v11 = vadd.f32 %v9072_v52, %v3011_v42  ;;  %v3313_v50 = vadd.f32 %v9072_v52, %v3110_v37  ;;  %v3111_v61 = vmul.f32 %v9048_v23, %v2908_v8 }
 0x30b   : > { %v9180_v24 = vmax.f32 %v3458_v32, %v3312_v63  ;;  %v3386_v5 = vmax.f32 %v3211_v43, %v3218_v39  ;;  %v3113_v3 = vmul.f32 %v9048_v23, %v2910_v56  ;;  %v2813_v59 = vmax.f32 %v10054_v36, 0.0 }
 0x30c   : > { %v9185_v35 = vadd.f32 %v9072_v52, %v3012_v13  ;;  %v9188_v62 = vadd.f32 %v9072_v52, %v3013_v53  ;;  %v3014_v57 = vmul.f32 %v9048_v23, %v2811_v17  ;;  %v3112_v33 = vmul.f32 %v9048_v23, %v2909_v34 }
 0x30d   : > { %v3387_v58 = vmax.f32 %v3386_v5, %v10055_v4  ;;  %v3316_v32 = vadd.f32 %v9072_v52, %v3113_v3  ;;  %v3016_v43 = vmul.f32 %v9048_v23, %v2813_v59  ;;  %v2911_v31 = vmax.f32 %v10056_v19, 0.0 }
 0x30e   : > { %v9196_v15 = vmax.f32 %v3461_v38, %v3313_v50  ;;  %v3314_v27 = vadd.f32 %v9072_v52, %v3111_v61  ;;  %v4379_v48 = vrot.slane %v9083_v14, 2  ;;  %v4380_v9 = vrot.slane %v9083_v14, 3 }
 0x30f   : > { %v3388_v28 = vmax.f32 %v3387_v58, %v10057_v47  ;;  %v3451_v20 = vmax.f32 %v3450_v51, %v3316_v32  ;;  %v3219_v42 = vadd.f32 %v9072_v52, %v3016_v43  ;;  %v3114_v37 = vmul.f32 %v9048_v23, %v2911_v31 }
 0x310   : > { %v9205_v18 = vadd.f32 %v9072_v52, %v3014_v57  ;;  %v3315_v8 = vadd.f32 %v9072_v52, %v3112_v33  ;;  %v5012_v38 = vrot.slane %v9085_v7, 2  ;;  %v5013_v63 = vrot.slane %v9085_v7, 3 }
 0x311   : > { %v3540_v6 = vcombine.high %v3388_v28, %v3388_v28  ;;  %v3912_v13 = vsel %vm3617_vm2, %v3388_v28, -inf  ;;  %v3561_v53 = vcombine.high %v3451_v20, %v3451_v20  ;;  %v4206_v54 = vsel %vm3617_vm2, %v3451_v20, -inf }
 0x312   : > { %v3913_v51 = vrot.slane %v3912_v13, 4  ;;  %v4207_v17 = vrot.slane %v4206_v54, 4  ;;  %v3389_v2 = vmax.f32 %v9145_v30, %v3219_v42  ;;  %v3317_v34 = vadd.f32 %v9072_v52, %v3114_v37 }
 0x313   : > { %v9217_v39 = vmax.f32 %v3464_v60, %v3314_v27  ;;  %v3919_v22 = vsel %vm3617_vm2, %v3540_v6, -inf  ;;  %v4213_v56 = vsel %vm3617_vm2, %v3561_v53, -inf  ;;  %v4416_v50 = vrot.slane %v8750_v41, 4  ;;  %v10059_v60 = vld [vmem:[#allocation77_spill] sm:$0xff] }
 0x314   : > { %v3914_v61 = vmax.f32 %v3912_v13, %v3913_v51  ;;  %v3920_v5 = vrot.slane %v3919_v22, 4  ;;  %v4208_v3 = vmax.f32 %v4206_v54, %v4207_v17  ;;  %v4214_v36 = vrot.slane %v4213_v56, 4  ;;  %v10060_v27 = vld [vmem:[#allocation21_spill] sm:$0xff] }
 0x315   : > { %v9225_v30 = vmax.f32 %v3467_v46, %v3315_v8  ;;  %v4417_v59 = vrot.slane %v8750_v41, 5  ;;  %v3390_v12 = vmax.f32 %v3389_v2, %v10058_v21  ;;  %v2814_v57 = vmax.f32 %v10059_v60, 0.0 }
 0x316   : > { %v3915_v33 = vrot.slane %v3914_v61, 2  ;;  %v3921_v4 = vmax.f32 %v3919_v22, %v3920_v5  ;;  %v5049_v58 = vrot.slane %v8762_v0, 4  ;;  %v3454_v32 = vmax.f32 %v9154_v1, %v3317_v34 }
 0x317   : > { %v4209_v43 = vrot.slane %v4208_v3, 2  ;;  %v4215_v19 = vmax.f32 %v4213_v56, %v4214_v36  ;;  %v5050_v31 = vrot.slane %v8762_v0, 5  ;;  %v3391_v16 = vmax.f32 %v3390_v12, %v10060_v27 }
 0x318   : > { %v3916_v10 = vmax.f32 %v3914_v61, %v3915_v33  ;;  %v3922_v46 = vrot.slane %v3921_v4, 2  ;;  %v4381_v47 = vrot.slane %v9083_v14, 4  ;;  %v4382_v28 = vrot.slane %v9083_v14, 5 }
 0x319   : > { %v3541_v20 = vcombine.high %v3391_v16, %v3391_v16  ;;  %v3926_v42 = vsel %vm3617_vm2, %v3391_v16, -inf  ;;  %v5014_v37 = vrot.slane %v9085_v7, 4  ;;  %v3017_v8 = vmul.f32 %v9048_v23, %v2814_v57 }
 0x31a   : > { %v3917_v1 = vrot.slane %v3916_v10, 1  ;;  %v3923_v6 = vmax.f32 %v3921_v4, %v3922_v46  ;;  %v3562_v13 = vcombine.high %v3454_v32, %v3454_v32  ;;  %v4220_v53 = vsel %vm3617_vm2, %v3454_v32, -inf }
 0x31b   : > { %v4210_v54 = vmax.f32 %v4208_v3, %v4209_v43  ;;  %v4216_v51 = vrot.slane %v4215_v19, 2  ;;  %v3927_v17 = vrot.slane %v3926_v42, 4  ;;  %v3933_v2 = vsel %vm3617_vm2, %v3541_v20, -inf }
 0x31c   : > { %v3918_v34 = vmax.f32 %v3916_v10, %v3917_v1  ;;  %v3924_v22 = vrot.slane %v3923_v6, 1  ;;  %v5015_v56 = vrot.slane %v9085_v7, 5  ;;  %v4418_v61 = vrot.slane %v8750_v41, 6 }
 0x31d   : > { %v3928_v5 = vmax.f32 %v3926_v42, %v3927_v17  ;;  %v3934_v36 = vrot.slane %v3933_v2, 4  ;;  %v4221_v21 = vrot.slane %v4220_v53, 4  ;;  %v3220_v12 = vadd.f32 %v9072_v52, %v3017_v8 }
 0x31e   : > { %v3925_v60 = vmax.f32 %v3923_v6, %v3924_v22  ;;  %v4568_v57 = vmul.f32 %v4379_v48, %v3918_v34  ;;  %v5201_v3 = vmul.f32 %v5012_v38, %v3918_v34  ;;  %v4227_v33 = vsel %vm3617_vm2, %v3562_v13, -inf }
 0x31f   : > { %v4211_v4 = vrot.slane %v4210_v54, 1  ;;  %v4217_v32 = vmax.f32 %v4215_v19, %v4216_v51  ;;  %v3929_v43 = vrot.slane %v3928_v5, 2  ;;  %v3935_v27 = vmax.f32 %v3933_v2, %v3934_v36 }
 0x320   : > { %v4569_v16 = vmul.f32 %v4380_v9, %v3925_v60  ;;  %v4801_v10 = vrot.slane %v4568_v57, 6  ;;  %v5202_v46 = vmul.f32 %v5013_v63, %v3925_v60  ;;  %v5427_v20 = vrot.slane %v5201_v3, 6 }
 0x321   : > { %v4228_v42 = vrot.slane %v4227_v33, 4  ;;  %v4419_v8 = vrot.slane %v8750_v41, 7  ;;  %v3392_v48 = vmax.f32 %v9157_v49, %v3220_v12  ;;  %v2912_v38 = vmax.f32 %v8800_v45, 0.0  ;;  %v10061_v12 = vld [vmem:[#allocation15_spill] sm:$0xff] }
 0x322   : > { %v4802_v19 = vsel %vm4726_vm4, %v4801_v10, %v9166_v44  ;;  %v4803_v1 = vrot.slane %v4569_v16, 5  ;;  %v5428_v6 = vsel %vm4726_vm4, %v5427_v20, %v9169_v26  ;;  %v5429_v9 = vrot.slane %v5202_v46, 5 }
 0x323   : > { %v3930_v13 = vmax.f32 %v3928_v5, %v3929_v43  ;;  %v3936_v51 = vrot.slane %v3935_v27, 2  ;;  %v4222_v17 = vmax.f32 %v4220_v53, %v4221_v21  ;;  %v5051_v63 = vrot.slane %v8762_v0, 6  ;;  %v10062_v43 = vld [vmem:[#allocation22_spill] sm:$0xff] }
 0x324   : > { %v4804_v2 = vsel %vm4729_vm5, %v4803_v1, %v4802_v19  ;;  %v5430_v34 = vsel %vm4729_vm5, %v5429_v9, %v5428_v6  ;;  %v4212_v49 = vmax.f32 %v4210_v54, %v4211_v4  ;;  %v4218_v22 = vrot.slane %v4217_v32, 1 }
 0x325   : > { %v3931_v45 = vrot.slane %v3930_v13, 1  ;;  %v3937_v36 = vmax.f32 %v3935_v27, %v3936_v51  ;;  %v5052_v44 = vrot.slane %v8762_v0, 7  ;;  %v3393_v60 = vmax.f32 %v3392_v48, %v10061_v12  ;;  %v10063_v12 = vld [vmem:[#allocation80_spill] sm:$0xff] }
 0x326   : > { %v4229_v57 = vmax.f32 %v4227_v33, %v4228_v42  ;;  %v4383_v26 = vrot.slane %v9083_v14, 6  ;;  %v4384_v5 = vrot.slane %v9083_v14, 7  ;;  %v3115_v53 = vmul.f32 %v9048_v23, %v2912_v38 }
 0x327   : > { %v3932_v21 = vmax.f32 %v3930_v13, %v3931_v45  ;;  %v3938_v3 = vrot.slane %v3937_v36, 1  ;;  %v3394_v16 = vmax.f32 %v3393_v60, %v10062_v43  ;;  %v5016_v54 = vrot.slane %v9085_v7, 6 }
 0x328   : > { %v4219_v4 = vmax.f32 %v4217_v32, %v4218_v22  ;;  %v9270_v27 = vmul.f32 %v4416_v50, %v4212_v49  ;;  %v4223_v10 = vrot.slane %v4222_v17, 2  ;;  %v5017_v33 = vrot.slane %v9085_v7, 7 }
 0x329   : > { %v9275_v46 = vmul.f32 %v5049_v58, %v4212_v49  ;;  %v3939_v20 = vmax.f32 %v3937_v36, %v3938_v3  ;;  %v4570_v42 = vmul.f32 %v4381_v47, %v3932_v21  ;;  %v5203_v48 = vmul.f32 %v5014_v37, %v3932_v21 }
 0x32a   : > { %v4230_v38 = vrot.slane %v4229_v57, 2  ;;  %v3542_v32 = vcombine.high %v3394_v16, %v3394_v16  ;;  %v3940_v19 = vsel %vm3617_vm2, %v3394_v16, -inf  ;;  %v3318_v50 = vadd.f32 %v9072_v52, %v3115_v53 }
 0x32b   : > { %v4571_v1 = vmul.f32 %v4382_v28, %v3939_v20  ;;  %v4805_v6 = vrot.slane %v4570_v42, 4  ;;  %v5204_v9 = vmul.f32 %v5015_v56, %v3939_v20  ;;  %v5431_v58 = vrot.slane %v5203_v48, 4  ;;  %v10064_v20 = vld [vmem:[#allocation53_spill] sm:$0xff] }
 0x32c   : > { %v9287_v13 = vmul.f32 %v4417_v59, %v4219_v4  ;;  %v9292_v37 = vmul.f32 %v5050_v31, %v4219_v4  ;;  %v4224_v51 = vmax.f32 %v4222_v17, %v4223_v10  ;;  %v3941_v56 = vrot.slane %v3940_v19, 4  ;;  %v6006_v10 = vld [vmem:[%s6754_s28 + $0x60] sm:$0xf] }
 0x32d   : > { %v4806_v49 = vsel %vm4732_vm6, %v4805_v6, %v4804_v2  ;;  %v4807_v22 = vrot.slane %v4571_v1, 3  ;;  %v5432_v45 = vsel %vm4732_vm6, %v5431_v58, %v5430_v34  ;;  %v5433_v28 = vrot.slane %v5204_v9, 3 }
 0x32e   : > { %v3947_v36 = vsel %vm3617_vm2, %v3542_v32, -inf  ;;  %v3457_v59 = vmax.f32 %v9173_v25, %v3318_v50  ;;  %v2815_v60 = vmax.f32 %v10063_v12, 0.0  ;;  %v4231_v17 = vmax.f32 %v4229_v57, %v4230_v38  ;;  %v6494_v50 = vld [vmem:[%s6754_s28 + $0x28] sm:$0xff]  }
 0x32f   : > { %v9300_v53 = vsel %vm4735_vm7, %v4807_v22, %v4806_v49  ;;  %v9303_v31 = vsel %vm4735_vm7, %v5433_v28, %v5432_v45  ;;  %v3948_v2 = vrot.slane %v3947_v36, 4  ;;  %v3942_v21 = vmax.f32 %v3940_v19, %v3941_v56 }
 0x330   : > { %v3563_v34 = vcombine.high %v3457_v59, %v3457_v59  ;;  %v4234_v3 = vsel %vm3617_vm2, %v3457_v59, -inf  ;;  %v3018_v43 = vmul.f32 %v9048_v23, %v2815_v60  ;;  %v4225_v25 = vrot.slane %v4224_v51, 1 }
 0x331   : > { %v3949_v4 = vmax.f32 %v3947_v36, %v3948_v2  ;;  %v2913_v42 = vmax.f32 %v10064_v20, 0.0  ;;  %v3943_v48 = vrot.slane %v3942_v21, 2  ;;  %v9312_v1 = vunpack.c.h.bf16 %v6494_v50 }
 0x332   : > { %v4241_v32 = vsel %vm3617_vm2, %v3563_v34, -inf  ;;  %v3221_v57 = vadd.f32 %v9072_v52, %v3018_v43  ;;  %v4235_v19 = vrot.slane %v4234_v3, 4  ;;  %v4232_v58 = vrot.slane %v4231_v17, 1  ;;  %v10065_v34 = vld [vmem:[#allocation16_spill] sm:$0xff] }
 0x333   : > { %v4242_v6 = vrot.slane %v4241_v32, 4  ;;  %v3116_v9 = vmul.f32 %v9048_v23, %v2913_v42  ;;  %v3944_v49 = vmax.f32 %v3942_v21, %v3943_v48  ;;  %v9317_v22 = vunpack.c.l.bf16 %v6006_v10  ;;  %v10066_v10 = vld [vmem:[#allocation12_spill] sm:$0xff] }
 0x334   : > { %v3395_v45 = vmax.f32 %v9176_v11, %v3221_v57  ;;  %v4226_v28 = vmax.f32 %v4224_v51, %v4225_v25  ;;  %v3950_v56 = vrot.slane %v3949_v4, 2  ;;  %v4420_v2 = vrot.slane %v9312_v1, 1  ;;  %v10067_v25 = vld [vmem:[#allocation23_spill] sm:$0xff] }
 0x335   : > { %v4243_v36 = vmax.f32 %v4241_v32, %v4242_v6  ;;  %v3319_v59 = vadd.f32 %v9072_v52, %v3116_v9  ;;  %v3945_v60 = vrot.slane %v3944_v49, 1  ;;  %v4236_v20 = vmax.f32 %v4234_v3, %v4235_v19 }
 0x336   : > { %v3396_v43 = vmax.f32 %v3395_v45, %v10065_v34  ;;  %v2816_v48 = vmax.f32 %v10066_v10, 0.0  ;;  %v4233_v50 = vmax.f32 %v4231_v17, %v4232_v58  ;;  %v5053_v51 = vrot.slane %v9317_v22, 1 }
 0x337   : > { %v4244_v42 = vrot.slane %v4243_v36, 2  ;;  %v3460_v21 = vmax.f32 %v9180_v24, %v3319_v59  ;;  %v3946_v11 = vmax.f32 %v3944_v49, %v3945_v60  ;;  %v9330_v57 = vmul.f32 %v4418_v61, %v4226_v28 }
 0x338   : > { %v3397_v32 = vmax.f32 %v3396_v43, %v10067_v25  ;;  %v9334_v6 = vmul.f32 %v5051_v63, %v4226_v28  ;;  %v3951_v3 = vmax.f32 %v3949_v4, %v3950_v56  ;;  %v4237_v49 = vrot.slane %v4236_v20, 2 }
 0x339   : > { %v4245_v19 = vmax.f32 %v4243_v36, %v4244_v42  ;;  %v4572_v24 = vmul.f32 %v4383_v26, %v3946_v11  ;;  %v5205_v17 = vmul.f32 %v5016_v54, %v3946_v11  ;;  %v3564_v59 = vcombine.high %v3460_v21, %v3460_v21 }
 0x33a   : > { %v3543_v9 = vcombine.high %v3397_v32, %v3397_v32  ;;  %v3954_v58 = vsel %vm3617_vm2, %v3397_v32, -inf  ;;  %v3019_v61 = vmul.f32 %v9048_v23, %v2816_v48  ;;  %v9345_v28 = vmul.f32 %v4419_v8, %v4233_v50 }
 0x33b   : > { %v4246_v45 = vrot.slane %v4245_v19, 1  ;;  %v4809_v60 = vrot.slane %v4572_v24, 2  ;;  %v5435_v34 = vrot.slane %v5205_v17, 2  ;;  %v3955_v63 = vrot.slane %v3954_v58, 4  ;;  %v10068_v24 = vld [vmem:[#allocation27_spill] sm:$0xff] }
 0x33c   : > { %v3961_v4 = vsel %vm3617_vm2, %v3543_v9, -inf  ;;  %v9350_v54 = vmul.f32 %v5052_v44, %v4233_v50  ;;  %v3952_v36 = vrot.slane %v3951_v3, 1  ;;  %v4238_v8 = vmax.f32 %v4236_v20, %v4237_v49 }
 0x33d   : > { %v9355_v43 = vsel %vm4738_vm8, %v4809_v60, %v9300_v53  ;;  %v9359_v42 = vsel %vm4738_vm8, %v5435_v34, %v9303_v31  ;;  %v3956_v41 = vmax.f32 %v3954_v58, %v3955_v63  ;;  %v4247_v10 = vmax.f32 %v4245_v19, %v4246_v45  ;;  %v10069_v63 = vld [vmem:[#allocation17_spill] sm:$0xff] }
 0x33e   : > { %v3962_v48 = vrot.slane %v3961_v4, 4  ;;  %v4248_v11 = vsel %vm3617_vm2, %v3460_v21, -inf  ;;  %v4255_v50 = vsel %vm3617_vm2, %v3564_v59, -inf  ;;  %v3222_v25 = vadd.f32 %v9072_v52, %v3019_v61 }
 0x33f   : > { %v3957_v0 = vrot.slane %v3956_v41, 2  ;;  %v4249_v44 = vrot.slane %v4248_v11, 4  ;;  %v4385_v53 = vrot.slane %v10068_v24, 1  ;;  %v5018_v17 = vrot.slane %v9129_v55, 1 }
 0x340   : > { %v3963_v32 = vmax.f32 %v3961_v4, %v3962_v48  ;;  %v4256_v9 = vrot.slane %v4255_v50, 4  ;;  %v3953_v31 = vmax.f32 %v3951_v3, %v3952_v36  ;;  %v4421_v20 = vrot.slane %v9312_v1, 2  ;;  %v10070_v3 = vld [vmem:[#allocation33_spill] sm:$0xff] }
 0x341   : > { %v4250_v60 = vmax.f32 %v4248_v11, %v4249_v44  ;;  %v3398_v19 = vmax.f32 %v9185_v35, %v3222_v25  ;;  %v4239_v58 = vrot.slane %v4238_v8, 1  ;;  %v4422_v49 = vrot.slane %v9312_v1, 3  ;;  %v10071_v44 = vld [vmem:[#allocation24_spill] sm:$0xff] }
 0x342   : > { %v3964_v21 = vrot.slane %v3963_v32, 2  ;;  %v5054_v45 = vrot.slane %v9317_v22, 2  ;;  %v4615_v59 = vmul.f32 %v4420_v2, %v4247_v10  ;;  %v3958_v61 = vmax.f32 %v3956_v41, %v3957_v0 }
 0x343   : > { %v4257_v34 = vmax.f32 %v4255_v50, %v4256_v9  ;;  %v3399_v4 = vmax.f32 %v3398_v19, %v10069_v63  ;;  %v5248_v48 = vmul.f32 %v5053_v51, %v4247_v10  ;;  %v4251_v12 = vrot.slane %v4250_v60, 2 }
 0x344   : > { %v3965_v56 = vmax.f32 %v3963_v32, %v3964_v21  ;;  %v2914_v36 = vmax.f32 %v10070_v3, 0.0  ;;  %v9374_v11 = vmul.f32 %v4384_v5, %v3953_v31  ;;  %v5055_v35 = vrot.slane %v9317_v22, 3 }
 0x345   : > { %v3400_v25 = vmax.f32 %v3399_v4, %v10071_v44  ;;  %v4386_v16 = vrot.slane %v10068_v24, 2  ;;  %v9381_v2 = vmul.f32 %v5017_v33, %v3953_v31  ;;  %v4240_v41 = vmax.f32 %v4238_v8, %v4239_v58 }
 0x346   : > { %v3966_v51 = vrot.slane %v3965_v56, 1  ;;  %v3117_v10 = vmul.f32 %v9048_v23, %v2914_v36  ;;  %v4883_v0 = vrot.slane %v4615_v59, 7  ;;  %v3959_v50 = vrot.slane %v3958_v61, 1 }
 0x347   : > { %v4258_v32 = vrot.slane %v4257_v34, 2  ;;  %v3544_v14 = vcombine.high %v3400_v25, %v3400_v25  ;;  %v5509_v5 = vrot.slane %v5248_v48, 7  ;;  %v4252_v9 = vmax.f32 %v4250_v60, %v4251_v12 }
 0x348   : > { %v3968_v19 = vsel %vm3617_vm2, %v3400_v25, -inf  ;;  %v3320_v21 = vadd.f32 %v9072_v52, %v3117_v10  ;;  %v4811_v63 = vrot.slane %v9374_v11, 1  ;;  %v3967_v4 = vmax.f32 %v3965_v56, %v3966_v51 }
 0x349   : > { %v3969_v7 = vrot.slane %v3968_v19, 4  ;;  %v3975_v33 = vsel %vm3617_vm2, %v3544_v14, -inf  ;;  %v4614_v31 = vmul.f32 %v9312_v1, %v4240_v41  ;;  %v5247_v58 = vmul.f32 %v9317_v22, %v4240_v41 }
 0x34a   : > { %v3976_v59 = vrot.slane %v3975_v33, 4  ;;  %v3960_v3 = vmax.f32 %v3958_v61, %v3959_v50  ;;  %v4259_v48 = vmax.f32 %v4257_v34, %v4258_v32  ;;  %v4387_v60 = vrot.slane %v10068_v24, 3 }
 0x34b   : > { %v3970_v12 = vmax.f32 %v3968_v19, %v3969_v7  ;;  %v9393_v36 = vsel %vm4723_vm3, %v4883_v0, %v4614_v31  ;;  %v9396_v56 = vsel %vm4723_vm3, %v5509_v5, %v5247_v58  ;;  %v4253_v44 = vrot.slane %v4252_v9, 1 }
 0x34c   : > { %v3463_v25 = vmax.f32 %v9196_v15, %v3320_v21  ;;  %v4575_v51 = vmul.f32 %v4385_v53, %v3967_v4  ;;  %v3977_v14 = vmax.f32 %v3975_v33, %v3976_v59  ;;  %v5019_v41 = vrot.slane %v9129_v55, 2  ;;  %v10072_v53 = vld [vmem:[#allocation30_spill] sm:$0xff] }
 0x34d   : > { %v3971_v10 = vrot.slane %v3970_v12, 2  ;;  %v5208_v26 = vmul.f32 %v5018_v17, %v3967_v4  ;;  %v5020_v61 = vrot.slane %v9129_v55, 3  ;;  %v4423_v34 = vrot.slane %v9312_v1, 4 }
 0x34e   : > { %v4574_v0 = vmul.f32 %v10068_v24, %v3960_v3  ;;  %v4260_v32 = vrot.slane %v4259_v48, 1  ;;  %v3978_v19 = vrot.slane %v3977_v14, 2  ;;  %v4254_v7 = vmax.f32 %v4252_v9, %v4253_v44 }
 0x34f   : > { %v3972_v5 = vmax.f32 %v3970_v12, %v3971_v10  ;;  %v3565_v31 = vcombine.high %v3463_v25, %v3463_v25  ;;  %v4262_v15 = vsel %vm3617_vm2, %v3463_v25, -inf  ;;  %v2817_v21 = vmax.f32 %v10072_v53, 0.0  ;;  %v10073_v53 = vld [vmem:[#allocation60_spill] sm:$0xff] }
 0x350   : > { %v4813_v33 = vrot.slane %v4575_v51, 7  ;;  %v3979_v17 = vmax.f32 %v3977_v14, %v3978_v19  ;;  %v4263_v4 = vrot.slane %v4262_v15, 4  ;;  %v5207_v59 = vmul.f32 %v9129_v55, %v3960_v3 }
 0x351   : > { %v3973_v58 = vrot.slane %v3972_v5, 1  ;;  %v5439_v38 = vrot.slane %v5208_v26, 7  ;;  %v4269_v8 = vsel %vm3617_vm2, %v3565_v31, -inf  ;;  %v3020_v47 = vmul.f32 %v9048_v23, %v2817_v21 }
 0x352   : > { %v4261_v50 = vmax.f32 %v4259_v48, %v4260_v32  ;;  %v3980_v10 = vrot.slane %v3979_v17, 1  ;;  %v4270_v9 = vrot.slane %v4269_v8, 4  ;;  %v4616_v44 = vmul.f32 %v4421_v20, %v4254_v7 }
 0x353   : > { %v3974_v12 = vmax.f32 %v3972_v5, %v3973_v58  ;;  %v4264_v25 = vmax.f32 %v4262_v15, %v4263_v4  ;;  %v3223_v51 = vadd.f32 %v9072_v52, %v3020_v47  ;;  %v2915_v14 = vmax.f32 %v10073_v53, 0.0 }
 0x354   : > { %v4814_v19 = vsel %vm4723_vm3, %v4813_v33, %v4574_v0  ;;  %v3981_v3 = vmax.f32 %v3979_v17, %v3980_v10  ;;  %v5440_v48 = vsel %vm4723_vm3, %v5439_v38, %v5207_v59  ;;  %v4271_v32 = vmax.f32 %v4269_v8, %v4270_v9  ;;  %v10074_v33 = vld [vmem:[#allocation18_spill] sm:$0xff]  ;;  %v10075_v59 = vld [vmem:[#allocation25_spill] sm:$0xff] }
 0x355   : > { %v4576_v26 = vmul.f32 %v4386_v16, %v3974_v12  ;;  %v5209_v31 = vmul.f32 %v5019_v41, %v3974_v12  ;;  %v3401_v5 = vmax.f32 %v9188_v62, %v3223_v51  ;;  %v3118_v21 = vmul.f32 %v9048_v23, %v2915_v14  ;;  %v10076_v51 = vld [vmem:[#allocation61_spill] sm:$0xff] }
 0x356   : > { %v4577_v20 = vmul.f32 %v4387_v60, %v3981_v3  ;;  %v5210_v58 = vmul.f32 %v5020_v61, %v3981_v3  ;;  %v5249_v4 = vmul.f32 %v5054_v45, %v4254_v7  ;;  %v4265_v0 = vrot.slane %v4264_v25, 2 }
 0x357   : > { %v4815_v15 = vrot.slane %v4576_v26, 6  ;;  %v5441_v47 = vrot.slane %v5209_v31, 6  ;;  %v3402_v17 = vmax.f32 %v3401_v5, %v10074_v33  ;;  %v3321_v16 = vadd.f32 %v9072_v52, %v3118_v21 }
 0x358   : > { %v4817_v38 = vrot.slane %v4577_v20, 5  ;;  %v5443_v62 = vrot.slane %v5210_v58, 5  ;;  %v9427_v60 = vmul.f32 %v4422_v49, %v4261_v50  ;;  %v4272_v61 = vrot.slane %v4271_v32, 2 }
 0x359   : > { %v4816_v41 = vsel %vm4726_vm4, %v4815_v15, %v4814_v19  ;;  %v5442_v8 = vsel %vm4726_vm4, %v5441_v47, %v5440_v48  ;;  %v3403_v12 = vmax.f32 %v3402_v17, %v10075_v59  ;;  %v3466_v45 = vmax.f32 %v9217_v39, %v3321_v16 }
 0x35a   : > { %v9433_v7 = vmul.f32 %v5055_v35, %v4261_v50  ;;  %v9436_v10 = vsel %vm4729_vm5, %v4817_v38, %v4816_v41  ;;  %v9439_v9 = vsel %vm4729_vm5, %v5443_v62, %v5442_v8  ;;  %v2818_v53 = vmax.f32 %v10076_v51, 0.0  ;;  %v10077_v51 = vld [vmem:[#allocation38_spill] sm:$0xff] }
 0x35b   : > { %v4885_v14 = vrot.slane %v4616_v44, 6  ;;  %v4266_v49 = vmax.f32 %v4264_v25, %v4265_v0  ;;  %v3545_v19 = vcombine.high %v3403_v12, %v3403_v12  ;;  %v3982_v3 = vsel %vm3617_vm2, %v3403_v12, -inf }
 0x35c   : > { %v5511_v26 = vrot.slane %v5249_v4, 6  ;;  %v3983_v31 = vrot.slane %v3982_v3, 4  ;;  %v3566_v39 = vcombine.high %v3466_v45, %v3466_v45  ;;  %v4276_v48 = vsel %vm3617_vm2, %v3466_v45, -inf  ;;  %v10097_v4 = vld [vmem:[#allocation84_spill] sm:$0xff] }
 0x35d   : > { %v4273_v35 = vmax.f32 %v4271_v32, %v4272_v61  ;;  %v5056_v50 = vrot.slane %v9317_v22, 4  ;;  %v3989_v5 = vsel %vm3617_vm2, %v3545_v19, -inf  ;;  %v3021_v21 = vmul.f32 %v9048_v23, %v2818_v53 }
 0x35e   : > { %v3984_v20 = vmax.f32 %v3982_v3, %v3983_v31  ;;  %v3990_v15 = vrot.slane %v3989_v5, 4  ;;  %v4277_v58 = vrot.slane %v4276_v48, 4  ;;  %v4283_v44 = vsel %vm3617_vm2, %v3566_v39, -inf }
 0x35f   : > { %v9450_v25 = vsel %vm4726_vm4, %v4885_v14, %v9393_v36  ;;  %v4887_v47 = vrot.slane %v9427_v60, 5  ;;  %v4267_v32 = vrot.slane %v4266_v49, 1  ;;  %v9456_v0 = vsel %vm4726_vm4, %v5511_v26, %v9396_v56 }
 0x360   : > { %v5057_v23 = vrot.slane %v9317_v22, 5  ;;  %v3985_v33 = vrot.slane %v3984_v20, 2  ;;  %v3991_v17 = vmax.f32 %v3989_v5, %v3990_v15  ;;  %v4388_v16 = vrot.slane %v10068_v24, 4 }
 0x361   : > { %v4278_v41 = vmax.f32 %v4276_v48, %v4277_v58  ;;  %v4284_v38 = vrot.slane %v4283_v44, 4  ;;  %v3224_v36 = vadd.f32 %v9072_v52, %v3021_v21  ;;  %v4274_v8 = vrot.slane %v4273_v35, 1  ;;  %v10078_v48 = vld [vmem:[#allocation19_spill] sm:$0xff] }
 0x362   : > { %v3986_v62 = vmax.f32 %v3984_v20, %v3985_v33  ;;  %v3992_v61 = vrot.slane %v3991_v17, 2  ;;  %v4389_v59 = vrot.slane %v10068_v24, 5  ;;  %v4268_v12 = vmax.f32 %v4266_v49, %v4267_v32  ;;  %v6495_v49 = vld [vmem:[%s9720_s2] ss:$0 sm:$0xff]  ;;  %v10079_v33 = vld [vmem:[#allocation26_spill] sm:$0xff] }
 0x363   : > { %v5021_v45 = vrot.slane %v9129_v55, 4  ;;  %v3404_v56 = vmax.f32 %v9205_v18, %v3224_v36  ;;  %v2916_v53 = vmax.f32 %v10077_v51, 0.0  ;;  %v5022_v3 = vrot.slane %v9129_v55, 5 }
 0x364   : > { %v3987_v14 = vrot.slane %v3986_v62, 1  ;;  %v3993_v19 = vmax.f32 %v3991_v17, %v3992_v61  ;;  %v4425_v26 = vrot.slane %v9312_v1, 6  ;;  %v4279_v31 = vrot.slane %v4278_v41, 2 }
 0x365   : > { %v4285_v39 = vmax.f32 %v4283_v44, %v4284_v38  ;;  %v3405_v5 = vmax.f32 %v3404_v56, %v10078_v48  ;;  %v3119_v21 = vmul.f32 %v6495_v49, %v2916_v53  ;;  %v4275_v20 = vmax.f32 %v4273_v35, %v4274_v8 }
 0x366   : > { %v3988_v15 = vmax.f32 %v3986_v62, %v3987_v14  ;;  %v3994_v18 = vrot.slane %v3993_v19, 1  ;;  %v5058_v58 = vrot.slane %v9317_v22, 6  ;;  %v9474_v32 = vmul.f32 %v4423_v34, %v4268_v12 }
 0x367   : > { %v3406_v17 = vmax.f32 %v3405_v5, %v10079_v33  ;;  %v3322_v44 = vadd.f32 %v9072_v52, %v3119_v21  ;;  %v9482_v38 = vsel %vm4741_vm9, %v4811_v63, %v9355_v43  ;;  %v4390_v62 = vrot.slane %v10068_v24, 6  ;;  %v10081_v33 = vld [vmem:[#allocation34_spill] sm:$0xff] }
 0x368   : > { %v3995_v36 = vmax.f32 %v3993_v19, %v3994_v18  ;;  %v4578_v35 = vmul.f32 %v4388_v16, %v3988_v15  ;;  %v5211_v8 = vmul.f32 %v5021_v45, %v3988_v15  ;;  %v4280_v61 = vmax.f32 %v4278_v41, %v4279_v31 }
 0x369   : > { %v4286_v56 = vrot.slane %v4285_v39, 2  ;;  %v3546_v51 = vcombine.high %v3406_v17, %v3406_v17  ;;  %v3996_v34 = vsel %vm3617_vm2, %v3406_v17, -inf  ;;  %v3469_v52 = vmax.f32 %v9225_v30, %v3322_v44  ;;  %v10082_v17 = vld [vmem:[#allocation44_spill] sm:$0xff] }
 0x36a   : > { %v4579_v53 = vmul.f32 %v4389_v59, %v3995_v36  ;;  %v4819_v14 = vrot.slane %v4578_v35, 4  ;;  %v5445_v48 = vrot.slane %v5211_v8, 4  ;;  %v10080_v11 = vrot.slane %v9312_v1, 5 }
 0x36b   : > { %v4889_v43 = vrot.slane %v9474_v32, 4  ;;  %v9492_v63 = vmul.f32 %v5056_v50, %v4268_v12  ;;  %v3997_v16 = vrot.slane %v3996_v34, 4  ;;  %v9494_v45 = vmul.f32 %v5057_v23, %v4275_v20 }
 0x36c   : > { %v9489_v5 = vmul.f32 %v10080_v11, %v4275_v20  ;;  %v4820_v41 = vsel %vm4732_vm6, %v4819_v14, %v9436_v10  ;;  %v4821_v19 = vrot.slane %v4579_v53, 3  ;;  %v9500_v59 = vsel %vm4732_vm6, %v5445_v48, %v9439_v9  ;;  %v10087_v53 = vld [vmem:[#allocation71_spill] sm:$0xff]  ;;  %v10088_v14 = vld [vmem:[#allocation49_spill] sm:$0xff] }
 0x36d   : > { %v4281_v30 = vrot.slane %v4280_v61, 1  ;;  %v3998_v31 = vmax.f32 %v3996_v34, %v3997_v16  ;;  %v4003_v49 = vsel %vm3617_vm2, %v3546_v51, -inf  ;;  %v5023_v21 = vrot.slane %v9129_v55, 6  ;;  %v10084_v51 = vld [vmem:[#allocation42_spill] sm:$0xff] }
 0x36e   : > { %v4287_v15 = vmax.f32 %v4285_v39, %v4286_v56  ;;  %v4004_v50 = vrot.slane %v4003_v49, 4  ;;  %v3567_v12 = vcombine.high %v3469_v52, %v3469_v52  ;;  %v4290_v23 = vsel %vm3617_vm2, %v3469_v52, -inf  ;;  %v10085_v39 = vld [vmem:[#allocation56_spill] sm:$0xff] }
 0x36f   : > { %v3999_v20 = vrot.slane %v3998_v31, 2  ;;  %v4291_v18 = vrot.slane %v4290_v23, 4  ;;  %v4822_v10 = vsel %vm4735_vm7, %v4821_v19, %v4820_v41  ;;  %v10083_v44 = vrot.slane %v10082_v17, 1  ;;  %v10090_v19 = vld [vmem:[#allocation28_spill] sm:$0xff] }
 0x370   : > { %v4005_v35 = vmax.f32 %v4003_v49, %v4004_v50  ;;  %v4297_v8 = vsel %vm3617_vm2, %v3567_v12, -inf  ;;  %v10086_v56 = vrot.slane %v10085_v39, 3  ;;  %v10089_v48 = vrot.slane %v10088_v14, 3  ;;  %v10092_v50 = vld [vmem:[#allocation70_spill] sm:$0xff] }
 0x371   : > { %v9510_v9 = vsel %vm4741_vm9, %v10083_v44, %v10081_v33  ;;  %v4000_v11 = vmax.f32 %v3998_v31, %v3999_v20  ;;  %v4292_v16 = vmax.f32 %v4290_v23, %v4291_v18  ;;  %v4298_v41 = vrot.slane %v4297_v8, 4  ;;  %v10094_v39 = vld [vmem:[#allocation78_spill] sm:$0xff] }
 0x372   : > { %v4850_v34 = vsel %vm4735_vm7, %v10086_v56, %v10084_v51  ;;  %v4864_v52 = vsel %vm4735_vm7, %v10089_v48, %v10087_v53  ;;  %v10091_v33 = vrot.slane %v10090_v19, 2  ;;  %v4006_v49 = vrot.slane %v4005_v35, 2  ;;  %v10096_v14 = vld [vmem:[#allocation82_spill] sm:$0xff]  ;;  %v10099_v48 = vld [vmem:[#allocation52_spill] sm:$0xff] }
 0x373   : > { %v10093_v12 = vrot.slane %v10092_v50, 1  ;;  %v10095_v51 = vrot.slane %v10094_v39, 2  ;;  %v10098_v53 = vrot.slane %v10097_v4, 5  ;;  %v9536_v23 = vmax.f32 %v4280_v61, %v4281_v30 }
 0x374   : > { %v4852_v17 = vsel %vm4738_vm8, %v10091_v33, %v4850_v34  ;;  %v4001_v20 = vrot.slane %v4000_v11, 1  ;;  %v4299_v18 = vmax.f32 %v4297_v8, %v4298_v41  ;;  %v9539_v34 = vld [vmem:[%s6754_s28 + $0x30] sm:$0x1]  ;;  %v10100_v19 = vrot.slane %v10099_v48, 1 }
 0x375   : > { %v9527_v44 = vsel %vm4741_vm9, %v10093_v12, %v4852_v17  ;;  %v4866_v56 = vsel %vm4738_vm8, %v10095_v51, %v4864_v52  ;;  %v4874_v31 = vsel %vm4729_vm5, %v10098_v53, %v10096_v14  ;;  %v4891_v17 = vrot.slane %v9489_v5, 3 }
 0x376   : > { %v9544_v33 = vsel %vm4741_vm9, %v10100_v19, %v4866_v56  ;;  %v4288_v50 = vrot.slane %v4287_v15, 1  ;;  %v4007_v12 = vmax.f32 %v4005_v35, %v4006_v49  ;;  %v5212_v4 = vmul.f32 %v5022_v3, %v3995_v36 }
 0x377   : > { %v4002_v61 = vmax.f32 %v4000_v11, %v4001_v20  ;;  %v4293_v30 = vrot.slane %v4292_v16, 2  ;;  %v4300_v39 = vrot.slane %v4299_v18, 2  ;;  %v4391_v41 = vrot.slane %v10068_v24, 7 }
 0x378   : > { %v4008_v8 = vrot.slane %v4007_v12, 1  ;;  %v5024_v51 = vrot.slane %v9129_v55, 7  ;;  %v4329_v56 = vunpack.c.l.bf16 %v9539_v34  ;;  %v4620_v5 = vmul.f32 %v4425_v26, %v9536_v23 }
 0x379   : > { %v4580_v14 = vmul.f32 %v4390_v62, %v4002_v61  ;;  %v5213_v53 = vmul.f32 %v5023_v21, %v4002_v61  ;;  %v4301_v35 = vmax.f32 %v4299_v18, %v4300_v39  ;;  %v9556_v49 = vmax.f32 %v4287_v15, %v4288_v50  ;;  %v9567_v18 = vld [vmem:[%s6754_s28 + $0x64] sm:$0x1] }
 0x37a   : > { %v4009_v3 = vmax.f32 %v4007_v12, %v4008_v8  ;;  %v4426_v36 = vrot.slane %v9312_v1, 7  ;;  %v4916_v24 = vadd.f32 %v9092_v40, %v9482_v38  ;;  %v5447_v11 = vrot.slane %v5212_v4, 3 }
 0x37b   : > { %v4823_v55 = vrot.slane %v4580_v14, 2  ;;  %v4294_v20 = vmax.f32 %v4292_v16, %v4293_v30  ;;  %v4302_v34 = vrot.slane %v4301_v35, 1  ;;  %v5449_v52 = vrot.slane %v5213_v53, 2  ;;  %v10108_v14 = vld [vmem:[#allocation59_spill] sm:$0xff] }
 0x37c   : > { %v4581_v48 = vmul.f32 %v4391_v41, %v4009_v3  ;;  %v5214_v19 = vmul.f32 %v5024_v51, %v4009_v3  ;;  %v4888_v26 = vsel %vm4729_vm5, %v4887_v47, %v9450_v25  ;;  %v4893_v62 = vrot.slane %v4620_v5, 2  ;;  %v10104_v41 = vld [vmem:[#allocation35_spill] sm:$0xff]  ;;  %v10111_v3 = vld [vmem:[#allocation73_spill] sm:$0xff] }
 0x37d   : > { %v4303_v21 = vmax.f32 %v4301_v35, %v4302_v34  ;;  %v4427_v15 = vrot.slane %v4329_v56, 1  ;;  %v4824_v1 = vsel %vm4738_vm8, %v4823_v55, %v4822_v10  ;;  %v4621_v16 = vmul.f32 %v4426_v36, %v9556_v49  ;;  %v10110_v35 = vld [vmem:[#allocation72_spill] sm:$0xff]  ;;  %v10113_v55 = vld [vmem:[#allocation29_spill] sm:$0xff] }
 0x37e   : > { %v4825_v40 = vrot.slane %v4581_v48, 1  ;;  %v5451_v38 = vrot.slane %v5214_v19, 1  ;;  %v10101_v50 = vrot.slane %v9270_v27, 4  ;;  %v4295_v4 = vrot.slane %v4294_v20, 1  ;;  %v10115_v48 = vld [vmem:[#allocation79_spill] sm:$0xff] }
 0x37f   : > { %v4890_v60 = vsel %vm4732_vm6, %v4889_v43, %v4888_v26  ;;  %v10102_v25 = vrot.slane %v9381_v2, 1  ;;  %v5448_v10 = vsel %vm4735_vm7, %v5447_v11, %v9500_v59  ;;  %v4881_v30 = vrot.slane %v9345_v28, 1  ;;  %v10105_v59 = vld [vmem:[#allocation45_spill] sm:$0xff]  ;;  %v10107_v28 = vld [vmem:[#allocation43_spill] sm:$0xff] }
 0x380   : > { %v4876_v12 = vsel %vm4732_vm6, %v10101_v50, %v4874_v31  ;;  %v4826_v61 = vsel %vm4741_vm9, %v4825_v40, %v4824_v1  ;;  %v4962_v27 = vunpack.c.l.bf16 %v9567_v18  ;;  %v5450_v31 = vsel %vm4738_vm8, %v5449_v52, %v5448_v10  ;;  %v10117_v1 = vld [vmem:[#allocation40_spill] sm:$0xff] }
 0x381   : > { %v5438_v47 = vsel %vm4741_vm9, %v10102_v25, %v9359_v42  ;;  %v4623_v39 = vmul.f32 %v4427_v15, %v4303_v21  ;;  %v10103_v32 = vrot.slane %v9287_v13, 3  ;;  %v4917_v8 = vadd.f32 %v4916_v24, %v4826_v61 }
 0x382   : > { %v5452_v2 = vsel %vm4741_vm9, %v5451_v38, %v5450_v31  ;;  %v4892_v42 = vsel %vm4735_vm7, %v4891_v17, %v4890_v60  ;;  %v10106_v51 = vrot.slane %v10105_v59, 1  ;;  %v10109_v53 = vrot.slane %v10108_v14, 3  ;;  %v10119_v38 = vld [vmem:[#allocation81_spill] sm:$0xff] }
 0x383   : > { %v4878_v43 = vsel %vm4735_vm7, %v10103_v32, %v4876_v12  ;;  %v10112_v13 = vrot.slane %v10111_v3, 3  ;;  %v4296_v24 = vmax.f32 %v4294_v20, %v4295_v4  ;;  %v4918_v11 = vadd.f32 %v4917_v8, %v9510_v9  ;;  %v10121_v20 = vld [vmem:[#allocation83_spill] sm:$0xff]  ;;  %v10122_v4 = vld [vmem:[#allocation85_spill] sm:$0xff] }
 0x384   : > { %v5466_v5 = vsel %vm4741_vm9, %v10106_v51, %v10104_v41  ;;  %v5476_v52 = vsel %vm4735_vm7, %v10109_v53, %v10107_v28  ;;  %v10114_v17 = vrot.slane %v10113_v55, 2  ;;  %v10116_v19 = vrot.slane %v10115_v48, 2 }
 0x385   : > { %v5490_v36 = vsel %vm4735_vm7, %v10112_v13, %v10110_v35  ;;  %v5060_v15 = vrot.slane %v4962_v27, 1  ;;  %v10118_v18 = vrot.slane %v10117_v1, 1  ;;  %v10120_v50 = vrot.slane %v10119_v38, 1 }
 0x386   : > { %v5478_v34 = vsel %vm4738_vm8, %v10114_v17, %v5476_v52  ;;  %v5492_v26 = vsel %vm4738_vm8, %v10116_v19, %v5490_v36  ;;  %v10123_v9 = vrot.slane %v10122_v4, 5  ;;  %v5253_v25 = vmul.f32 %v5058_v58, %v9536_v23 }
 0x387   : > { %v5480_v40 = vsel %vm4741_vm9, %v10118_v18, %v5478_v34  ;;  %v5494_v12 = vsel %vm4741_vm9, %v10120_v50, %v5492_v26  ;;  %v10124_v10 = vrot.slane %v9330_v57, 2  ;;  %v4897_v31 = vrot.slane %v4623_v39, 7 }
 0x388   : > { %v5500_v60 = vsel %vm4729_vm5, %v10123_v9, %v10121_v20  ;;  %v4919_v32 = vadd.f32 %v4918_v11, %v9527_v44  ;;  %v4894_v8 = vsel %vm4738_vm8, %v4893_v62, %v4892_v42  ;;  %v4895_v41 = vrot.slane %v4621_v16, 1 }
 0x389   : > { %v4880_v61 = vsel %vm4738_vm8, %v10124_v10, %v4878_v43  ;;  %v5059_v59 = vrot.slane %v9317_v22, 7  ;;  %v10125_v51 = vrot.slane %v9433_v7, 5  ;;  %v4622_v14 = vmul.f32 %v4329_v56, %v4296_v24 }
 0x38a   : > { %v4920_v58 = vadd.f32 %v4919_v32, %v9544_v33  ;;  %v10126_v57 = vrot.slane %v9275_v46, 4  ;;  %v5542_v39 = vadd.f32 %v9095_v29, %v5438_v47  ;;  %v5517_v44 = vrot.slane %v9494_v45, 3 }
 0x38b   : > { %v5514_v28 = vsel %vm4729_vm5, %v10125_v51, %v9456_v0  ;;  %v4882_v62 = vsel %vm4741_vm9, %v4881_v30, %v4880_v61  ;;  %v5256_v22 = vmul.f32 %v5060_v15, %v4303_v21  ;;  %v4898_v16 = vsel %vm4723_vm3, %v4897_v31, %v4622_v14 }
 0x38c   : > { %v5502_v23 = vsel %vm4732_vm6, %v10126_v57, %v5500_v60  ;;  %v4921_v7 = vadd.f32 %v4920_v58, %v4882_v62  ;;  %v10127_v0 = vrot.slane %v9492_v63, 4  ;;  %v5543_v33 = vadd.f32 %v5542_v39, %v5452_v2 }
 0x38d   : > { %v4896_v46 = vsel %vm4741_vm9, %v4895_v41, %v4894_v8  ;;  %v5254_v43 = vmul.f32 %v5059_v59, %v9556_v49  ;;  %v10128_v29 = vrot.slane %v9292_v37, 3  ;;  %v5519_v47 = vrot.slane %v5253_v25, 2  ;;  %v5560_v25 = vld [vmem:[#allocation2] sm:$0x1] }
 0x38e   : > { %v5516_v56 = vsel %vm4732_vm6, %v10127_v0, %v5514_v28  ;;  %v4922_v30 = vadd.f32 %v4921_v7, %v4896_v46  ;;  %v5544_v42 = vadd.f32 %v5543_v33, %v5466_v5  ;;  %v4924_v21 = vsel %vm4923_vm10, %v4898_v16, 0.0 }
 0x38f   : > { %v5504_v45 = vsel %vm4735_vm7, %v10128_v29, %v5502_v23  ;;  %v5507_v53 = vrot.slane %v9350_v54, 1  ;;  %v5518_v63 = vsel %vm4735_vm7, %v5517_v44, %v5516_v56  ;;  %v10129_v2 = vrot.slane %v9334_v6, 2 }
 0x390   : > { %v4925_v52 = vadd.f32 %v4924_v21, %v4922_v30  ;;  %v5523_v3 = vrot.slane %v5256_v22, 7  ;;  %v5545_v49 = vadd.f32 %v5544_v42, %v5480_v40  ;;  %v5521_v13 = vrot.slane %v5254_v43, 1 }
 0x391   : > { %v5506_v35 = vsel %vm4738_vm8, %v10129_v2, %v5504_v45  ;;  %v5255_v36 = vmul.f32 %v4962_v27, %v4296_v24  ;;  %v5520_v11 = vsel %vm4738_vm8, %v5519_v47, %v5518_v63 }
 0x392   : > { %v4926_v37 = vrot.slane %v4925_v52, 4  ;;  %v5546_v55 = vadd.f32 %v5545_v49, %v5494_v12  ;;  %v5508_v5 = vsel %vm4741_vm9, %v5507_v53, %v5506_v35  ;;  %v5522_v48 = vsel %vm4741_vm9, %v5521_v13, %v5520_v11 }
 0x393   : > { %v5524_v54 = vsel %vm4723_vm3, %v5523_v3, %v5255_v36 }
 0x394   : > { %v4927_v17 = vadd.f32 %v4926_v37, %v4925_v52  ;;  %v5547_v34 = vadd.f32 %v5546_v55, %v5508_v5  ;;  %v5549_v26 = vsel %vm4923_vm10, %v5524_v54, 0.0 }
 0x396   : > { %v4928_v19 = vrot.slane %v4927_v17, 2  ;;  %v5548_v6 = vadd.f32 %v5547_v34, %v5522_v48 }
 0x398   : > { %v4929_v15 = vadd.f32 %v4928_v19, %v4927_v17  ;;  %v5550_v1 = vadd.f32 %v5549_v26, %v5548_v6 }
 0x39a   : > { %v4930_v18 = vrot.slane %v4929_v15, 1  ;;  %v5551_v40 = vrot.slane %v5550_v1, 4 }
 0x39c   : > { %v4931_v27 = vadd.f32 %v4930_v18, %v4929_v15  ;;  %v5552_v24 = vadd.f32 %v5551_v40, %v5550_v1 }
 0x39e   : > { %v4933_v38 = vsel %vm4932_vm11, %v4931_v27, 0.0  ;;  %v5553_v50 = vrot.slane %v5552_v24, 2 }
 0x39f   : > { %4934 = vadd.xlane.f32.xlu0 %v4933_v38 }
 0x3a0   : > { %v5554_v12 = vadd.f32 %v5553_v50, %v5552_v24 }
 0x3a2   : > { %v5555_v20 = vrot.slane %v5554_v12, 1 }
 0x3a4   : > { %v5556_v4 = vadd.f32 %v5555_v20, %v5554_v12 }
 0x3a6   : > { %v5557_v9 = vsel %vm4932_vm11, %v5556_v4, 0.0 }
 0x3a7   : > { %5558 = vadd.xlane.f32.xlu0 %v5557_v9 }
 0x428   : > { %v4935_v60 = vpop.xlane.xlu0 %4934 }
 0x430   : > { %v5559_v10 = vpop.xlane.xlu0 %5558  ;;  %5569 = sbr.rel (%p6008_p6) target bundleno = 1087 (0x43f), region = 93 }
 0x431   : > { %v5562_v61 = vsel %vm5561_vm12, %v4935_v60, %v5559_v10 }
 0x432   : > { %v5563_v31 = vadd.f32 %v5562_v61, %v5560_v25 }
 0x434   : > { %5565 = vst.msk [vmem:[#allocation2] sm:$0x1] %vm5564_vm13, %v5563_v31 }
 0x435   : > { %v5571_v8 = vld [vmem:[%s9723_s5] sm:$0x1] }
 0x43b   : > { %v5570_v32 = vld [vmem:[#allocation2] sm:$0x1] }
 0x43c   : > { %v5572_v41 = vadd.f32 %v5571_v8, %v5570_v32 }
 0x43e   : > { %5573 = vst.msk [vmem:[%s6758_s24] sm:$0x1] %vm5564_vm13, %v5572_v41 }
 0x43f PF: > { %s6009_s11 = sshll.u32 %s6592_s27, 4  ;;  %s5587_s26 = sshll.u32 %s6758_s24, 4  ;;  %s5588_s26 = int_to_ptr.vmem [resolvable:$true] %s5587_s26 }
 0x440   : > { %s5585_s10 = scalar_lea.hbm %s9724_s6, %s6009_s11  ;;  %s5575_s7 = scalar_lea.sflag [#allocation5], %s431_s20 }
 0x441   : > { %s6496_s12 = scalar_lea.vmem %s5588_s26, 16  ;;  %s6608_s16 = smov [#allocation4]  }
 0x442   : > { %p6497_p7 = scmp.ne.s32.totalorder %s5588_s26, %s6496_s12  ;;  %s6500_s29 = sshll.u32 %s6608_s16, 4  ;;  %s6501_s29 = int_to_ptr.vmem [resolvable:$false] %s6500_s29 }
 0x443   : > { %s6502_s8 = scalar_lea.vmem %s6501_s29, 32  ;;  %p6503_p11 = scmp.lt.s32.totalorder %s5588_s26, %s6501_s29 }
 0x444   : > { %p6498_p8 = pnand %p6497_p7, %p6723_p10  ;;  %p6504_p13 = scmp.lt.s32.totalorder %s6502_s8, %s6496_s12 }
 0x446   : > { %p6499_p9 = pneg %p6498_p8  ;;  %p6505_p0 = por %p6504_p13, %p6503_p11 }
 0x448   : > { %p6506_p1 = pnand %p6505_p0, %p6499_p9 }
 0x44a   : > { %6509 = shalt.err (!%p6506_p1)
}
 0x44b   : > { %s6510_s27 = scalar_lea.hbm %s5585_s10, 16  ;;  %s6514_s14 = scalar_lea.hbm %s9724_s6, 32 }
 0x44c   : > { %p6511_p2 = scmp.ne.s32.totalorder %s5585_s10, %s6510_s27  ;;  %p6515_p5 = scmp.lt.s32.totalorder %s5585_s10, %s9724_s6 }
 0x44d   : > { %p6516_p6 = scmp.lt.s32.totalorder %s6514_s14, %s6510_s27 }
 0x44e   : > { %p6512_p3 = pnand %p6511_p2, %p6723_p10 }
 0x44f   : > { %p6517_p7 = por %p6516_p6, %p6515_p5 }
 0x450   : > { %p6513_p4 = pneg %p6512_p3 }
 0x452   : > { %p6518_p8 = pnand %p6517_p7, %p6513_p4 }
 0x454   : > { %6521 = shalt.err (!%p6518_p8)
}
 0x455   : > { %6090 = dma.vmem_to_hbm [thread:$0]  (%p6723_p10), %s5588_s26, 16, %s5585_s10, %s5575_s7  }
 0x456 PF: > { %p6096_p9 = scmp.ge.s32.totalorder %s6604_s30, 2  ;;  %s5599_s11 = sand.u32 1, %s6568_s21  }
 0x457   : > { %s5600_s4 = scalar_lea.sflag [#allocation5], %s5599_s11 }
 0x458   : > { %p6093_p11 = pnand %p6096_p9, %p6730_p12 }
 0x45a   : > { %p6094_p13 = pneg %p6093_p11 }
 0x45c   : > { %6563 = dma.done.wait (%p6094_p13), %s5600_s4, 16  }
 0x45d   : > { %6565 = vsyncadd (%p6094_p13), %s5600_s4, 4294967280  ;;  %s19_s30 = sadd.s32 1, %s6604_s30   ;;  %s10130_s26 = sld [smem:[#allocation7_spill]] }
 0x45e   : > { %p16_p0 = scmp.ge.s32.totalorder %s19_s30, 6   ;;  %s10131_s27 = sld [smem:[#allocation8_spill]] }
 0x45f   : > { %s10132_s28 = sld [smem:[#allocation9_spill]]  ;;  %s10134_s21 = smov %s6572_s22 }
 0x460   : > { %s10133_s29 = sld [smem:[#allocation10_spill]]  ;;  %s10135_s22 = smov %s6576_s23 }
 0x461   : > { %s10136_s23 = smov %s6728_s18  ;;  %s10137_s24 = smov %s6584_s25 }
 0x462   : > { %s10138_s25 = smov %s6717_s15  ;;  %18 = sbr.rel (!%p16_p0) target bundleno = 8 (0x8), region = 137 }
 0x467   :  { %5604 = vsyncpa [#allocation5], 1 }
 0x468   :  { %5606 = vsyncpa [#allocation5 + $0x1], 1 }

</bundles_post_ra>
